<compile_context>
chip_gen: v5e
topology: v5e:2x2
jax: 0.10.0
libtpu: 0.0.40
codegen_flags: <defaults>
</compile_context>

<pallas_src>
import jax
import jax.numpy as jnp
from jax.experimental import pallas as pl
from jax.experimental.pallas import tpu as pltpu


def _round_up(x, m):
    return ((x + m - 1) // m) * m


# ---------------------------------------------------------------------------
# Recurrent LSTM kernel (time-chunked grid, state carried in VMEM scratch)
# ---------------------------------------------------------------------------
def make_lstm_kernel(n_layers: int, hidden_pad: int, t_chunk: int):
    L, Hp, TC = n_layers, hidden_pad, t_chunk

    def kernel(*refs):
        # refs: emb, h0, c0, w_cat0, [w_cat_rest], bias, hid_out, h_s, c_s
        emb_ref = refs[0]
        h0_ref = refs[1]
        c0_ref = refs[2]
        w0_ref = refs[3]
        idx = 4
        wr_ref = None
        if L > 1:
            wr_ref = refs[idx]
            idx += 1
        bias_ref = refs[idx]
        hid_ref = refs[idx + 1]
        h_s = refs[idx + 2]
        c_s = refs[idx + 3]

        @pl.when(pl.program_id(0) == 0)
        def _init():
            h_s[...] = h0_ref[...]
            c_s[...] = c0_ref[...]

        # Load the (resident, single-buffered) fused gate weights once per
        # grid step.
        gate_w = [w0_ref[...]]
        for l in range(1, L):
            gate_w.append(wr_ref[l - 1])

        # Fully-unrolled loop over the TC timesteps of this chunk (TC is a
        # small static constant; equivalent to lax.fori_loop(..., unroll=True)
        # but with static indices into the time-blocked refs).
        for ts in range(TC):
            x = emb_ref[ts]                                  # (Bp, Ep)
            for l in range(L):
                w = gate_w[l]                                # (in+Hp, 4Hp)
                h_prev = h_s[l]                              # (Bp, Hp)
                xh = jnp.concatenate([x, h_prev], axis=-1).astype(w.dtype)
                gates = (
                    jnp.dot(xh, w, preferred_element_type=jnp.float32)
                    + bias_ref[l]
                )                                            # (Bp, 4Hp) f32
                i_g = jax.nn.sigmoid(gates[:, 0:Hp])
                f_g = jax.nn.sigmoid(gates[:, Hp:2 * Hp])
                g_g = jnp.tanh(gates[:, 2 * Hp:3 * Hp])
                o_g = jax.nn.sigmoid(gates[:, 3 * Hp:4 * Hp])
                c_new = f_g * c_s[l] + i_g * g_g
                h_new = o_g * jnp.tanh(c_new)
                h_s[l] = h_new
                c_s[l] = c_new
                x = h_new
            hid_ref[ts] = x.astype(hid_ref.dtype)

    return kernel


# ---------------------------------------------------------------------------
# Output projection: one big GEMM over all timesteps (hoisted out of the
# recurrence), tiled over rows and vocab columns.
# ---------------------------------------------------------------------------
def _projection_kernel(h_ref, w_ref, b_ref, o_ref):
    o_ref[...] = (
        jnp.dot(h_ref[...].astype(w_ref.dtype), w_ref[...],
                preferred_element_type=jnp.float32)
        + b_ref[...]
    ).astype(o_ref.dtype)


def linear_projection(hid2d, w_out, b_out):
    """hid2d: (M, Hp) f32, w_out: (Hp, V), b_out: (1, V) -> (M, V) f32."""
    M, Hp = hid2d.shape
    V = w_out.shape[1]
    TM = min(256, _round_up(M, 8))
    TN = min(512, _round_up(V, 128))
    Mp = _round_up(M, TM)
    Vp = _round_up(V, TN)

    hid_p = jnp.pad(hid2d, ((0, Mp - M), (0, 0)))
    w_p = jnp.pad(w_out, ((0, 0), (0, Vp - V)))
    b_p = jnp.pad(b_out, ((0, 0), (0, Vp - V)))

    out = pl.pallas_call(
        _projection_kernel,
        out_shape=jax.ShapeDtypeStruct((Mp, Vp), jnp.float32),
        grid_spec=pltpu.PrefetchScalarGridSpec(
            num_scalar_prefetch=0,
            grid=(Mp // TM, Vp // TN),
            in_specs=[
                pl.BlockSpec((TM, Hp), lambda i, j: (i, 0)),
                pl.BlockSpec((Hp, TN), lambda i, j: (0, j)),
                pl.BlockSpec((1, TN), lambda i, j: (0, j)),
            ],
            out_specs=pl.BlockSpec((TM, TN), lambda i, j: (i, j)),
        ),
        compiler_params=pltpu.CompilerParams(
            dimension_semantics=("parallel", "parallel")),
    )(hid_p, w_p, b_p)
    return out[:M, :V]


# ---------------------------------------------------------------------------
# Parameter preparation (glue): fuse [W_ih ; W_hh], sum biases, pad gate
# blocks / dims to lane- and sublane-aligned sizes.
# ---------------------------------------------------------------------------
def _pad_gate_axis(w, H, Hp):
    """Pad the trailing 4H axis so each of the 4 gate blocks becomes Hp wide."""
    lead = w.shape[:-1]
    w = w.reshape(lead + (4, H))
    w = jnp.pad(w, [(0, 0)] * len(lead) + [(0, 0), (0, Hp - H)])
    return w.reshape(lead + (4 * Hp,))


def prepare_params(raw, hidden_dim, param_dtype=jnp.float32):
    H = hidden_dim
    Hp = _round_up(H, 128)
    E = raw["embedding"].shape[1]
    Ep = _round_up(E, 128)
    lstm = raw["lstm"]
    L = len(lstm)

    w_cats, biases = [], []
    for l, (w_ih, w_hh, b_ih, b_hh) in enumerate(lstm):
        in_dim = w_ih.shape[1]
        wx = _pad_gate_axis(w_ih.T.astype(jnp.float32), H, Hp)   # (in, 4Hp)
        wh = _pad_gate_axis(w_hh.T.astype(jnp.float32), H, Hp)   # (H, 4Hp)
        wh = jnp.pad(wh, ((0, Hp - H), (0, 0)))                  # (Hp, 4Hp)
        in_pad = Ep if l == 0 else Hp
        wx = jnp.pad(wx, ((0, in_pad - in_dim), (0, 0)))         # (in_pad, 4Hp)
        w_cats.append(jnp.concatenate([wx, wh], axis=0).astype(param_dtype))
        b = (b_ih + b_hh).reshape(1, -1).astype(jnp.float32)
        biases.append(_pad_gate_axis(b, H, Hp))                  # (1, 4Hp)

    w_out, b_out = raw["linear"]
    w_out_t = jnp.pad(w_out.T.astype(jnp.float32), ((0, Hp - H), (0, 0)))

    return {
        "embedding": raw["embedding"].astype(jnp.float32),
        "w_cat0": w_cats[0],                                     # (Ep+Hp, 4Hp)
        "w_cat_rest": jnp.stack(w_cats[1:], 0) if L > 1 else None,  # (L-1,2Hp,4Hp)
        "bias": jnp.stack(biases, 0),                            # (L, 1, 4Hp)
        "w_out": w_out_t.astype(param_dtype),                    # (Hp, V)
        "b_out": b_out.reshape(1, -1).astype(jnp.float32),       # (1, V)
        "hidden_dim": H,
        "hidden_pad": Hp,
        "emb_pad": Ep,
    }


# ---------------------------------------------------------------------------
# Forward pass (matches Decoder.forward with dropout disabled).
# ---------------------------------------------------------------------------
def decoder_forward(params, inputs, hidden_states, cell_states, t_chunk=4):
    """
    inputs:        (B, T) int32 token ids
    hidden_states: (n_layers, B, H) f32
    cell_states:   (n_layers, B, H) f32
    returns:       (B, T, output_dim) f32
    """
    emb_w = params["embedding"]
    H, Hp, Ep = params["hidden_dim"], params["hidden_pad"], params["emb_pad"]
    w0, wr, bias = params["w_cat0"], params["w_cat_rest"], params["bias"]
    L = bias.shape[0]
    B, T = inputs.shape
    E = emb_w.shape[1]
    V = params["b_out"].shape[1]

    Bp = _round_up(B, 8)
    TC = max(1, min(t_chunk, T))
    Tp = _round_up(T, TC)

    # Embedding gather (glue), time-major, pad time/batch/embed dims.
    emb = jnp.take(emb_w, inputs, axis=0)                 # (B, T, E)
    emb_tm = jnp.transpose(emb, (1, 0, 2))                # (T, B, E)
    emb_tm = jnp.pad(emb_tm, ((0, Tp - T), (0, Bp - B), (0, Ep - E)))

    h0 = jnp.pad(hidden_states, ((0, 0), (0, Bp - B), (0, Hp - H)))
    c0 = jnp.pad(cell_states, ((0, 0), (0, Bp - B), (0, Hp - H)))

    kernel = make_lstm_kernel(L, Hp, TC)

    # Constant-per-timestep inputs are single-buffered VMEM residents.
    vmem_spec = pl.BlockSpec(memory_space=pltpu.MemorySpace.VMEM)
    in_specs = [
        pl.BlockSpec((TC, Bp, Ep), lambda t: (t, 0, 0)),  # emb (time-chunked)
        vmem_spec,                                        # h0
        vmem_spec,                                        # c0
        vmem_spec,                                        # fused gate W, layer 0
    ]
    args = [emb_tm, h0, c0, w0]
    if L > 1:
        in_specs.append(vmem_spec)                        # fused gate W, layers 1..
        args.append(wr)
    in_specs.append(vmem_spec)                            # biases (L, 1, 4Hp)
    args.append(bias)

    hid_tm = pl.pallas_call(
        kernel,
        out_shape=jax.ShapeDtypeStruct((Tp, Bp, Hp), jnp.float32),
        grid_spec=pltpu.PrefetchScalarGridSpec(
            num_scalar_prefetch=0,
            grid=(Tp // TC,),
            in_specs=in_specs,
            out_specs=pl.BlockSpec((TC, Bp, Hp), lambda t: (t, 0, 0)),
            scratch_shapes=[
                pltpu.VMEM((L, Bp, Hp), jnp.float32),     # hidden state carry
                pltpu.VMEM((L, Bp, Hp), jnp.float32),     # cell state carry
            ],
        ),
        compiler_params=pltpu.CompilerParams(
            dimension_semantics=("arbitrary",),           # sequential over time
        ),
    )(*args)

    # Vocab projection hoisted out of the recurrence: one large GEMM.
    out2d = linear_projection(hid_tm.reshape(Tp * Bp, Hp),
                              params["w_out"], params["b_out"])
    out_tm = out2d.reshape(Tp, Bp, V)
    return jnp.transpose(out_tm[:T, :B, :], (1, 0, 2))    # (B, T, V)


# ---------------------------------------------------------------------------
# Pure-JAX reference mirroring torch.nn.Embedding + LSTM + Linear semantics.
# ---------------------------------------------------------------------------
def decoder_reference(raw, inputs, hidden_states, cell_states):
    emb_w = raw["embedding"]
    x_seq = jnp.take(emb_w, inputs, axis=0)               # (B, T, E)
    for l, (w_ih, w_hh, b_ih, b_hh) in enumerate(raw["lstm"]):
        H = w_hh.shape[1]
        h, c = hidden_states[l], cell_states[l]
        outs = []
        for t in range(x_seq.shape[1]):
            gates = x_seq[:, t] @ w_ih.T + h @ w_hh.T + b_ih + b_hh
            i_g = jax.nn.sigmoid(gates[:, 0:H])
            f_g = jax.nn.sigmoid(gates[:, H:2 * H])
            g_g = jnp.tanh(gates[:, 2 * H:3 * H])
            o_g = jax.nn.sigmoid(gates[:, 3 * H:4 * H])
            c = f_g * c + i_g * g_g
            h = o_g * jnp.tanh(c)
            outs.append(h)
        x_seq = jnp.stack(outs, axis=1)
    w_out, b_out = raw["linear"]
    return x_seq @ w_out.T + b_out                        # (B, T, V)


def init_raw_params(key, n_layers, output_dim, embedding_dim, hidden_dim):
    keys = jax.random.split(key, 3 + 4 * n_layers)
    it = iter(keys)
    raw = {"embedding": jax.random.normal(
        next(it), (output_dim, embedding_dim), jnp.float32) * 0.1}
    lstm = []
    for l in range(n_layers):
        in_dim = embedding_dim if l == 0 else hidden_dim
        w_ih = jax.random.normal(next(it), (4 * hidden_dim, in_dim),
                                 jnp.float32) * 0.1
        w_hh = jax.random.normal(next(it), (4 * hidden_dim, hidden_dim),
                                 jnp.float32) * 0.1
        b_ih = jax.random.normal(next(it), (4 * hidden_dim,), jnp.float32) * 0.1
        b_hh = jax.random.normal(next(it), (4 * hidden_dim,), jnp.float32) * 0.1
        lstm.append((w_ih, w_hh, b_ih, b_hh))
    raw["lstm"] = lstm
    w_out = jax.random.normal(next(it), (output_dim, hidden_dim),
                              jnp.float32) * 0.1
    b_out = jax.random.normal(next(it), (output_dim,), jnp.float32) * 0.1
    raw["linear"] = (w_out, b_out)
    return raw


if __name__ == "__main__":
    n_layers = 2
    output_dim = 16        # vocab size == linear out features (as in the module)
    embedding_dim = 32
    hidden_dim = 32
    B, T = 2, 8

    key = jax.random.PRNGKey(0)
    k_params, k_inp, k_h, k_c = jax.random.split(key, 4)

    raw = init_raw_params(k_params, n_layers, output_dim, embedding_dim,
                          hidden_dim)
    inputs = jax.random.randint(k_inp, (B, T), 0, output_dim, dtype=jnp.int32)
    hidden_states = jax.random.normal(k_h, (n_layers, B, hidden_dim),
                                      jnp.float32)
    cell_states = jax.random.normal(k_c, (n_layers, B, hidden_dim),
                                    jnp.float32)

    ref = decoder_reference(raw, inputs, hidden_states, cell_states)

    # f32 weights: matches PyTorch f32 semantics tightly.
    params_f32 = prepare_params(raw, hidden_dim, param_dtype=jnp.float32)
    out = decoder_forward(params_f32, inputs, hidden_states, cell_states,
                          t_chunk=4)
    out = jax.block_until_ready(out)
    assert out.shape == (B, T, output_dim)
    assert out.dtype == jnp.float32
    assert jnp.allclose(out, ref, rtol=1e-3, atol=1e-4), "f32 mismatch vs ref"

    # bf16 weights (MXU-native fast path): f32 state/accumulation retained.
    params_bf16 = prepare_params(raw, hidden_dim, param_dtype=jnp.bfloat16)
    out_bf16 = jax.block_until_ready(
        decoder_forward(params_bf16, inputs, hidden_states, cell_states,
                        t_chunk=4))
    assert bool(jnp.isfinite(out_bf16).all())
    assert jnp.allclose(out_bf16, ref, rtol=1e-1, atol=1e-1), "bf16 sanity"

    # TODO(synk): dropout branch is inactive by default (dropout_ratio=None);
    # not implemented in the kernel.
    print("KERNEL_OK")
</pallas_src>

<mosaic_0001>
module attributes {stable_mosaic.version = 11 : i64} {
  func.func @kernel(%arg0: i32, %arg1: memref<4x8x128xf32, #tpu.memory_space<vmem>>, %arg2: memref<2x8x128xf32, #tpu.memory_space<vmem>>, %arg3: memref<2x8x128xf32, #tpu.memory_space<vmem>>, %arg4: memref<256x512xf32, #tpu.memory_space<vmem>>, %arg5: memref<1x256x512xf32, #tpu.memory_space<vmem>>, %arg6: memref<2x1x512xf32, #tpu.memory_space<vmem>>, %arg7: memref<4x8x128xf32, #tpu.memory_space<vmem>>, %arg8: memref<2x8x128xf32, #tpu.memory_space<vmem>>, %arg9: memref<2x8x128xf32, #tpu.memory_space<vmem>>) attributes {dimension_semantics = [#tpu.dimension_semantics<arbitrary>], iteration_bounds = array<i64: 2>, scalar_prefetch = 0 : i64, scratch_operands = 2 : i64, tpu.core_type = #tpu.core_type<tc>, window_params = [{transform_indices = @transform_0, window_bounds = array<i64: 4, 8, 128>}, {pipeline_mode = #tpu.pipeline_mode<synchronous>, transform_indices = @transform_1, window_bounds = array<i64: 2, 8, 128>}, {pipeline_mode = #tpu.pipeline_mode<synchronous>, transform_indices = @transform_2, window_bounds = array<i64: 2, 8, 128>}, {pipeline_mode = #tpu.pipeline_mode<synchronous>, transform_indices = @transform_3, window_bounds = array<i64: 256, 512>}, {pipeline_mode = #tpu.pipeline_mode<synchronous>, transform_indices = @transform_4, window_bounds = array<i64: 1, 256, 512>}, {pipeline_mode = #tpu.pipeline_mode<synchronous>, transform_indices = @transform_5, window_bounds = array<i64: 2, 1, 512>}, {transform_indices = @transform_6, window_bounds = array<i64: 4, 8, 128>}]} {
    %c0_i32 = arith.constant 0 : i32
    %0 = arith.cmpi eq, %arg0, %c0_i32 : i32
    %1 = arith.extui %0 : i1 to i32
    %c0_i32_0 = arith.constant 0 : i32
    %2 = arith.cmpi ne, %1, %c0_i32_0 : i32
    scf.if %2 {
      %c0_177 = arith.constant 0 : index
      %c0_178 = arith.constant 0 : index
      %c0_179 = arith.constant 0 : index
      %354 = vector.load %arg2[%c0_177, %c0_178, %c0_179] : memref<2x8x128xf32, #tpu.memory_space<vmem>>, vector<2x8x128xf32>
      %c0_180 = arith.constant 0 : index
      %c0_181 = arith.constant 0 : index
      %c0_182 = arith.constant 0 : index
      %355 = vector.load %arg8[%c0_180, %c0_181, %c0_182] : memref<2x8x128xf32, #tpu.memory_space<vmem>>, vector<2x8x128xf32>
      tpu.vector_store %arg8[%c0_180, %c0_181, %c0_182], %354 {strides = array<i32>} : memref<2x8x128xf32, #tpu.memory_space<vmem>>, vector<2x8x128xf32>,
      %c0_183 = arith.constant 0 : index
      %c0_184 = arith.constant 0 : index
      %c0_185 = arith.constant 0 : index
      %356 = vector.load %arg3[%c0_183, %c0_184, %c0_185] : memref<2x8x128xf32, #tpu.memory_space<vmem>>, vector<2x8x128xf32>
      %c0_186 = arith.constant 0 : index
      %c0_187 = arith.constant 0 : index
      %c0_188 = arith.constant 0 : index
      %357 = vector.load %arg9[%c0_186, %c0_187, %c0_188] : memref<2x8x128xf32, #tpu.memory_space<vmem>>, vector<2x8x128xf32>
      tpu.vector_store %arg9[%c0_186, %c0_187, %c0_188], %356 {strides = array<i32>} : memref<2x8x128xf32, #tpu.memory_space<vmem>>, vector<2x8x128xf32>,
    } else {
    }
    %c0 = arith.constant 0 : index
    %c0_1 = arith.constant 0 : index
    %3 = vector.load %arg4[%c0, %c0_1] : memref<256x512xf32, #tpu.memory_space<vmem>>, vector<256x512xf32>
    %c0_2 = arith.constant 0 : index
    %c0_3 = arith.constant 0 : index
    %c0_4 = arith.constant 0 : index
    %4 = vector.load %arg5[%c0_2, %c0_3, %c0_4] : memref<1x256x512xf32, #tpu.memory_space<vmem>>, vector<1x256x512xf32>
    %5 = vector.shape_cast %4 : vector<1x256x512xf32> to vector<256x512xf32>
    %c0_5 = arith.constant 0 : index
    %c0_6 = arith.constant 0 : index
    %c0_7 = arith.constant 0 : index
    %6 = vector.load %arg1[%c0_5, %c0_6, %c0_7] : memref<4x8x128xf32, #tpu.memory_space<vmem>>, vector<1x8x128xf32>
    %7 = vector.shape_cast %6 : vector<1x8x128xf32> to vector<8x128xf32>
    %c0_8 = arith.constant 0 : index
    %c0_9 = arith.constant 0 : index
    %c0_10 = arith.constant 0 : index
    %8 = vector.load %arg8[%c0_8, %c0_9, %c0_10] : memref<2x8x128xf32, #tpu.memory_space<vmem>>, vector<1x8x128xf32>
    %9 = vector.shape_cast %8 : vector<1x8x128xf32> to vector<8x128xf32>
    %10 = tpu.concatenate %7, %9 in 1 : vector<8x128xf32>, vector<8x128xf32> -> vector<8x256xf32>
    %cst = arith.constant dense<0.000000e+00> : vector<8x512xf32>
    %11 = tpu.matmul %10, %3, %cst {dimension_numbers = #tpu.dot_dimension_numbers<[1], [0], [0], [1], [0, 0, 1, 1], [], []>} : vector<8x256xf32>, vector<256x512xf32>, vector<8x512xf32> -> vector<8x512xf32>
    %c0_11 = arith.constant 0 : index
    %c0_12 = arith.constant 0 : index
    %c0_13 = arith.constant 0 : index
    %12 = vector.load %arg6[%c0_11, %c0_12, %c0_13] : memref<2x1x512xf32, #tpu.memory_space<vmem>>, vector<1x1x512xf32>
    %13 = vector.shape_cast %12 : vector<1x1x512xf32> to vector<1x512xf32>
    %14 = vector.broadcast %13 : vector<1x512xf32> to vector<8x512xf32>
    %15 = arith.addf %11, %14 : vector<8x512xf32>
    %16 = vector.extract_strided_slice %15 {offsets = [0, 0], sizes = [8, 128], strides = [1, 1]} : vector<8x512xf32> to vector<8x128xf32>
    %17 = arith.negf %16 : vector<8x128xf32>
    %18 = math.exp %17 : vector<8x128xf32>
    %cst_14 = arith.constant 1.000000e+00 : f32
    %19 = vector.broadcast %cst_14 : f32 to vector<8x128xf32>
    %20 = arith.addf %19, %18 : vector<8x128xf32>
    %21 = arith.divf %19, %20 : vector<8x128xf32>
    %22 = vector.extract_strided_slice %15 {offsets = [0, 128], sizes = [8, 128], strides = [1, 1]} : vector<8x512xf32> to vector<8x128xf32>
    %23 = arith.negf %22 : vector<8x128xf32>
    %24 = math.exp %23 : vector<8x128xf32>
    %cst_15 = arith.constant 1.000000e+00 : f32
    %25 = vector.broadcast %cst_15 : f32 to vector<8x128xf32>
    %26 = arith.addf %25, %24 : vector<8x128xf32>
    %27 = arith.divf %25, %26 : vector<8x128xf32>
    %28 = vector.extract_strided_slice %15 {offsets = [0, 256], sizes = [8, 128], strides = [1, 1]} : vector<8x512xf32> to vector<8x128xf32>
    %29 = math.tanh %28 : vector<8x128xf32>
    %30 = vector.extract_strided_slice %15 {offsets = [0, 384], sizes = [8, 128], strides = [1, 1]} : vector<8x512xf32> to vector<8x128xf32>
    %31 = arith.negf %30 : vector<8x128xf32>
    %32 = math.exp %31 : vector<8x128xf32>
    %cst_16 = arith.constant 1.000000e+00 : f32
    %33 = vector.broadcast %cst_16 : f32 to vector<8x128xf32>
    %34 = arith.addf %33, %32 : vector<8x128xf32>
    %35 = arith.divf %33, %34 : vector<8x128xf32>
    %c0_17 = arith.constant 0 : index
    %c0_18 = arith.constant 0 : index
    %c0_19 = arith.constant 0 : index
    %36 = vector.load %arg9[%c0_17, %c0_18, %c0_19] : memref<2x8x128xf32, #tpu.memory_space<vmem>>, vector<1x8x128xf32>
    %37 = vector.shape_cast %36 : vector<1x8x128xf32> to vector<8x128xf32>
    %38 = arith.mulf %27, %37 : vector<8x128xf32>
    %39 = arith.mulf %21, %29 : vector<8x128xf32>
    %40 = arith.addf %38, %39 : vector<8x128xf32>
    %41 = math.tanh %40 : vector<8x128xf32>
    %42 = arith.mulf %35, %41 : vector<8x128xf32>
    %c0_20 = arith.constant 0 : index
    %c0_21 = arith.constant 0 : index
    %c0_22 = arith.constant 0 : index
    %43 = vector.load %arg8[%c0_20, %c0_21, %c0_22] : memref<2x8x128xf32, #tpu.memory_space<vmem>>, vector<1x8x128xf32>
    %44 = vector.shape_cast %43 : vector<1x8x128xf32> to vector<8x128xf32>
    %45 = vector.shape_cast %42 : vector<8x128xf32> to vector<1x8x128xf32>
    tpu.vector_store %arg8[%c0_20, %c0_21, %c0_22], %45 {strides = array<i32>} : memref<2x8x128xf32, #tpu.memory_space<vmem>>, vector<1x8x128xf32>,
    %c0_23 = arith.constant 0 : index
    %c0_24 = arith.constant 0 : index
    %c0_25 = arith.constant 0 : index
    %46 = vector.load %arg9[%c0_23, %c0_24, %c0_25] : memref<2x8x128xf32, #tpu.memory_space<vmem>>, vector<1x8x128xf32>
    %47 = vector.shape_cast %46 : vector<1x8x128xf32> to vector<8x128xf32>
    %48 = vector.shape_cast %40 : vector<8x128xf32> to vector<1x8x128xf32>
    tpu.vector_store %arg9[%c0_23, %c0_24, %c0_25], %48 {strides = array<i32>} : memref<2x8x128xf32, #tpu.memory_space<vmem>>, vector<1x8x128xf32>,
    %c1 = arith.constant 1 : index
    %c0_26 = arith.constant 0 : index
    %c0_27 = arith.constant 0 : index
    %49 = vector.load %arg8[%c1, %c0_26, %c0_27] : memref<2x8x128xf32, #tpu.memory_space<vmem>>, vector<1x8x128xf32>
    %50 = vector.shape_cast %49 : vector<1x8x128xf32> to vector<8x128xf32>
    %51 = tpu.concatenate %42, %50 in 1 : vector<8x128xf32>, vector<8x128xf32> -> vector<8x256xf32>
    %cst_28 = arith.constant dense<0.000000e+00> : vector<8x512xf32>
    %52 = tpu.matmul %51, %5, %cst_28 {dimension_numbers = #tpu.dot_dimension_numbers<[1], [0], [0], [1], [0, 0, 1, 1], [], []>} : vector<8x256xf32>, vector<256x512xf32>, vector<8x512xf32> -> vector<8x512xf32>
    %c1_29 = arith.constant 1 : index
    %c0_30 = arith.constant 0 : index
    %c0_31 = arith.constant 0 : index
    %53 = vector.load %arg6[%c1_29, %c0_30, %c0_31] : memref<2x1x512xf32, #tpu.memory_space<vmem>>, vector<1x1x512xf32>
    %54 = vector.shape_cast %53 : vector<1x1x512xf32> to vector<1x512xf32>
    %55 = vector.broadcast %54 : vector<1x512xf32> to vector<8x512xf32>
    %56 = arith.addf %52, %55 : vector<8x512xf32>
    %57 = vector.extract_strided_slice %56 {offsets = [0, 0], sizes = [8, 128], strides = [1, 1]} : vector<8x512xf32> to vector<8x128xf32>
    %58 = arith.negf %57 : vector<8x128xf32>
    %59 = math.exp %58 : vector<8x128xf32>
    %cst_32 = arith.constant 1.000000e+00 : f32
    %60 = vector.broadcast %cst_32 : f32 to vector<8x128xf32>
    %61 = arith.addf %60, %59 : vector<8x128xf32>
    %62 = arith.divf %60, %61 : vector<8x128xf32>
    %63 = vector.extract_strided_slice %56 {offsets = [0, 128], sizes = [8, 128], strides = [1, 1]} : vector<8x512xf32> to vector<8x128xf32>
    %64 = arith.negf %63 : vector<8x128xf32>
    %65 = math.exp %64 : vector<8x128xf32>
    %cst_33 = arith.constant 1.000000e+00 : f32
    %66 = vector.broadcast %cst_33 : f32 to vector<8x128xf32>
    %67 = arith.addf %66, %65 : vector<8x128xf32>
    %68 = arith.divf %66, %67 : vector<8x128xf32>
    %69 = vector.extract_strided_slice %56 {offsets = [0, 256], sizes = [8, 128], strides = [1, 1]} : vector<8x512xf32> to vector<8x128xf32>
    %70 = math.tanh %69 : vector<8x128xf32>
    %71 = vector.extract_strided_slice %56 {offsets = [0, 384], sizes = [8, 128], strides = [1, 1]} : vector<8x512xf32> to vector<8x128xf32>
    %72 = arith.negf %71 : vector<8x128xf32>
    %73 = math.exp %72 : vector<8x128xf32>
    %cst_34 = arith.constant 1.000000e+00 : f32
    %74 = vector.broadcast %cst_34 : f32 to vector<8x128xf32>
    %75 = arith.addf %74, %73 : vector<8x128xf32>
    %76 = arith.divf %74, %75 : vector<8x128xf32>
    %c1_35 = arith.constant 1 : index
    %c0_36 = arith.constant 0 : index
    %c0_37 = arith.constant 0 : index
    %77 = vector.load %arg9[%c1_35, %c0_36, %c0_37] : memref<2x8x128xf32, #tpu.memory_space<vmem>>, vector<1x8x128xf32>
    %78 = vector.shape_cast %77 : vector<1x8x128xf32> to vector<8x128xf32>
    %79 = arith.mulf %68, %78 : vector<8x128xf32>
    %80 = arith.mulf %62, %70 : vector<8x128xf32>
    %81 = arith.addf %79, %80 : vector<8x128xf32>
    %82 = math.tanh %81 : vector<8x128xf32>
    %83 = arith.mulf %76, %82 : vector<8x128xf32>
    %c1_38 = arith.constant 1 : index
    %c0_39 = arith.constant 0 : index
    %c0_40 = arith.constant 0 : index
    %84 = vector.load %arg8[%c1_38, %c0_39, %c0_40] : memref<2x8x128xf32, #tpu.memory_space<vmem>>, vector<1x8x128xf32>
    %85 = vector.shape_cast %84 : vector<1x8x128xf32> to vector<8x128xf32>
    %86 = vector.shape_cast %83 : vector<8x128xf32> to vector<1x8x128xf32>
    tpu.vector_store %arg8[%c1_38, %c0_39, %c0_40], %86 {strides = array<i32>} : memref<2x8x128xf32, #tpu.memory_space<vmem>>, vector<1x8x128xf32>,
    %c1_41 = arith.constant 1 : index
    %c0_42 = arith.constant 0 : index
    %c0_43 = arith.constant 0 : index
    %87 = vector.load %arg9[%c1_41, %c0_42, %c0_43] : memref<2x8x128xf32, #tpu.memory_space<vmem>>, vector<1x8x128xf32>
    %88 = vector.shape_cast %87 : vector<1x8x128xf32> to vector<8x128xf32>
    %89 = vector.shape_cast %81 : vector<8x128xf32> to vector<1x8x128xf32>
    tpu.vector_store %arg9[%c1_41, %c0_42, %c0_43], %89 {strides = array<i32>} : memref<2x8x128xf32, #tpu.memory_space<vmem>>, vector<1x8x128xf32>,
    %c0_44 = arith.constant 0 : index
    %c0_45 = arith.constant 0 : index
    %c0_46 = arith.constant 0 : index
    %90 = vector.load %arg7[%c0_44, %c0_45, %c0_46] : memref<4x8x128xf32, #tpu.memory_space<vmem>>, vector<1x8x128xf32>
    %91 = vector.shape_cast %90 : vector<1x8x128xf32> to vector<8x128xf32>
    %92 = vector.shape_cast %83 : vector<8x128xf32> to vector<1x8x128xf32>
    tpu.vector_store %arg7[%c0_44, %c0_45, %c0_46], %92 {strides = array<i32>} : memref<4x8x128xf32, #tpu.memory_space<vmem>>, vector<1x8x128xf32>,
    %c1_47 = arith.constant 1 : index
    %c0_48 = arith.constant 0 : index
    %c0_49 = arith.constant 0 : index
    %93 = vector.load %arg1[%c1_47, %c0_48, %c0_49] : memref<4x8x128xf32, #tpu.memory_space<vmem>>, vector<1x8x128xf32>
    %94 = vector.shape_cast %93 : vector<1x8x128xf32> to vector<8x128xf32>
    %c0_50 = arith.constant 0 : index
    %c0_51 = arith.constant 0 : index
    %c0_52 = arith.constant 0 : index
    %95 = vector.load %arg8[%c0_50, %c0_51, %c0_52] : memref<2x8x128xf32, #tpu.memory_space<vmem>>, vector<1x8x128xf32>
    %96 = vector.shape_cast %95 : vector<1x8x128xf32> to vector<8x128xf32>
    %97 = tpu.concatenate %94, %96 in 1 : vector<8x128xf32>, vector<8x128xf32> -> vector<8x256xf32>
    %cst_53 = arith.constant dense<0.000000e+00> : vector<8x512xf32>
    %98 = tpu.matmul %97, %3, %cst_53 {dimension_numbers = #tpu.dot_dimension_numbers<[1], [0], [0], [1], [0, 0, 1, 1], [], []>} : vector<8x256xf32>, vector<256x512xf32>, vector<8x512xf32> -> vector<8x512xf32>
    %c0_54 = arith.constant 0 : index
    %c0_55 = arith.constant 0 : index
    %c0_56 = arith.constant 0 : index
    %99 = vector.load %arg6[%c0_54, %c0_55, %c0_56] : memref<2x1x512xf32, #tpu.memory_space<vmem>>, vector<1x1x512xf32>
    %100 = vector.shape_cast %99 : vector<1x1x512xf32> to vector<1x512xf32>
    %101 = vector.broadcast %100 : vector<1x512xf32> to vector<8x512xf32>
    %102 = arith.addf %98, %101 : vector<8x512xf32>
    %103 = vector.extract_strided_slice %102 {offsets = [0, 0], sizes = [8, 128], strides = [1, 1]} : vector<8x512xf32> to vector<8x128xf32>
    %104 = arith.negf %103 : vector<8x128xf32>
    %105 = math.exp %104 : vector<8x128xf32>
    %cst_57 = arith.constant 1.000000e+00 : f32
    %106 = vector.broadcast %cst_57 : f32 to vector<8x128xf32>
    %107 = arith.addf %106, %105 : vector<8x128xf32>
    %108 = arith.divf %106, %107 : vector<8x128xf32>
    %109 = vector.extract_strided_slice %102 {offsets = [0, 128], sizes = [8, 128], strides = [1, 1]} : vector<8x512xf32> to vector<8x128xf32>
    %110 = arith.negf %109 : vector<8x128xf32>
    %111 = math.exp %110 : vector<8x128xf32>
    %cst_58 = arith.constant 1.000000e+00 : f32
    %112 = vector.broadcast %cst_58 : f32 to vector<8x128xf32>
    %113 = arith.addf %112, %111 : vector<8x128xf32>
    %114 = arith.divf %112, %113 : vector<8x128xf32>
    %115 = vector.extract_strided_slice %102 {offsets = [0, 256], sizes = [8, 128], strides = [1, 1]} : vector<8x512xf32> to vector<8x128xf32>
    %116 = math.tanh %115 : vector<8x128xf32>
    %117 = vector.extract_strided_slice %102 {offsets = [0, 384], sizes = [8, 128], strides = [1, 1]} : vector<8x512xf32> to vector<8x128xf32>
    %118 = arith.negf %117 : vector<8x128xf32>
    %119 = math.exp %118 : vector<8x128xf32>
    %cst_59 = arith.constant 1.000000e+00 : f32
    %120 = vector.broadcast %cst_59 : f32 to vector<8x128xf32>
    %121 = arith.addf %120, %119 : vector<8x128xf32>
    %122 = arith.divf %120, %121 : vector<8x128xf32>
    %c0_60 = arith.constant 0 : index
    %c0_61 = arith.constant 0 : index
    %c0_62 = arith.constant 0 : index
    %123 = vector.load %arg9[%c0_60, %c0_61, %c0_62] : memref<2x8x128xf32, #tpu.memory_space<vmem>>, vector<1x8x128xf32>
    %124 = vector.shape_cast %123 : vector<1x8x128xf32> to vector<8x128xf32>
    %125 = arith.mulf %114, %124 : vector<8x128xf32>
    %126 = arith.mulf %108, %116 : vector<8x128xf32>
    %127 = arith.addf %125, %126 : vector<8x128xf32>
    %128 = math.tanh %127 : vector<8x128xf32>
    %129 = arith.mulf %122, %128 : vector<8x128xf32>
    %c0_63 = arith.constant 0 : index
    %c0_64 = arith.constant 0 : index
    %c0_65 = arith.constant 0 : index
    %130 = vector.load %arg8[%c0_63, %c0_64, %c0_65] : memref<2x8x128xf32, #tpu.memory_space<vmem>>, vector<1x8x128xf32>
    %131 = vector.shape_cast %130 : vector<1x8x128xf32> to vector<8x128xf32>
    %132 = vector.shape_cast %129 : vector<8x128xf32> to vector<1x8x128xf32>
    tpu.vector_store %arg8[%c0_63, %c0_64, %c0_65], %132 {strides = array<i32>} : memref<2x8x128xf32, #tpu.memory_space<vmem>>, vector<1x8x128xf32>,
    %c0_66 = arith.constant 0 : index
    %c0_67 = arith.constant 0 : index
    %c0_68 = arith.constant 0 : index
    %133 = vector.load %arg9[%c0_66, %c0_67, %c0_68] : memref<2x8x128xf32, #tpu.memory_space<vmem>>, vector<1x8x128xf32>
    %134 = vector.shape_cast %133 : vector<1x8x128xf32> to vector<8x128xf32>
    %135 = vector.shape_cast %127 : vector<8x128xf32> to vector<1x8x128xf32>
    tpu.vector_store %arg9[%c0_66, %c0_67, %c0_68], %135 {strides = array<i32>} : memref<2x8x128xf32, #tpu.memory_space<vmem>>, vector<1x8x128xf32>,
    %c1_69 = arith.constant 1 : index
    %c0_70 = arith.constant 0 : index
    %c0_71 = arith.constant 0 : index
    %136 = vector.load %arg8[%c1_69, %c0_70, %c0_71] : memref<2x8x128xf32, #tpu.memory_space<vmem>>, vector<1x8x128xf32>
    %137 = vector.shape_cast %136 : vector<1x8x128xf32> to vector<8x128xf32>
    %138 = tpu.concatenate %129, %137 in 1 : vector<8x128xf32>, vector<8x128xf32> -> vector<8x256xf32>
    %cst_72 = arith.constant dense<0.000000e+00> : vector<8x512xf32>
    %139 = tpu.matmul %138, %5, %cst_72 {dimension_numbers = #tpu.dot_dimension_numbers<[1], [0], [0], [1], [0, 0, 1, 1], [], []>} : vector<8x256xf32>, vector<256x512xf32>, vector<8x512xf32> -> vector<8x512xf32>
    %c1_73 = arith.constant 1 : index
    %c0_74 = arith.constant 0 : index
    %c0_75 = arith.constant 0 : index
    %140 = vector.load %arg6[%c1_73, %c0_74, %c0_75] : memref<2x1x512xf32, #tpu.memory_space<vmem>>, vector<1x1x512xf32>
    %141 = vector.shape_cast %140 : vector<1x1x512xf32> to vector<1x512xf32>
    %142 = vector.broadcast %141 : vector<1x512xf32> to vector<8x512xf32>
    %143 = arith.addf %139, %142 : vector<8x512xf32>
    %144 = vector.extract_strided_slice %143 {offsets = [0, 0], sizes = [8, 128], strides = [1, 1]} : vector<8x512xf32> to vector<8x128xf32>
    %145 = arith.negf %144 : vector<8x128xf32>
    %146 = math.exp %145 : vector<8x128xf32>
    %cst_76 = arith.constant 1.000000e+00 : f32
    %147 = vector.broadcast %cst_76 : f32 to vector<8x128xf32>
    %148 = arith.addf %147, %146 : vector<8x128xf32>
    %149 = arith.divf %147, %148 : vector<8x128xf32>
    %150 = vector.extract_strided_slice %143 {offsets = [0, 128], sizes = [8, 128], strides = [1, 1]} : vector<8x512xf32> to vector<8x128xf32>
    %151 = arith.negf %150 : vector<8x128xf32>
    %152 = math.exp %151 : vector<8x128xf32>
    %cst_77 = arith.constant 1.000000e+00 : f32
    %153 = vector.broadcast %cst_77 : f32 to vector<8x128xf32>
    %154 = arith.addf %153, %152 : vector<8x128xf32>
    %155 = arith.divf %153, %154 : vector<8x128xf32>
    %156 = vector.extract_strided_slice %143 {offsets = [0, 256], sizes = [8, 128], strides = [1, 1]} : vector<8x512xf32> to vector<8x128xf32>
    %157 = math.tanh %156 : vector<8x128xf32>
    %158 = vector.extract_strided_slice %143 {offsets = [0, 384], sizes = [8, 128], strides = [1, 1]} : vector<8x512xf32> to vector<8x128xf32>
    %159 = arith.negf %158 : vector<8x128xf32>
    %160 = math.exp %159 : vector<8x128xf32>
    %cst_78 = arith.constant 1.000000e+00 : f32
    %161 = vector.broadcast %cst_78 : f32 to vector<8x128xf32>
    %162 = arith.addf %161, %160 : vector<8x128xf32>
    %163 = arith.divf %161, %162 : vector<8x128xf32>
    %c1_79 = arith.constant 1 : index
    %c0_80 = arith.constant 0 : index
    %c0_81 = arith.constant 0 : index
    %164 = vector.load %arg9[%c1_79, %c0_80, %c0_81] : memref<2x8x128xf32, #tpu.memory_space<vmem>>, vector<1x8x128xf32>
    %165 = vector.shape_cast %164 : vector<1x8x128xf32> to vector<8x128xf32>
    %166 = arith.mulf %155, %165 : vector<8x128xf32>
    %167 = arith.mulf %149, %157 : vector<8x128xf32>
    %168 = arith.addf %166, %167 : vector<8x128xf32>
    %169 = math.tanh %168 : vector<8x128xf32>
    %170 = arith.mulf %163, %169 : vector<8x128xf32>
    %c1_82 = arith.constant 1 : index
    %c0_83 = arith.constant 0 : index
    %c0_84 = arith.constant 0 : index
    %171 = vector.load %arg8[%c1_82, %c0_83, %c0_84] : memref<2x8x128xf32, #tpu.memory_space<vmem>>, vector<1x8x128xf32>
    %172 = vector.shape_cast %171 : vector<1x8x128xf32> to vector<8x128xf32>
    %173 = vector.shape_cast %170 : vector<8x128xf32> to vector<1x8x128xf32>
    tpu.vector_store %arg8[%c1_82, %c0_83, %c0_84], %173 {strides = array<i32>} : memref<2x8x128xf32, #tpu.memory_space<vmem>>, vector<1x8x128xf32>,
    %c1_85 = arith.constant 1 : index
    %c0_86 = arith.constant 0 : index
    %c0_87 = arith.constant 0 : index
    %174 = vector.load %arg9[%c1_85, %c0_86, %c0_87] : memref<2x8x128xf32, #tpu.memory_space<vmem>>, vector<1x8x128xf32>
    %175 = vector.shape_cast %174 : vector<1x8x128xf32> to vector<8x128xf32>
    %176 = vector.shape_cast %168 : vector<8x128xf32> to vector<1x8x128xf32>
    tpu.vector_store %arg9[%c1_85, %c0_86, %c0_87], %176 {strides = array<i32>} : memref<2x8x128xf32, #tpu.memory_space<vmem>>, vector<1x8x128xf32>,
    %c1_88 = arith.constant 1 : index
    %c0_89 = arith.constant 0 : index
    %c0_90 = arith.constant 0 : index
    %177 = vector.load %arg7[%c1_88, %c0_89, %c0_90] : memref<4x8x128xf32, #tpu.memory_space<vmem>>, vector<1x8x128xf32>
    %178 = vector.shape_cast %177 : vector<1x8x128xf32> to vector<8x128xf32>
    %179 = vector.shape_cast %170 : vector<8x128xf32> to vector<1x8x128xf32>
    tpu.vector_store %arg7[%c1_88, %c0_89, %c0_90], %179 {strides = array<i32>} : memref<4x8x128xf32, #tpu.memory_space<vmem>>, vector<1x8x128xf32>,
    %c2 = arith.constant 2 : index
    %c0_91 = arith.constant 0 : index
    %c0_92 = arith.constant 0 : index
    %180 = vector.load %arg1[%c2, %c0_91, %c0_92] : memref<4x8x128xf32, #tpu.memory_space<vmem>>, vector<1x8x128xf32>
    %181 = vector.shape_cast %180 : vector<1x8x128xf32> to vector<8x128xf32>
    %c0_93 = arith.constant 0 : index
    %c0_94 = arith.constant 0 : index
    %c0_95 = arith.constant 0 : index
    %182 = vector.load %arg8[%c0_93, %c0_94, %c0_95] : memref<2x8x128xf32, #tpu.memory_space<vmem>>, vector<1x8x128xf32>
    %183 = vector.shape_cast %182 : vector<1x8x128xf32> to vector<8x128xf32>
    %184 = tpu.concatenate %181, %183 in 1 : vector<8x128xf32>, vector<8x128xf32> -> vector<8x256xf32>
    %cst_96 = arith.constant dense<0.000000e+00> : vector<8x512xf32>
    %185 = tpu.matmul %184, %3, %cst_96 {dimension_numbers = #tpu.dot_dimension_numbers<[1], [0], [0], [1], [0, 0, 1, 1], [], []>} : vector<8x256xf32>, vector<256x512xf32>, vector<8x512xf32> -> vector<8x512xf32>
    %c0_97 = arith.constant 0 : index
    %c0_98 = arith.constant 0 : index
    %c0_99 = arith.constant 0 : index
    %186 = vector.load %arg6[%c0_97, %c0_98, %c0_99] : memref<2x1x512xf32, #tpu.memory_space<vmem>>, vector<1x1x512xf32>
    %187 = vector.shape_cast %186 : vector<1x1x512xf32> to vector<1x512xf32>
    %188 = vector.broadcast %187 : vector<1x512xf32> to vector<8x512xf32>
    %189 = arith.addf %185, %188 : vector<8x512xf32>
    %190 = vector.extract_strided_slice %189 {offsets = [0, 0], sizes = [8, 128], strides = [1, 1]} : vector<8x512xf32> to vector<8x128xf32>
    %191 = arith.negf %190 : vector<8x128xf32>
    %192 = math.exp %191 : vector<8x128xf32>
    %cst_100 = arith.constant 1.000000e+00 : f32
    %193 = vector.broadcast %cst_100 : f32 to vector<8x128xf32>
    %194 = arith.addf %193, %192 : vector<8x128xf32>
    %195 = arith.divf %193, %194 : vector<8x128xf32>
    %196 = vector.extract_strided_slice %189 {offsets = [0, 128], sizes = [8, 128], strides = [1, 1]} : vector<8x512xf32> to vector<8x128xf32>
    %197 = arith.negf %196 : vector<8x128xf32>
    %198 = math.exp %197 : vector<8x128xf32>
    %cst_101 = arith.constant 1.000000e+00 : f32
    %199 = vector.broadcast %cst_101 : f32 to vector<8x128xf32>
    %200 = arith.addf %199, %198 : vector<8x128xf32>
    %201 = arith.divf %199, %200 : vector<8x128xf32>
    %202 = vector.extract_strided_slice %189 {offsets = [0, 256], sizes = [8, 128], strides = [1, 1]} : vector<8x512xf32> to vector<8x128xf32>
    %203 = math.tanh %202 : vector<8x128xf32>
    %204 = vector.extract_strided_slice %189 {offsets = [0, 384], sizes = [8, 128], strides = [1, 1]} : vector<8x512xf32> to vector<8x128xf32>
    %205 = arith.negf %204 : vector<8x128xf32>
    %206 = math.exp %205 : vector<8x128xf32>
    %cst_102 = arith.constant 1.000000e+00 : f32
    %207 = vector.broadcast %cst_102 : f32 to vector<8x128xf32>
    %208 = arith.addf %207, %206 : vector<8x128xf32>
    %209 = arith.divf %207, %208 : vector<8x128xf32>
    %c0_103 = arith.constant 0 : index
    %c0_104 = arith.constant 0 : index
    %c0_105 = arith.constant 0 : index
    %210 = vector.load %arg9[%c0_103, %c0_104, %c0_105] : memref<2x8x128xf32, #tpu.memory_space<vmem>>, vector<1x8x128xf32>
    %211 = vector.shape_cast %210 : vector<1x8x128xf32> to vector<8x128xf32>
    %212 = arith.mulf %201, %211 : vector<8x128xf32>
    %213 = arith.mulf %195, %203 : vector<8x128xf32>
    %214 = arith.addf %212, %213 : vector<8x128xf32>
    %215 = math.tanh %214 : vector<8x128xf32>
    %216 = arith.mulf %209, %215 : vector<8x128xf32>
    %c0_106 = arith.constant 0 : index
    %c0_107 = arith.constant 0 : index
    %c0_108 = arith.constant 0 : index
    %217 = vector.load %arg8[%c0_106, %c0_107, %c0_108] : memref<2x8x128xf32, #tpu.memory_space<vmem>>, vector<1x8x128xf32>
    %218 = vector.shape_cast %217 : vector<1x8x128xf32> to vector<8x128xf32>
    %219 = vector.shape_cast %216 : vector<8x128xf32> to vector<1x8x128xf32>
    tpu.vector_store %arg8[%c0_106, %c0_107, %c0_108], %219 {strides = array<i32>} : memref<2x8x128xf32, #tpu.memory_space<vmem>>, vector<1x8x128xf32>,
    %c0_109 = arith.constant 0 : index
    %c0_110 = arith.constant 0 : index
    %c0_111 = arith.constant 0 : index
    %220 = vector.load %arg9[%c0_109, %c0_110, %c0_111] : memref<2x8x128xf32, #tpu.memory_space<vmem>>, vector<1x8x128xf32>
    %221 = vector.shape_cast %220 : vector<1x8x128xf32> to vector<8x128xf32>
    %222 = vector.shape_cast %214 : vector<8x128xf32> to vector<1x8x128xf32>
    tpu.vector_store %arg9[%c0_109, %c0_110, %c0_111], %222 {strides = array<i32>} : memref<2x8x128xf32, #tpu.memory_space<vmem>>, vector<1x8x128xf32>,
    %c1_112 = arith.constant 1 : index
    %c0_113 = arith.constant 0 : index
    %c0_114 = arith.constant 0 : index
    %223 = vector.load %arg8[%c1_112, %c0_113, %c0_114] : memref<2x8x128xf32, #tpu.memory_space<vmem>>, vector<1x8x128xf32>
    %224 = vector.shape_cast %223 : vector<1x8x128xf32> to vector<8x128xf32>
    %225 = tpu.concatenate %216, %224 in 1 : vector<8x128xf32>, vector<8x128xf32> -> vector<8x256xf32>
    %cst_115 = arith.constant dense<0.000000e+00> : vector<8x512xf32>
    %226 = tpu.matmul %225, %5, %cst_115 {dimension_numbers = #tpu.dot_dimension_numbers<[1], [0], [0], [1], [0, 0, 1, 1], [], []>} : vector<8x256xf32>, vector<256x512xf32>, vector<8x512xf32> -> vector<8x512xf32>
    %c1_116 = arith.constant 1 : index
    %c0_117 = arith.constant 0 : index
    %c0_118 = arith.constant 0 : index
    %227 = vector.load %arg6[%c1_116, %c0_117, %c0_118] : memref<2x1x512xf32, #tpu.memory_space<vmem>>, vector<1x1x512xf32>
    %228 = vector.shape_cast %227 : vector<1x1x512xf32> to vector<1x512xf32>
    %229 = vector.broadcast %228 : vector<1x512xf32> to vector<8x512xf32>
    %230 = arith.addf %226, %229 : vector<8x512xf32>
    %231 = vector.extract_strided_slice %230 {offsets = [0, 0], sizes = [8, 128], strides = [1, 1]} : vector<8x512xf32> to vector<8x128xf32>
    %232 = arith.negf %231 : vector<8x128xf32>
    %233 = math.exp %232 : vector<8x128xf32>
    %cst_119 = arith.constant 1.000000e+00 : f32
    %234 = vector.broadcast %cst_119 : f32 to vector<8x128xf32>
    %235 = arith.addf %234, %233 : vector<8x128xf32>
    %236 = arith.divf %234, %235 : vector<8x128xf32>
    %237 = vector.extract_strided_slice %230 {offsets = [0, 128], sizes = [8, 128], strides = [1, 1]} : vector<8x512xf32> to vector<8x128xf32>
    %238 = arith.negf %237 : vector<8x128xf32>
    %239 = math.exp %238 : vector<8x128xf32>
    %cst_120 = arith.constant 1.000000e+00 : f32
    %240 = vector.broadcast %cst_120 : f32 to vector<8x128xf32>
    %241 = arith.addf %240, %239 : vector<8x128xf32>
    %242 = arith.divf %240, %241 : vector<8x128xf32>
    %243 = vector.extract_strided_slice %230 {offsets = [0, 256], sizes = [8, 128], strides = [1, 1]} : vector<8x512xf32> to vector<8x128xf32>
    %244 = math.tanh %243 : vector<8x128xf32>
    %245 = vector.extract_strided_slice %230 {offsets = [0, 384], sizes = [8, 128], strides = [1, 1]} : vector<8x512xf32> to vector<8x128xf32>
    %246 = arith.negf %245 : vector<8x128xf32>
    %247 = math.exp %246 : vector<8x128xf32>
    %cst_121 = arith.constant 1.000000e+00 : f32
    %248 = vector.broadcast %cst_121 : f32 to vector<8x128xf32>
    %249 = arith.addf %248, %247 : vector<8x128xf32>
    %250 = arith.divf %248, %249 : vector<8x128xf32>
    %c1_122 = arith.constant 1 : index
    %c0_123 = arith.constant 0 : index
    %c0_124 = arith.constant 0 : index
    %251 = vector.load %arg9[%c1_122, %c0_123, %c0_124] : memref<2x8x128xf32, #tpu.memory_space<vmem>>, vector<1x8x128xf32>
    %252 = vector.shape_cast %251 : vector<1x8x128xf32> to vector<8x128xf32>
    %253 = arith.mulf %242, %252 : vector<8x128xf32>
    %254 = arith.mulf %236, %244 : vector<8x128xf32>
    %255 = arith.addf %253, %254 : vector<8x128xf32>
    %256 = math.tanh %255 : vector<8x128xf32>
    %257 = arith.mulf %250, %256 : vector<8x128xf32>
    %c1_125 = arith.constant 1 : index
    %c0_126 = arith.constant 0 : index
    %c0_127 = arith.constant 0 : index
    %258 = vector.load %arg8[%c1_125, %c0_126, %c0_127] : memref<2x8x128xf32, #tpu.memory_space<vmem>>, vector<1x8x128xf32>
    %259 = vector.shape_cast %258 : vector<1x8x128xf32> to vector<8x128xf32>
    %260 = vector.shape_cast %257 : vector<8x128xf32> to vector<1x8x128xf32>
    tpu.vector_store %arg8[%c1_125, %c0_126, %c0_127], %260 {strides = array<i32>} : memref<2x8x128xf32, #tpu.memory_space<vmem>>, vector<1x8x128xf32>,
    %c1_128 = arith.constant 1 : index
    %c0_129 = arith.constant 0 : index
    %c0_130 = arith.constant 0 : index
    %261 = vector.load %arg9[%c1_128, %c0_129, %c0_130] : memref<2x8x128xf32, #tpu.memory_space<vmem>>, vector<1x8x128xf32>
    %262 = vector.shape_cast %261 : vector<1x8x128xf32> to vector<8x128xf32>
    %263 = vector.shape_cast %255 : vector<8x128xf32> to vector<1x8x128xf32>
    tpu.vector_store %arg9[%c1_128, %c0_129, %c0_130], %263 {strides = array<i32>} : memref<2x8x128xf32, #tpu.memory_space<vmem>>, vector<1x8x128xf32>,
    %c2_131 = arith.constant 2 : index
    %c0_132 = arith.constant 0 : index
    %c0_133 = arith.constant 0 : index
    %264 = vector.load %arg7[%c2_131, %c0_132, %c0_133] : memref<4x8x128xf32, #tpu.memory_space<vmem>>, vector<1x8x128xf32>
    %265 = vector.shape_cast %264 : vector<1x8x128xf32> to vector<8x128xf32>
    %266 = vector.shape_cast %257 : vector<8x128xf32> to vector<1x8x128xf32>
    tpu.vector_store %arg7[%c2_131, %c0_132, %c0_133], %266 {strides = array<i32>} : memref<4x8x128xf32, #tpu.memory_space<vmem>>, vector<1x8x128xf32>,
    %c3 = arith.constant 3 : index
    %c0_134 = arith.constant 0 : index
    %c0_135 = arith.constant 0 : index
    %267 = vector.load %arg1[%c3, %c0_134, %c0_135] : memref<4x8x128xf32, #tpu.memory_space<vmem>>, vector<1x8x128xf32>
    %268 = vector.shape_cast %267 : vector<1x8x128xf32> to vector<8x128xf32>
    %c0_136 = arith.constant 0 : index
    %c0_137 = arith.constant 0 : index
    %c0_138 = arith.constant 0 : index
    %269 = vector.load %arg8[%c0_136, %c0_137, %c0_138] : memref<2x8x128xf32, #tpu.memory_space<vmem>>, vector<1x8x128xf32>
    %270 = vector.shape_cast %269 : vector<1x8x128xf32> to vector<8x128xf32>
    %271 = tpu.concatenate %268, %270 in 1 : vector<8x128xf32>, vector<8x128xf32> -> vector<8x256xf32>
    %cst_139 = arith.constant dense<0.000000e+00> : vector<8x512xf32>
    %272 = tpu.matmul %271, %3, %cst_139 {dimension_numbers = #tpu.dot_dimension_numbers<[1], [0], [0], [1], [0, 0, 1, 1], [], []>} : vector<8x256xf32>, vector<256x512xf32>, vector<8x512xf32> -> vector<8x512xf32>
    %c0_140 = arith.constant 0 : index
    %c0_141 = arith.constant 0 : index
    %c0_142 = arith.constant 0 : index
    %273 = vector.load %arg6[%c0_140, %c0_141, %c0_142] : memref<2x1x512xf32, #tpu.memory_space<vmem>>, vector<1x1x512xf32>
    %274 = vector.shape_cast %273 : vector<1x1x512xf32> to vector<1x512xf32>
    %275 = vector.broadcast %274 : vector<1x512xf32> to vector<8x512xf32>
    %276 = arith.addf %272, %275 : vector<8x512xf32>
    %277 = vector.extract_strided_slice %276 {offsets = [0, 0], sizes = [8, 128], strides = [1, 1]} : vector<8x512xf32> to vector<8x128xf32>
    %278 = arith.negf %277 : vector<8x128xf32>
    %279 = math.exp %278 : vector<8x128xf32>
    %cst_143 = arith.constant 1.000000e+00 : f32
    %280 = vector.broadcast %cst_143 : f32 to vector<8x128xf32>
    %281 = arith.addf %280, %279 : vector<8x128xf32>
    %282 = arith.divf %280, %281 : vector<8x128xf32>
    %283 = vector.extract_strided_slice %276 {offsets = [0, 128], sizes = [8, 128], strides = [1, 1]} : vector<8x512xf32> to vector<8x128xf32>
    %284 = arith.negf %283 : vector<8x128xf32>
    %285 = math.exp %284 : vector<8x128xf32>
    %cst_144 = arith.constant 1.000000e+00 : f32
    %286 = vector.broadcast %cst_144 : f32 to vector<8x128xf32>
    %287 = arith.addf %286, %285 : vector<8x128xf32>
    %288 = arith.divf %286, %287 : vector<8x128xf32>
    %289 = vector.extract_strided_slice %276 {offsets = [0, 256], sizes = [8, 128], strides = [1, 1]} : vector<8x512xf32> to vector<8x128xf32>
    %290 = math.tanh %289 : vector<8x128xf32>
    %291 = vector.extract_strided_slice %276 {offsets = [0, 384], sizes = [8, 128], strides = [1, 1]} : vector<8x512xf32> to vector<8x128xf32>
    %292 = arith.negf %291 : vector<8x128xf32>
    %293 = math.exp %292 : vector<8x128xf32>
    %cst_145 = arith.constant 1.000000e+00 : f32
    %294 = vector.broadcast %cst_145 : f32 to vector<8x128xf32>
    %295 = arith.addf %294, %293 : vector<8x128xf32>
    %296 = arith.divf %294, %295 : vector<8x128xf32>
    %c0_146 = arith.constant 0 : index
    %c0_147 = arith.constant 0 : index
    %c0_148 = arith.constant 0 : index
    %297 = vector.load %arg9[%c0_146, %c0_147, %c0_148] : memref<2x8x128xf32, #tpu.memory_space<vmem>>, vector<1x8x128xf32>
    %298 = vector.shape_cast %297 : vector<1x8x128xf32> to vector<8x128xf32>
    %299 = arith.mulf %288, %298 : vector<8x128xf32>
    %300 = arith.mulf %282, %290 : vector<8x128xf32>
    %301 = arith.addf %299, %300 : vector<8x128xf32>
    %302 = math.tanh %301 : vector<8x128xf32>
    %303 = arith.mulf %296, %302 : vector<8x128xf32>
    %c0_149 = arith.constant 0 : index
    %c0_150 = arith.constant 0 : index
    %c0_151 = arith.constant 0 : index
    %304 = vector.load %arg8[%c0_149, %c0_150, %c0_151] : memref<2x8x128xf32, #tpu.memory_space<vmem>>, vector<1x8x128xf32>
    %305 = vector.shape_cast %304 : vector<1x8x128xf32> to vector<8x128xf32>
    %306 = vector.shape_cast %303 : vector<8x128xf32> to vector<1x8x128xf32>
    tpu.vector_store %arg8[%c0_149, %c0_150, %c0_151], %306 {strides = array<i32>} : memref<2x8x128xf32, #tpu.memory_space<vmem>>, vector<1x8x128xf32>,
    %c0_152 = arith.constant 0 : index
    %c0_153 = arith.constant 0 : index
    %c0_154 = arith.constant 0 : index
    %307 = vector.load %arg9[%c0_152, %c0_153, %c0_154] : memref<2x8x128xf32, #tpu.memory_space<vmem>>, vector<1x8x128xf32>
    %308 = vector.shape_cast %307 : vector<1x8x128xf32> to vector<8x128xf32>
    %309 = vector.shape_cast %301 : vector<8x128xf32> to vector<1x8x128xf32>
    tpu.vector_store %arg9[%c0_152, %c0_153, %c0_154], %309 {strides = array<i32>} : memref<2x8x128xf32, #tpu.memory_space<vmem>>, vector<1x8x128xf32>,
    %c1_155 = arith.constant 1 : index
    %c0_156 = arith.constant 0 : index
    %c0_157 = arith.constant 0 : index
    %310 = vector.load %arg8[%c1_155, %c0_156, %c0_157] : memref<2x8x128xf32, #tpu.memory_space<vmem>>, vector<1x8x128xf32>
    %311 = vector.shape_cast %310 : vector<1x8x128xf32> to vector<8x128xf32>
    %312 = tpu.concatenate %303, %311 in 1 : vector<8x128xf32>, vector<8x128xf32> -> vector<8x256xf32>
    %cst_158 = arith.constant dense<0.000000e+00> : vector<8x512xf32>
    %313 = tpu.matmul %312, %5, %cst_158 {dimension_numbers = #tpu.dot_dimension_numbers<[1], [0], [0], [1], [0, 0, 1, 1], [], []>} : vector<8x256xf32>, vector<256x512xf32>, vector<8x512xf32> -> vector<8x512xf32>
    %c1_159 = arith.constant 1 : index
    %c0_160 = arith.constant 0 : index
    %c0_161 = arith.constant 0 : index
    %314 = vector.load %arg6[%c1_159, %c0_160, %c0_161] : memref<2x1x512xf32, #tpu.memory_space<vmem>>, vector<1x1x512xf32>
    %315 = vector.shape_cast %314 : vector<1x1x512xf32> to vector<1x512xf32>
    %316 = vector.broadcast %315 : vector<1x512xf32> to vector<8x512xf32>
    %317 = arith.addf %313, %316 : vector<8x512xf32>
    %318 = vector.extract_strided_slice %317 {offsets = [0, 0], sizes = [8, 128], strides = [1, 1]} : vector<8x512xf32> to vector<8x128xf32>
    %319 = arith.negf %318 : vector<8x128xf32>
    %320 = math.exp %319 : vector<8x128xf32>
    %cst_162 = arith.constant 1.000000e+00 : f32
    %321 = vector.broadcast %cst_162 : f32 to vector<8x128xf32>
    %322 = arith.addf %321, %320 : vector<8x128xf32>
    %323 = arith.divf %321, %322 : vector<8x128xf32>
    %324 = vector.extract_strided_slice %317 {offsets = [0, 128], sizes = [8, 128], strides = [1, 1]} : vector<8x512xf32> to vector<8x128xf32>
    %325 = arith.negf %324 : vector<8x128xf32>
    %326 = math.exp %325 : vector<8x128xf32>
    %cst_163 = arith.constant 1.000000e+00 : f32
    %327 = vector.broadcast %cst_163 : f32 to vector<8x128xf32>
    %328 = arith.addf %327, %326 : vector<8x128xf32>
    %329 = arith.divf %327, %328 : vector<8x128xf32>
    %330 = vector.extract_strided_slice %317 {offsets = [0, 256], sizes = [8, 128], strides = [1, 1]} : vector<8x512xf32> to vector<8x128xf32>
    %331 = math.tanh %330 : vector<8x128xf32>
    %332 = vector.extract_strided_slice %317 {offsets = [0, 384], sizes = [8, 128], strides = [1, 1]} : vector<8x512xf32> to vector<8x128xf32>
    %333 = arith.negf %332 : vector<8x128xf32>
    %334 = math.exp %333 : vector<8x128xf32>
    %cst_164 = arith.constant 1.000000e+00 : f32
    %335 = vector.broadcast %cst_164 : f32 to vector<8x128xf32>
    %336 = arith.addf %335, %334 : vector<8x128xf32>
    %337 = arith.divf %335, %336 : vector<8x128xf32>
    %c1_165 = arith.constant 1 : index
    %c0_166 = arith.constant 0 : index
    %c0_167 = arith.constant 0 : index
    %338 = vector.load %arg9[%c1_165, %c0_166, %c0_167] : memref<2x8x128xf32, #tpu.memory_space<vmem>>, vector<1x8x128xf32>
    %339 = vector.shape_cast %338 : vector<1x8x128xf32> to vector<8x128xf32>
    %340 = arith.mulf %329, %339 : vector<8x128xf32>
    %341 = arith.mulf %323, %331 : vector<8x128xf32>
    %342 = arith.addf %340, %341 : vector<8x128xf32>
    %343 = math.tanh %342 : vector<8x128xf32>
    %344 = arith.mulf %337, %343 : vector<8x128xf32>
    %c1_168 = arith.constant 1 : index
    %c0_169 = arith.constant 0 : index
    %c0_170 = arith.constant 0 : index
    %345 = vector.load %arg8[%c1_168, %c0_169, %c0_170] : memref<2x8x128xf32, #tpu.memory_space<vmem>>, vector<1x8x128xf32>
    %346 = vector.shape_cast %345 : vector<1x8x128xf32> to vector<8x128xf32>
    %347 = vector.shape_cast %344 : vector<8x128xf32> to vector<1x8x128xf32>
    tpu.vector_store %arg8[%c1_168, %c0_169, %c0_170], %347 {strides = array<i32>} : memref<2x8x128xf32, #tpu.memory_space<vmem>>, vector<1x8x128xf32>,
    %c1_171 = arith.constant 1 : index
    %c0_172 = arith.constant 0 : index
    %c0_173 = arith.constant 0 : index
    %348 = vector.load %arg9[%c1_171, %c0_172, %c0_173] : memref<2x8x128xf32, #tpu.memory_space<vmem>>, vector<1x8x128xf32>
    %349 = vector.shape_cast %348 : vector<1x8x128xf32> to vector<8x128xf32>
    %350 = vector.shape_cast %342 : vector<8x128xf32> to vector<1x8x128xf32>
    tpu.vector_store %arg9[%c1_171, %c0_172, %c0_173], %350 {strides = array<i32>} : memref<2x8x128xf32, #tpu.memory_space<vmem>>, vector<1x8x128xf32>,
    %c3_174 = arith.constant 3 : index
    %c0_175 = arith.constant 0 : index
    %c0_176 = arith.constant 0 : index
    %351 = vector.load %arg7[%c3_174, %c0_175, %c0_176] : memref<4x8x128xf32, #tpu.memory_space<vmem>>, vector<1x8x128xf32>
    %352 = vector.shape_cast %351 : vector<1x8x128xf32> to vector<8x128xf32>
    %353 = vector.shape_cast %344 : vector<8x128xf32> to vector<1x8x128xf32>
    tpu.vector_store %arg7[%c3_174, %c0_175, %c0_176], %353 {strides = array<i32>} : memref<4x8x128xf32, #tpu.memory_space<vmem>>, vector<1x8x128xf32>,
    return
  }
  func.func @transform_0(%arg0: i32) -> (i32, i32, i32) {
    %c0_i32 = arith.constant 0 : i32
    %c0_i32_0 = arith.constant 0 : i32
    %c0_i32_1 = arith.constant 0 : i32
    return %arg0, %c0_i32, %c0_i32_0 : i32, i32, i32
  }
  func.func @transform_1(%arg0: i32) -> (i32, i32, i32) {
    %c0_i32 = arith.constant 0 : i32
    %c0_i32_0 = arith.constant 0 : i32
    %c0_i32_1 = arith.constant 0 : i32
    %c0_i32_2 = arith.constant 0 : i32
    return %c0_i32, %c0_i32_0, %c0_i32_1 : i32, i32, i32
  }
  func.func @transform_2(%arg0: i32) -> (i32, i32, i32) {
    %c0_i32 = arith.constant 0 : i32
    %c0_i32_0 = arith.constant 0 : i32
    %c0_i32_1 = arith.constant 0 : i32
    %c0_i32_2 = arith.constant 0 : i32
    return %c0_i32, %c0_i32_0, %c0_i32_1 : i32, i32, i32
  }
  func.func @transform_3(%arg0: i32) -> (i32, i32) {
    %c0_i32 = arith.constant 0 : i32
    %c0_i32_0 = arith.constant 0 : i32
    %c0_i32_1 = arith.constant 0 : i32
    return %c0_i32, %c0_i32_0 : i32, i32
  }
  func.func @transform_4(%arg0: i32) -> (i32, i32, i32) {
    %c0_i32 = arith.constant 0 : i32
    %c0_i32_0 = arith.constant 0 : i32
    %c0_i32_1 = arith.constant 0 : i32
    %c0_i32_2 = arith.constant 0 : i32
    return %c0_i32, %c0_i32_0, %c0_i32_1 : i32, i32, i32
  }
  func.func @transform_5(%arg0: i32) -> (i32, i32, i32) {
    %c0_i32 = arith.constant 0 : i32
    %c0_i32_0 = arith.constant 0 : i32
    %c0_i32_1 = arith.constant 0 : i32
    %c0_i32_2 = arith.constant 0 : i32
    return %c0_i32, %c0_i32_0, %c0_i32_1 : i32, i32, i32
  }
  func.func @transform_6(%arg0: i32) -> (i32, i32, i32) {
    %c0_i32 = arith.constant 0 : i32
    %c0_i32_0 = arith.constant 0 : i32
    %c0_i32_1 = arith.constant 0 : i32
    return %arg0, %c0_i32, %c0_i32_0 : i32, i32, i32
  }
}

</mosaic_0001>

<bundles_post_ra>
// kernel: tpu_custom_call.1
= control target key start
LH: loop header
LB: loop body
LE: loop exit
PB: predicated region body
PF: predicated region fallthrough
CT: control target
= control target key end

     0   :  { %11 = vsyncpa [#allocation5], 0  ;;  %s5800_s0 = inlined_call_operand.hbm [shape: f32[8,8,128], index: 0, kind: input, shape index: {}]   ;;  %s5801_s1 = inlined_call_operand.hbm [shape: f32[2,8,128], index: 1, kind: input, shape index: {}]   ;;  %s5802_s2 = inlined_call_operand.hbm [shape: f32[2,8,128], index: 2, kind: input, shape index: {}]   ;;  %s5803_s3 = inlined_call_operand.hbm [shape: f32[256,512], index: 3, kind: input, shape index: {}]   ;;  %s5804_s4 = inlined_call_operand.hbm [shape: f32[1,256,512], index: 4, kind: input, shape index: {}]   ;;  %s5805_s5 = inlined_call_operand.hbm [shape: f32[2,1,512], index: 5, kind: input, shape index: {}]   ;;  %s5806_s6 = inlined_call_operand.hbm [shape: f32[8,8,128], index: 6, kind: output, shape index: {}]  }
   0x1   :  { %13 = vsyncpa [#allocation5 + $0x1], 0 }
   0x2   :  { %14 = vsyncpa [#allocation8], 0 }
   0x3   :  { %15 = vsyncpa [#allocation11], 0 }
   0x4   :  { %16 = vsyncpa [#allocation14], 0 }
   0x5   :  { %17 = vsyncpa [#allocation6], 0 }
   0x6   :  { %19 = vsyncpa [#allocation6 + $0x1], 0  ;;  %s3593_s21 = smov 0   ;;  %s3595_s22 = smov 0  }
   0x7   :  { %s3597_s23 = smov 0   ;;  %s3599_s24 = smov 0  }
   0x8 LB: > { %s198_s27 = sshll.u32 %s5801_s1, 4  ;;  %s3617_s28 = sadd.s32 4294967295, %s3543_s24   ;;  %s3543_s24 = sphi %s3599_s24, %s6759_s24   ;;  %s3539_s23 = sphi %s3597_s23, %s6758_s23   ;;  %s3535_s22 = sphi %s3595_s22, %s6757_s22   ;;  %s3531_s21 = sphi %s3593_s21, %s6756_s21   ;;  %s199_s27 = int_to_ptr.hbm [resolvable:$true] %s198_s27 }
   0x9   : > { %p2676_p0 = scmp.ge.s32.totalorder %s3543_s24, 1  ;;  %p46_p1 = scmp.eq.s32.totalorder %s3617_s28, 0 }
   0xa   : > { %p187_p2 = scmp.lt.s32.totalorder %s3543_s24, 3  ;;  %s3545_s30 = smov [#allocation7]  }
   0xb   : > { %s200_s7 = sshll.u32 %s3545_s30, 4  ;;  %s226_s10 = sshll.u32 %s5803_s3, 4  ;;  %s201_s7 = int_to_ptr.vmem [resolvable:$true] %s200_s7  ;;  %s227_s10 = int_to_ptr.hbm [resolvable:$true] %s226_s10 }
   0xc   : > { %p3623_p4 = pnand %p2676_p0, %p187_p2  ;;  %s3546_s12 = smov [#allocation10]  }
   0xd   : > { %s228_s13 = sshll.u32 %s3546_s12, 4  ;;  %s5807_s14 = smov 128   ;;  %s229_s13 = int_to_ptr.vmem [resolvable:$true] %s228_s13 }
   0xe   : > { %p2756_p5 = pneg %p3623_p4  ;;  %s5808_s15 = smov 8  }
   0xf   : > { %s3549_s16 = smov 512   ;;  %s3550_s17 = smov 32  }
  0x10   : > { %p3635_p7 = pnand %p2756_p5, %p46_p1  ;;  %s212_s20 = sshll.u32 %s5802_s2, 4  ;;  %s213_s20 = int_to_ptr.hbm [resolvable:$true] %s212_s20 }
  0x11   : > { %s3551_s25 = smov [#allocation9]   ;;  %s3553_s18 = smov [#allocation13]  }
  0x12   : > { %2759 = dma.hbm_to_vmem [thread:$0]  (!%p3635_p7), %s199_s27, 256, %s201_s7, [#allocation8], %s5807_s14, %s5807_s14, %s5808_s15  }
  0x13   : > { %2765 = dma.hbm_to_vmem [thread:$0]  (!%p3635_p7), %s227_s10, 16384, %s229_s13, [#allocation11], %s3549_s16, %s3549_s16, %s3550_s17  }
  0x14   : > { %s214_s26 = sshll.u32 %s3551_s25, 4  ;;  %s240_s27 = sshll.u32 %s5804_s4, 4  ;;  %s215_s26 = int_to_ptr.vmem [resolvable:$true] %s214_s26  ;;  %s241_s27 = int_to_ptr.hbm [resolvable:$true] %s240_s27 }
  0x15   : > { %2762 = dma.hbm_to_vmem [thread:$0]  (!%p3635_p7), %s213_s20, 256, %s215_s26, [#allocation8], %s5807_s14, %s5807_s14, %s5808_s15  }
  0x16   : > { %s3552_s7 = smov [#allocation12]   ;;  %s254_s13 = sshll.u32 %s5805_s5, 4  ;;  %s255_s13 = int_to_ptr.hbm [resolvable:$true] %s254_s13 }
  0x17   : > { %s242_s9 = sshll.u32 %s3552_s7, 4  ;;  %s256_s19 = sshll.u32 %s3553_s18, 4  ;;  %s243_s9 = int_to_ptr.vmem [resolvable:$true] %s242_s9  ;;  %s257_s19 = int_to_ptr.vmem [resolvable:$true] %s256_s19 }
  0x18   : > { %2768 = dma.hbm_to_vmem [thread:$0]  (!%p3635_p7), %s241_s27, 16384, %s243_s9, [#allocation11], %s3549_s16, %s3549_s16, %s3550_s17  }
  0x19   : > { %s3554_s20 = smov 64   ;;  %s3555_s25 = smov 4  }
  0x1a   : > { %2771 = dma.hbm_to_vmem [thread:$0]  (!%p3635_p7), %s255_s13, 128, %s257_s19, [#allocation14], %s3554_s20, %s3554_s20, %s3555_s25  }
  0x1b   : > { %s2675_s26 = sadd.s32 4294967294, %s3543_s24   ;;  %s3666_s30 = sadd.s32 1, %s3543_s24  }
  0x1c   : > { %s32_s8 = sadd.s32 1, %s3539_s23  ;;  %s29_s7 = ssub.s32 %s3543_s24, %s3666_s30 }
  0x1d   : > { %p39_p8 = scmp.ne.s32.totalorder %s3539_s23, %s3535_s22  ;;  %p30_p9 = scmp.eq.s32.totalorder %s29_s7, 0 }
  0x1e   : > { %p40_p10 = scmp.eq.s32.totalorder %s3543_s24, 0  ;;  %p45_p11 = scmp.ne.s32.totalorder %s3535_s22, %s3531_s21 }
  0x1f   : > { %p174_p12 = scmp.eq.s32.totalorder %s3617_s28, 1  ;;  %p180_p2 = scmp.eq.s32.totalorder %s2675_s26, 1 }
  0x20   : > { %s3678_s16 = scalar_select %p30_p9, %s3539_s23, %s32_s8  }
  0x21   : > { %p3682_p13 = por %p46_p1, %p45_p11  ;;  %p3686_p0 = por %p174_p12, %p39_p8 }
  0x22   : > { %p41_p5 = por %p40_p10, %p39_p8  ;;  %s270_s27 = sand.u32 1, %s3539_s23  }
  0x23   : > { %p3691_p7 = por %p180_p2, %p45_p11  ;;  %p2785_p6 = scmp.lt.s32.totalorder %s3543_s24, 2 }
  0x24   : > { %s2683_s10 = sshll.u32 %s270_s27, 5  ;;  %s2730_s12 = sshll.u32 %s3543_s24, 5 }
  0x25   : > { %s279_s19 = scalar_lea.hbm %s5800_s0, %s2730_s12  ;;  %s274_s25 = scalar_lea.vmem [#allocation4], %s2683_s10 }
  0x26   : > { %s280_s20 = sshll.u32 %s279_s19, 4  ;;  %s282_s8 = sshll.u32 %s274_s25, 4  ;;  %s281_s20 = int_to_ptr.hbm [resolvable:$true] %s280_s20  ;;  %s283_s8 = int_to_ptr.vmem [resolvable:$true] %s282_s8 }
  0x27   : > { %p3700_p9 = pnand %p2785_p6, %p41_p5  ;;  %s271_s7 = scalar_lea.sflag [#allocation5], %s270_s27 }
  0x28   : > { %s3435_s14 = sshra.s32 %s281_s20, 4  ;;  %s3442_s10 = scalar_lea.hbm %s5800_s0, 64  ;;  %s3436_s14 = int_to_ptr.hbm [resolvable:$true] %s3435_s14 }
  0x29   : > { %s3437_s15 = scalar_lea.hbm %s3436_s14, 32  ;;  %p3439_p10 = pneg %p3700_p9 }
  0x2a   : > { %p3438_p8 = scmp.ne.s32.totalorder %s3436_s14, %s3437_s15  ;;  %p3443_p6 = scmp.lt.s32.totalorder %s3436_s14, %s5800_s0 }
  0x2b   : > { %p3444_p2 = scmp.lt.s32.totalorder %s3442_s10, %s3437_s15 }
  0x2c   : > { %p3440_p11 = pnand %p3439_p10, %p3438_p8 }
  0x2d   : > { %p3445_p5 = por %p3444_p2, %p3443_p6 }
  0x2e   : > { %p3441_p12 = pneg %p3440_p11 }
  0x30   : > { %p3446_p3 = pnand %p3445_p5, %p3441_p12 }
  0x32   : > { %3449 = shalt.err (!%p3446_p3)
}
  0x33   : > { %s6122_s27 = smov 8   ;;  %s6123_s25 = smov 128  }
  0x34   : > { %2775 = dma.hbm_to_vmem [thread:$0]  (!%p3700_p9), %s281_s20, 512, %s283_s8, %s271_s7, %s6123_s25, %s6123_s25, %s6122_s27  }
  0x35   : > { %294 = sbr.rel (%p3623_p4) target bundleno = 1193 (0x4a9), region = 44 }
  0x3a   : > { %s3720_s12 = sand.u32 1, %s3535_s22  }
  0x3b   : > { %s2687_s14 = sshll.u32 %s3720_s12, 5  ;;  %s297_s15 = scalar_lea.sflag [#allocation5], %s3720_s12 }
  0x3c   : > { %s3724_s13 = scalar_lea.vmem [#allocation4], %s2687_s14 }
  0x3d   : > { %3510 = dma.done.wait (%p3682_p13), %s297_s15, 512  }
  0x3e   : > { %3512 = vsyncadd (%p3682_p13), %s297_s15, 4294966784 }
  0x3f   : > { %3514 = dma.done.wait (%p46_p1), [#allocation8], 512  }
  0x40   : > { %3516 = vsyncadd (%p46_p1), [#allocation8], 4294966784 }
  0x41   : > { %3518 = dma.done.wait (%p46_p1), [#allocation11], 32768  }
  0x42   : > { %3520 = vsyncadd (%p46_p1), [#allocation11], 4294934528 }
  0x43   : > { %3522 = dma.done.wait (%p46_p1), [#allocation14], 128  }
  0x44   : > { %3524 = vsyncadd (%p46_p1), [#allocation14], 4294967168  ;;  %s3742_s29 = scalar_lea.vmem [#allocation15], %s2687_s14  ;;  %p6124_p3 = scmp.ne.s32.totalorder %s3617_s28, 0 }
  0x46   : > { %360 = sbr.rel (%p6124_p3) target bundleno = 80 (0x50), region = 72 }
  0x4b   : > { %v361_v0 = vld [vmem:[#allocation7] sm:$0xff]  ;;  %v362_v1 = vld [vmem:[#allocation7 + $0x8] sm:$0xff]  ;;  %v365_v2 = vld [vmem:[#allocation9] sm:$0xff] }
  0x4c   : > { %363 = vst [vmem:[#allocation2] sm:$0xff] %v361_v0  ;;  %v366_v3 = vld [vmem:[#allocation9 + $0x8] sm:$0xff] }
  0x4d   : > { %364 = vst [vmem:[#allocation2 + $0x8] sm:$0xff] %v362_v1 }
  0x4e   : > { %367 = vst [vmem:[#allocation3 + $0x8] sm:$0xff] %v365_v2 }
  0x4f   : > { %368 = vst [vmem:[#allocation3] sm:$0xff] %v366_v3 }
  0x50 PF: > { %v430_v4 = vld [vmem:[#allocation10 + $0x1e8] sm:$0xff]  ;;  %v429_v7 = vld [vmem:[#allocation10 + $0x1e0] sm:$0xff]  ;;  %v432_v1 = vld [vmem:[#allocation10 + $0x1f8] sm:$0xff]  ;;  %s2731_s11 = sshll.u32 %s3617_s28, 5  ;;  %s2551_s7 = sshll.u32 %s3742_s29, 4  ;;  %s2552_s7 = int_to_ptr.vmem [resolvable:$true] %s2551_s7 }
  0x51   : > { %v426_v5 = vld [vmem:[#allocation10 + $0x1c8] sm:$0xff]  ;;  %677 = vmatpush.msra.mxu2 %v430_v4  ;;  %637 = vmatpush.msra.mxu0 %v429_v7  ;;  %v425_v10 = vld [vmem:[#allocation10 + $0x1c0] sm:$0xff]  ;;  %v3837_v4 = vld [vmem:[#allocation10 + $0x3f8] sm:$0xff]  ;;  %s2550_s26 = scalar_lea.hbm %s5806_s6, %s2731_s11  ;;  %s2539_s28 = scalar_lea.sflag [#allocation6], %s3720_s12 }
  0x52   : > { %v3746_v6 = vld [vmem:[#allocation10 + $0x3e8] sm:$0xff]  ;;  %v3751_v11 = vld [vmem:[#allocation10 + $0x3e0] sm:$0xff]  ;;  %v431_v7 = vld [vmem:[#allocation10 + $0x1f0] sm:$0xff]  ;;  %s2553_s10 = sshll.u32 %s2550_s26, 4  ;;  %s3485_s14 = scalar_lea.hbm %s5806_s6, 64  ;;  %s2554_s10 = int_to_ptr.hbm [resolvable:$true] %s2553_s10 }
  0x53   : > { %697 = vmatpush.msra.mxu3 %v3746_v6  ;;  %v3749_v8 = vld [vmem:[#allocation10 + $0x3c8] sm:$0xff]  ;;  %678 = vmatpush.msra.mxu2 %v426_v5  ;;  %v421_v13 = vld [vmem:[#allocation10 + $0x1a0] sm:$0xff]  ;;  %v428_v5 = vld [vmem:[#allocation10 + $0x1d8] sm:$0xff]  ;;  %s3479_s18 = sshra.s32 %s2554_s10, 4  ;;  %s3480_s18 = int_to_ptr.hbm [resolvable:$true] %s3479_s18 }
  0x54   : > { %v422_v9 = vld [vmem:[#allocation10 + $0x1a8] sm:$0xff]  ;;  %v3756_v14 = vld [vmem:[#allocation10 + $0x3c0] sm:$0xff]  ;;  %638 = vmatpush.msra.mxu0 %v425_v10  ;;  %657 = vmatpush.msra.mxu1 %v3751_v11  ;;  %v3842_v10 = vld [vmem:[#allocation10 + $0x3d8] sm:$0xff]  ;;  %s3481_s19 = scalar_lea.hbm %s3480_s18, 32  ;;  %p3486_p9 = scmp.lt.s32.totalorder %s3480_s18, %s5806_s6 }
  0x55   : > { %698 = vmatpush.msra.mxu3 %v3749_v8  ;;  %v3754_v12 = vld [vmem:[#allocation10 + $0x3a8] sm:$0xff]  ;;  %679 = vmatpush.msra.mxu2 %v422_v9  ;;  %v417_v17 = vld [vmem:[#allocation10 + $0x180] sm:$0xff]  ;;  %p3482_p1 = scmp.ne.s32.totalorder %s3480_s18, %s3481_s19  ;;  %p3487_p8 = scmp.lt.s32.totalorder %s3485_s14, %s3481_s19 }
  0x56   : > { %v418_v15 = vld [vmem:[#allocation10 + $0x188] sm:$0xff]  ;;  %v3762_v18 = vld [vmem:[#allocation10 + $0x3a0] sm:$0xff]  ;;  %639 = vmatpush.msra.mxu0 %v421_v13  ;;  %658 = vmatpush.msra.mxu1 %v3756_v14  ;;  %v424_v13 = vld [vmem:[#allocation10 + $0x1b8] sm:$0xff] }
  0x57   : > { %v3759_v16 = vld [vmem:[#allocation10 + $0x388] sm:$0xff]  ;;  %699 = vmatpush.msra.mxu3 %v3754_v12  ;;  %680 = vmatpush.msra.mxu2 %v418_v15  ;;  %v413_v21 = vld [vmem:[#allocation10 + $0x160] sm:$0xff]  ;;  %v427_v15 = vld [vmem:[#allocation10 + $0x1d0] sm:$0xff]  ;;  %p3483_p4 = pnand %p3482_p1, %p3686_p0  ;;  %p3488_p10 = por %p3487_p8, %p3486_p9 }
  0x58   : > { %v414_v19 = vld [vmem:[#allocation10 + $0x168] sm:$0xff]  ;;  %v3768_v22 = vld [vmem:[#allocation10 + $0x380] sm:$0xff]  ;;  %640 = vmatpush.msra.mxu0 %v417_v17  ;;  %659 = vmatpush.msra.mxu1 %v3762_v18  ;;  %v3846_v17 = vld [vmem:[#allocation10 + $0x3f0] sm:$0xff] }
  0x59   : > { %v3765_v20 = vld [vmem:[#allocation10 + $0x368] sm:$0xff]  ;;  %700 = vmatpush.msra.mxu3 %v3759_v16  ;;  %681 = vmatpush.msra.mxu2 %v414_v19  ;;  %v409_v25 = vld [vmem:[#allocation10 + $0x140] sm:$0xff]  ;;  %v3848_v19 = vld [vmem:[#allocation10 + $0x3b8] sm:$0xff]  ;;  %p3484_p13 = pneg %p3483_p4 }
  0x5a   : > { %v410_v23 = vld [vmem:[#allocation10 + $0x148] sm:$0xff]  ;;  %v3774_v26 = vld [vmem:[#allocation10 + $0x360] sm:$0xff]  ;;  %641 = vmatpush.msra.mxu0 %v413_v21  ;;  %660 = vmatpush.msra.mxu1 %v3768_v22  ;;  %v420_v21 = vld [vmem:[#allocation10 + $0x198] sm:$0xff] }
  0x5b   : > { %v3771_v24 = vld [vmem:[#allocation10 + $0x348] sm:$0xff]  ;;  %701 = vmatpush.msra.mxu3 %v3765_v20  ;;  %682 = vmatpush.msra.mxu2 %v410_v23  ;;  %v405_v29 = vld [vmem:[#allocation10 + $0x120] sm:$0xff]  ;;  %v423_v23 = vld [vmem:[#allocation10 + $0x1b0] sm:$0xff]  ;;  %p3489_p11 = pnand %p3488_p10, %p3484_p13 }
  0x5c   : > { %v406_v27 = vld [vmem:[#allocation10 + $0x128] sm:$0xff]  ;;  %v3780_v30 = vld [vmem:[#allocation10 + $0x340] sm:$0xff]  ;;  %642 = vmatpush.msra.mxu0 %v409_v25  ;;  %661 = vmatpush.msra.mxu1 %v3774_v26 }
  0x5d   : > { %v3777_v28 = vld [vmem:[#allocation10 + $0x328] sm:$0xff]  ;;  %702 = vmatpush.msra.mxu3 %v3771_v24  ;;  %683 = vmatpush.msra.mxu2 %v406_v27  ;;  %v401_v33 = vld [vmem:[#allocation10 + $0x100] sm:$0xff]  ;;  %v3855_v27 = vld [vmem:[#allocation10 + $0x3d0] sm:$0xff] }
  0x5e   : > { %v402_v31 = vld [vmem:[#allocation10 + $0x108] sm:$0xff]  ;;  %v3786_v34 = vld [vmem:[#allocation10 + $0x320] sm:$0xff]  ;;  %643 = vmatpush.msra.mxu0 %v405_v29  ;;  %662 = vmatpush.msra.mxu1 %v3780_v30  ;;  %v416_v29 = vld [vmem:[#allocation10 + $0x178] sm:$0xff] }
  0x5f   : > { %v3783_v32 = vld [vmem:[#allocation10 + $0x308] sm:$0xff]  ;;  %703 = vmatpush.msra.mxu3 %v3777_v28  ;;  %684 = vmatpush.msra.mxu2 %v402_v31  ;;  %v397_v37 = vld [vmem:[#allocation10 + $0xe0] sm:$0xff]  ;;  %v3859_v31 = vld [vmem:[#allocation10 + $0x398] sm:$0xff] }
  0x60   : > { %v398_v35 = vld [vmem:[#allocation10 + $0xe8] sm:$0xff]  ;;  %v3792_v38 = vld [vmem:[#allocation10 + $0x300] sm:$0xff]  ;;  %644 = vmatpush.msra.mxu0 %v401_v33  ;;  %663 = vmatpush.msra.mxu1 %v3786_v34 }
  0x61   : > { %v3789_v36 = vld [vmem:[#allocation10 + $0x2e8] sm:$0xff]  ;;  %704 = vmatpush.msra.mxu3 %v3783_v32  ;;  %685 = vmatpush.msra.mxu2 %v398_v35  ;;  %v393_v41 = vld [vmem:[#allocation10 + $0xc0] sm:$0xff]  ;;  %v419_v35 = vld [vmem:[#allocation10 + $0x190] sm:$0xff] }
  0x62   : > { %v394_v39 = vld [vmem:[#allocation10 + $0xc8] sm:$0xff]  ;;  %v3798_v42 = vld [vmem:[#allocation10 + $0x2e0] sm:$0xff]  ;;  %645 = vmatpush.msra.mxu0 %v397_v37  ;;  %664 = vmatpush.msra.mxu1 %v3792_v38  ;;  %v3865_v37 = vld [vmem:[#allocation10 + $0x3b0] sm:$0xff] }
  0x63   : > { %v3795_v40 = vld [vmem:[#allocation10 + $0x2c8] sm:$0xff]  ;;  %705 = vmatpush.msra.mxu3 %v3789_v36  ;;  %686 = vmatpush.msra.mxu2 %v394_v39  ;;  %v389_v45 = vld [vmem:[#allocation10 + $0xa0] sm:$0xff]  ;;  %v412_v39 = vld [vmem:[#allocation10 + $0x158] sm:$0xff] }
  0x64   : > { %v390_v43 = vld [vmem:[#allocation10 + $0xa8] sm:$0xff]  ;;  %v3804_v46 = vld [vmem:[#allocation10 + $0x2c0] sm:$0xff]  ;;  %646 = vmatpush.msra.mxu0 %v393_v41  ;;  %665 = vmatpush.msra.mxu1 %v3798_v42  ;;  %v3868_v41 = vld [vmem:[#allocation10 + $0x378] sm:$0xff] }
  0x65   : > { %v3801_v44 = vld [vmem:[#allocation10 + $0x2a8] sm:$0xff]  ;;  %706 = vmatpush.msra.mxu3 %v3795_v40  ;;  %687 = vmatpush.msra.mxu2 %v390_v43  ;;  %v385_v49 = vld [vmem:[#allocation10 + $0x80] sm:$0xff]  ;;  %v415_v43 = vld [vmem:[#allocation10 + $0x170] sm:$0xff] }
  0x66   : > { %v386_v47 = vld [vmem:[#allocation10 + $0x88] sm:$0xff]  ;;  %v3810_v50 = vld [vmem:[#allocation10 + $0x2a0] sm:$0xff]  ;;  %647 = vmatpush.msra.mxu0 %v389_v45  ;;  %666 = vmatpush.msra.mxu1 %v3804_v46  ;;  %v3871_v45 = vld [vmem:[#allocation10 + $0x390] sm:$0xff] }
  0x67   : > { %v3807_v48 = vld [vmem:[#allocation10 + $0x288] sm:$0xff]  ;;  %707 = vmatpush.msra.mxu3 %v3801_v44  ;;  %688 = vmatpush.msra.mxu2 %v386_v47  ;;  %v381_v53 = vld [vmem:[#allocation10 + $0x60] sm:$0xff]  ;;  %v408_v47 = vld [vmem:[#allocation10 + $0x138] sm:$0xff] }
  0x68   : > { %v382_v51 = vld [vmem:[#allocation10 + $0x68] sm:$0xff]  ;;  %v3816_v54 = vld [vmem:[#allocation10 + $0x280] sm:$0xff]  ;;  %648 = vmatpush.msra.mxu0 %v385_v49  ;;  %667 = vmatpush.msra.mxu1 %v3810_v50  ;;  %v3874_v49 = vld [vmem:[#allocation10 + $0x358] sm:$0xff] }
  0x69   : > { %v3813_v52 = vld [vmem:[#allocation10 + $0x268] sm:$0xff]  ;;  %708 = vmatpush.msra.mxu3 %v3807_v48  ;;  %689 = vmatpush.msra.mxu2 %v382_v51  ;;  %v377_v57 = vld [vmem:[#allocation10 + $0x40] sm:$0xff]  ;;  %v411_v51 = vld [vmem:[#allocation10 + $0x150] sm:$0xff] }
  0x6a   : > { %v378_v55 = vld [vmem:[#allocation10 + $0x48] sm:$0xff]  ;;  %v3822_v58 = vld [vmem:[#allocation10 + $0x260] sm:$0xff]  ;;  %649 = vmatpush.msra.mxu0 %v381_v53  ;;  %668 = vmatpush.msra.mxu1 %v3816_v54  ;;  %v3877_v53 = vld [vmem:[#allocation10 + $0x370] sm:$0xff] }
  0x6b   : > { %v3819_v56 = vld [vmem:[#allocation10 + $0x248] sm:$0xff]  ;;  %709 = vmatpush.msra.mxu3 %v3813_v52  ;;  %690 = vmatpush.msra.mxu2 %v378_v55  ;;  %v373_v61 = vld [vmem:[#allocation10 + $0x20] sm:$0xff]  ;;  %v404_v55 = vld [vmem:[#allocation10 + $0x118] sm:$0xff] }
  0x6c   : > { %v374_v59 = vld [vmem:[#allocation10 + $0x28] sm:$0xff]  ;;  %v3828_v62 = vld [vmem:[#allocation10 + $0x240] sm:$0xff]  ;;  %650 = vmatpush.msra.mxu0 %v377_v57  ;;  %669 = vmatpush.msra.mxu1 %v3822_v58  ;;  %v3880_v57 = vld [vmem:[#allocation10 + $0x338] sm:$0xff] }
  0x6d   : > { %v3825_v60 = vld [vmem:[#allocation10 + $0x228] sm:$0xff]  ;;  %710 = vmatpush.msra.mxu3 %v3819_v56  ;;  %691 = vmatpush.msra.mxu2 %v374_v59  ;;  %v369_v2 = vld [vmem:[#allocation10] sm:$0xff]  ;;  %v407_v59 = vld [vmem:[#allocation10 + $0x130] sm:$0xff] }
  0x6e   : > { %v370_v63 = vld [vmem:[#allocation10 + $0x8] sm:$0xff]  ;;  %651 = vmatpush.msra.mxu0 %v373_v61  ;;  %670 = vmatpush.msra.mxu1 %v3828_v62  ;;  %v3835_v3 = vld [vmem:[#allocation10 + $0x220] sm:$0xff]  ;;  %v3885_v61 = vld [vmem:[#allocation10 + $0x350] sm:$0xff] }
  0x6f   : > { %v3831_v0 = vld [vmem:[#allocation10 + $0x208] sm:$0xff]  ;;  %711 = vmatpush.msra.mxu3 %v3825_v60  ;;  %692 = vmatpush.msra.mxu2 %v370_v63  ;;  %v3840_v9 = vld [vmem:[#allocation10 + $0x200] sm:$0xff]  ;;  %v400_v63 = vld [vmem:[#allocation10 + $0xf8] sm:$0xff] }
  0x70   : > { %652 = vmatpush.msra.mxu0 %v369_v2  ;;  %671 = vmatpush.msra.mxu1 %v3835_v3  ;;  %v3853_v25 = vld [vmem:[%s3724_s13] sm:$0xff]  ;;  %v403_v2 = vld [vmem:[#allocation10 + $0x110] sm:$0xff] }
  0x71   : > { %712 = vmatpush.msra.mxu3 %v3831_v0  ;;  %757 = vmatpush.msrb.mxu2 %v432_v1  ;;  %v3861_v33 = vld [vmem:[#allocation2] sm:$0xff]  ;;  %v3888_v1 = vld [vmem:[#allocation10 + $0x318] sm:$0xff] }
  0x72   : > { %717 = vmatpush.msrb.mxu0 %v431_v7  ;;  %672 = vmatpush.msra.mxu1 %v3840_v9  ;;  %v396_v7 = vld [vmem:[#allocation10 + $0xd8] sm:$0xff] }
  0x73   : > { %777 = vmatpush.msrb.mxu3 %v3837_v4  ;;  %758 = vmatpush.msrb.mxu2 %v428_v5  ;;  %v3891_v5 = vld [vmem:[#allocation10 + $0x330] sm:$0xff] }
  0x74   : > { %718 = vmatpush.msrb.mxu0 %v427_v15  ;;  %737 = vmatpush.msrb.mxu1 %v3846_v17  ;;  %v399_v15 = vld [vmem:[#allocation10 + $0xf0] sm:$0xff] }
  0x75   : > { %778 = vmatpush.msrb.mxu3 %v3842_v10  ;;  %759 = vmatpush.msrb.mxu2 %v424_v13  ;;  %v3894_v13 = vld [vmem:[#allocation10 + $0x2f8] sm:$0xff] }
  0x76   : > { %719 = vmatpush.msrb.mxu0 %v423_v23  ;;  %693 = vmatmul.f32.vlgmr.msra.gmra.mxu2 %v3853_v25  ;;  %v392_v23 = vld [vmem:[#allocation10 + $0xb8] sm:$0xff] }
  0x77   : > { %779 = vmatpush.msrb.mxu3 %v3848_v19  ;;  %760 = vmatpush.msrb.mxu2 %v420_v21  ;;  %v3897_v21 = vld [vmem:[#allocation10 + $0x310] sm:$0xff] }
  0x78   : > { %738 = vmatpush.msrb.mxu1 %v3855_v27  ;;  %713 = vmatmul.f32.vlgmr.msra.gmra.mxu3 %v3861_v33 }
  0x79   : > { %761 = vmatpush.msrb.mxu2 %v416_v29  ;;  %780 = vmatpush.msrb.mxu3 %v3859_v31  ;;  %v3900_v29 = vld [vmem:[#allocation10 + $0x2d8] sm:$0xff] }
  0x7a   : > { %720 = vmatpush.msrb.mxu0 %v419_v35  ;;  %739 = vmatpush.msrb.mxu1 %v3865_v37  ;;  %6125 = vst [vmem:[#allocation21_spill] sm:$0xff] %v3900_v29  ;;  %v395_v35 = vld [vmem:[#allocation10 + $0xd0] sm:$0xff] }
  0x7b   : > { %762 = vmatpush.msrb.mxu2 %v412_v39  ;;  %781 = vmatpush.msrb.mxu3 %v3868_v41  ;;  %v3903_v39 = vld [vmem:[#allocation10 + $0x2f0] sm:$0xff] }
  0x7c   : > { %721 = vmatpush.msrb.mxu0 %v415_v43  ;;  %740 = vmatpush.msrb.mxu1 %v3871_v45  ;;  %v388_v43 = vld [vmem:[#allocation10 + $0x98] sm:$0xff] }
  0x7d   : > { %763 = vmatpush.msrb.mxu2 %v408_v47  ;;  %782 = vmatpush.msrb.mxu3 %v3874_v49  ;;  %v3906_v47 = vld [vmem:[#allocation10 + $0x2b8] sm:$0xff] }
  0x7e   : > { %653 = vmatmul.f32.vlgmr.msra.gmra.mxu0 %v3853_v25  ;;  %741 = vmatpush.msrb.mxu1 %v3877_v53  ;;  %6126 = vst [vmem:[#allocation22_spill] sm:$0xff] %v3906_v47 }
  0x7f   : > { %722 = vmatpush.msrb.mxu0 %v411_v51  ;;  %764 = vmatpush.msrb.mxu2 %v404_v55  ;;  %v391_v51 = vld [vmem:[#allocation10 + $0xb0] sm:$0xff] }
  0x80   : > { %783 = vmatpush.msrb.mxu3 %v3880_v57  ;;  %673 = vmatmul.f32.vlgmr.msra.gmra.mxu1 %v3861_v33  ;;  %v3909_v55 = vld [vmem:[#allocation10 + $0x2d0] sm:$0xff] }
  0x81   : > { %723 = vmatpush.msrb.mxu0 %v407_v59  ;;  %742 = vmatpush.msrb.mxu1 %v3885_v61  ;;  %6127 = vst [vmem:[#allocation23_spill] sm:$0xff] %v3909_v55  ;;  %v384_v59 = vld [vmem:[#allocation10 + $0x78] sm:$0xff] }
  0x82   : > { %765 = vmatpush.msrb.mxu2 %v400_v63  ;;  %784 = vmatpush.msrb.mxu3 %v3888_v1  ;;  %v3912_v63 = vld [vmem:[#allocation10 + $0x298] sm:$0xff] }
  0x83   : > { %724 = vmatpush.msrb.mxu0 %v403_v2  ;;  %743 = vmatpush.msrb.mxu1 %v3891_v5  ;;  %6128 = vst [vmem:[#allocation24_spill] sm:$0xff] %v3912_v63  ;;  %v387_v2 = vld [vmem:[#allocation10 + $0x90] sm:$0xff] }
  0x84   : > { %766 = vmatpush.msrb.mxu2 %v396_v7  ;;  %785 = vmatpush.msrb.mxu3 %v3894_v13  ;;  %v3915_v7 = vld [vmem:[#allocation10 + $0x2b0] sm:$0xff] }
  0x85   : > { %725 = vmatpush.msrb.mxu0 %v399_v15  ;;  %744 = vmatpush.msrb.mxu1 %v3897_v21  ;;  %6129 = vst [vmem:[#allocation25_spill] sm:$0xff] %v3915_v7  ;;  %v380_v15 = vld [vmem:[#allocation10 + $0x58] sm:$0xff] }
  0x86   : > { %767 = vmatpush.msrb.mxu2 %v392_v23  ;;  %786 = vmatpush.msrb.mxu3 %v3900_v29  ;;  %v3918_v23 = vld [vmem:[#allocation10 + $0x278] sm:$0xff]  ;;  %v3921_v29 = vld [vmem:[#allocation10 + $0x290] sm:$0xff] }
  0x87   : > { %726 = vmatpush.msrb.mxu0 %v395_v35  ;;  %745 = vmatpush.msrb.mxu1 %v3903_v39  ;;  %6130 = vst [vmem:[#allocation26_spill] sm:$0xff] %v3918_v23  ;;  %v383_v35 = vld [vmem:[#allocation10 + $0x70] sm:$0xff] }
  0x88   : > { %768 = vmatpush.msrb.mxu2 %v388_v43  ;;  %787 = vmatpush.msrb.mxu3 %v3906_v47  ;;  %v376_v43 = vld [vmem:[#allocation10 + $0x38] sm:$0xff] }
  0x89   : > { %727 = vmatpush.msrb.mxu0 %v391_v51  ;;  %746 = vmatpush.msrb.mxu1 %v3909_v55  ;;  %v3924_v47 = vld [vmem:[#allocation10 + $0x258] sm:$0xff]  ;;  %v379_v51 = vld [vmem:[#allocation10 + $0x50] sm:$0xff] }
  0x8a   : > { %769 = vmatpush.msrb.mxu2 %v384_v59  ;;  %788 = vmatpush.msrb.mxu3 %v3912_v63  ;;  %v3927_v55 = vld [vmem:[#allocation10 + $0x270] sm:$0xff]  ;;  %v372_v59 = vld [vmem:[#allocation10 + $0x18] sm:$0xff] }
  0x8b   : > { %728 = vmatpush.msrb.mxu0 %v387_v2  ;;  %747 = vmatpush.msrb.mxu1 %v3915_v7  ;;  %v3930_v63 = vld [vmem:[#allocation10 + $0x238] sm:$0xff]  ;;  %v375_v2 = vld [vmem:[#allocation10 + $0x30] sm:$0xff] }
  0x8c   : > { %770 = vmatpush.msrb.mxu2 %v380_v15  ;;  %789 = vmatpush.msrb.mxu3 %v3918_v23  ;;  %6131 = vst [vmem:[#allocation27_spill] sm:$0xff] %v3930_v63  ;;  %v3933_v7 = vld [vmem:[#allocation10 + $0x250] sm:$0xff]  ;;  %v3936_v15 = vld [vmem:[#allocation10 + $0x218] sm:$0xff] }
  0x8d   : > { %729 = vmatpush.msrb.mxu0 %v383_v35  ;;  %748 = vmatpush.msrb.mxu1 %v3921_v29  ;;  %6132 = vst [vmem:[#allocation28_spill] sm:$0xff] %v3936_v15  ;;  %v371_v35 = vld [vmem:[#allocation10 + $0x10] sm:$0xff] }
  0x8e   : > { %771 = vmatpush.msrb.mxu2 %v376_v43  ;;  %790 = vmatpush.msrb.mxu3 %v3924_v47  ;;  %v3939_v23 = vld [vmem:[#allocation10 + $0x230] sm:$0xff]  ;;  %v3943_v43 = vld [vmem:[#allocation12 + $0x3e8] sm:$0xff] }
  0x8f   : > { %730 = vmatpush.msrb.mxu0 %v379_v51  ;;  %749 = vmatpush.msrb.mxu1 %v3927_v55  ;;  %6133 = vst [vmem:[#allocation29_spill] sm:$0xff] %v3939_v23  ;;  %v3946_v51 = vld [vmem:[#allocation10 + $0x210] sm:$0xff] }
  0x90   : > { %772 = vmatpush.msrb.mxu2 %v372_v59  ;;  %791 = vmatpush.msrb.mxu3 %v3930_v63  ;;  %6134 = vst [vmem:[#allocation30_spill] sm:$0xff] %v3943_v43  ;;  %v3950_v59 = vld [vmem:[#allocation12 + $0x3c8] sm:$0xff] }
  0x91   : > { %731 = vmatpush.msrb.mxu0 %v375_v2  ;;  %750 = vmatpush.msrb.mxu1 %v3933_v7  ;;  %6135 = vst [vmem:[#allocation31_spill] sm:$0xff] %v3946_v51  ;;  %v3953_v2 = vld [vmem:[#allocation12 + $0x3e0] sm:$0xff]  ;;  %v3957_v63 = vld [vmem:[#allocation12 + $0x3a8] sm:$0xff] }
  0x92   : > { %773 = vmatmul.f32.vlgmr.msrb.gmra.mxu2 %v3853_v25  ;;  %792 = vmatpush.msrb.mxu3 %v3936_v15  ;;  %6136 = vst [vmem:[#allocation32_spill] sm:$0xff] %v3950_v59  ;;  %v3964_v15 = vld [vmem:[#allocation12 + $0x388] sm:$0xff] }
  0x93   : > { %732 = vmatpush.msrb.mxu0 %v371_v35  ;;  %751 = vmatpush.msrb.mxu1 %v3939_v23  ;;  %6137 = vst [vmem:[#allocation33_spill] sm:$0xff] %v3953_v2  ;;  %v3960_v35 = vld [vmem:[#allocation12 + $0x3c0] sm:$0xff] }
  0x94   : > { %793 = vmatmul.f32.vlgmr.msrb.gmra.mxu3 %v3861_v33  ;;  %733 = vmatmul.f32.vlgmr.msrb.gmra.mxu0 %v3853_v25  ;;  %6138 = vst [vmem:[#allocation34_spill] sm:$0xff] %v3957_v63  ;;  %v3966_v23 = vld [vmem:[#allocation12 + $0x3a0] sm:$0xff]  ;;  %v3970_v25 = vld [vmem:[#allocation12 + $0x368] sm:$0xff] }
  0x95   : > { %936 = vmatpush.msra.mxu3 %v3943_v43  ;;  %752 = vmatpush.msrb.mxu1 %v3946_v51  ;;  %6139 = vst [vmem:[#allocation35_spill] sm:$0xff] %v3960_v35  ;;  %v3972_v43 = vld [vmem:[#allocation12 + $0x380] sm:$0xff]  ;;  %v4007_v51 = vld [vmem:[#allocation12 + $0x1e8] sm:$0xff] }
  0x96   : > { %753 = vmatmul.f32.vlgmr.msrb.gmra.mxu1 %v3861_v33  ;;  %6140 = vst [vmem:[#allocation36_spill] sm:$0xff] %v3964_v15  ;;  %v3976_v33 = vld [vmem:[#allocation12 + $0x348] sm:$0xff]  ;;  %916 = vmatpush.msra.mxu2 %v4007_v51 }
  0x97   : > { %937 = vmatpush.msra.mxu3 %v3950_v59  ;;  %896 = vmatpush.msra.mxu1 %v3953_v2  ;;  %6141 = vst [vmem:[#allocation37_spill] sm:$0xff] %v3966_v23  ;;  %v3978_v59 = vld [vmem:[#allocation12 + $0x360] sm:$0xff]  ;;  %v3982_v2 = vld [vmem:[#allocation12 + $0x328] sm:$0xff] }
  0x98   : > { %6142 = vst [vmem:[#allocation38_spill] sm:$0xff] %v3970_v25 }
  0x99   : > { %938 = vmatpush.msra.mxu3 %v3957_v63  ;;  %897 = vmatpush.msra.mxu1 %v3960_v35  ;;  %6143 = vst [vmem:[#allocation39_spill] sm:$0xff] %v3972_v43  ;;  %v3984_v63 = vld [vmem:[#allocation12 + $0x340] sm:$0xff]  ;;  %v3988_v35 = vld [vmem:[#allocation12 + $0x308] sm:$0xff] }
  0x9a   : > { %6144 = vst [vmem:[#allocation40_spill] sm:$0xff] %v3976_v33 }
  0x9b   : > { %939 = vmatpush.msra.mxu3 %v3964_v15  ;;  %898 = vmatpush.msra.mxu1 %v3966_v23  ;;  %6145 = vst [vmem:[#allocation41_spill] sm:$0xff] %v3978_v59  ;;  %v3990_v15 = vld [vmem:[#allocation12 + $0x320] sm:$0xff]  ;;  %v3994_v23 = vld [vmem:[#allocation12 + $0x2e8] sm:$0xff] }
  0x9c   : > { %6146 = vst [vmem:[#allocation42_spill] sm:$0xff] %v3982_v2 }
  0x9d   : > { %940 = vmatpush.msra.mxu3 %v3970_v25  ;;  %899 = vmatpush.msra.mxu1 %v3972_v43  ;;  %6147 = vst [vmem:[#allocation43_spill] sm:$0xff] %v3984_v63  ;;  %v3996_v25 = vld [vmem:[#allocation12 + $0x300] sm:$0xff]  ;;  %v4000_v43 = vld [vmem:[#allocation12 + $0x2c8] sm:$0xff] }
  0x9e   : > { %6148 = vst [vmem:[#allocation44_spill] sm:$0xff] %v3988_v35 }
  0x9f   : > { %941 = vmatpush.msra.mxu3 %v3976_v33  ;;  %900 = vmatpush.msra.mxu1 %v3978_v59  ;;  %6149 = vst [vmem:[#allocation45_spill] sm:$0xff] %v3990_v15  ;;  %v4002_v33 = vld [vmem:[#allocation12 + $0x2e0] sm:$0xff] }
  0xa0   : > { %6150 = vst [vmem:[#allocation46_spill] sm:$0xff] %v3994_v23  ;;  %v4005_v59 = vld [vmem:[#allocation12 + $0x1e0] sm:$0xff] }
  0xa1   : > { %942 = vmatpush.msra.mxu3 %v3982_v2  ;;  %901 = vmatpush.msra.mxu1 %v3984_v63  ;;  %6151 = vst [vmem:[#allocation47_spill] sm:$0xff] %v3996_v25  ;;  %v4010_v2 = vld [vmem:[#allocation12 + $0x2a8] sm:$0xff]  ;;  %v4013_v63 = vld [vmem:[#allocation12 + $0x2c0] sm:$0xff] }
  0xa2   : > { %6152 = vst [vmem:[#allocation48_spill] sm:$0xff] %v4000_v43  ;;  %876 = vmatpush.msra.mxu0 %v4005_v59 }
  0xa3   : > { %943 = vmatpush.msra.mxu3 %v3988_v35  ;;  %902 = vmatpush.msra.mxu1 %v3990_v15  ;;  %6153 = vst [vmem:[#allocation49_spill] sm:$0xff] %v4002_v33  ;;  %v4017_v35 = vld [vmem:[#allocation12 + $0x1c0] sm:$0xff]  ;;  %v4019_v15 = vld [vmem:[#allocation12 + $0x1c8] sm:$0xff] }
  0xa4   : > { %6154 = vst [vmem:[#allocation50_spill] sm:$0xff] %v4005_v59  ;;  %877 = vmatpush.msra.mxu0 %v4017_v35  ;;  %917 = vmatpush.msra.mxu2 %v4019_v15  ;;  %v4030_v59 = vld [vmem:[#allocation12 + $0x268] sm:$0xff] }
  0xa5   : > { %944 = vmatpush.msra.mxu3 %v3994_v23  ;;  %6155 = vst [vmem:[#allocation51_spill] sm:$0xff] %v4007_v51  ;;  %903 = vmatpush.msra.mxu1 %v3996_v25  ;;  %v4022_v23 = vld [vmem:[#allocation12 + $0x288] sm:$0xff]  ;;  %v4025_v25 = vld [vmem:[#allocation12 + $0x2a0] sm:$0xff] }
  0xa6   : > { %6156 = vst [vmem:[#allocation52_spill] sm:$0xff] %v4010_v2  ;;  %v4032_v51 = vld [vmem:[#allocation12 + $0x280] sm:$0xff] }
  0xa7   : > { %945 = vmatpush.msra.mxu3 %v4000_v43  ;;  %6157 = vst [vmem:[#allocation53_spill] sm:$0xff] %v4017_v35  ;;  %904 = vmatpush.msra.mxu1 %v4002_v33  ;;  %v4036_v43 = vld [vmem:[#allocation12 + $0x248] sm:$0xff]  ;;  %v4038_v33 = vld [vmem:[#allocation12 + $0x260] sm:$0xff] }
  0xa8   : > { %6158 = vst [vmem:[#allocation54_spill] sm:$0xff] %v4019_v15  ;;  %v4042_v35 = vld [vmem:[#allocation12 + $0x228] sm:$0xff]  ;;  %v4044_v15 = vld [vmem:[#allocation12 + $0x240] sm:$0xff] }
  0xa9   : > { %6159 = vst [vmem:[#allocation55_spill] sm:$0xff] %v4022_v23  ;;  %946 = vmatpush.msra.mxu3 %v4010_v2  ;;  %905 = vmatpush.msra.mxu1 %v4013_v63  ;;  %v4048_v2 = vld [vmem:[#allocation12 + $0x208] sm:$0xff] }
  0xaa   : > { %6160 = vst [vmem:[#allocation56_spill] sm:$0xff] %v4025_v25 }
  0xab   : > { %6161 = vst [vmem:[#allocation57_spill] sm:$0xff] %v4030_v59  ;;  %947 = vmatpush.msra.mxu3 %v4022_v23  ;;  %906 = vmatpush.msra.mxu1 %v4025_v25  ;;  %v4050_v23 = vld [vmem:[#allocation12 + $0x220] sm:$0xff]  ;;  %v4053_v25 = vld [vmem:[#allocation12 + $0x3f8] sm:$0xff] }
  0xac   : > { %6162 = vst [vmem:[#allocation58_spill] sm:$0xff] %v4032_v51 }
  0xad   : > { %6163 = vst [vmem:[#allocation59_spill] sm:$0xff] %v4036_v43  ;;  %948 = vmatpush.msra.mxu3 %v4030_v59  ;;  %907 = vmatpush.msra.mxu1 %v4032_v51  ;;  %v4056_v59 = vld [vmem:[#allocation12 + $0x200] sm:$0xff]  ;;  %v4059_v51 = vld [vmem:[#allocation12 + $0x3d8] sm:$0xff] }
  0xae   : > { %6164 = vst [vmem:[#allocation60_spill] sm:$0xff] %v4038_v33 }
  0xaf   : > { %6165 = vst [vmem:[#allocation61_spill] sm:$0xff] %v4042_v35  ;;  %949 = vmatpush.msra.mxu3 %v4036_v43  ;;  %908 = vmatpush.msra.mxu1 %v4038_v33  ;;  %v4062_v43 = vld [vmem:[#allocation12 + $0x3f0] sm:$0xff]  ;;  %v4065_v33 = vld [vmem:[#allocation12 + $0x3b8] sm:$0xff] }
  0xb0   : > { %6166 = vst [vmem:[#allocation62_spill] sm:$0xff] %v4044_v15 }
  0xb1   : > { %6167 = vst [vmem:[#allocation63_spill] sm:$0xff] %v4048_v2  ;;  %950 = vmatpush.msra.mxu3 %v4042_v35  ;;  %909 = vmatpush.msra.mxu1 %v4044_v15  ;;  %v4068_v35 = vld [vmem:[#allocation12 + $0x3d0] sm:$0xff]  ;;  %v4072_v15 = vld [vmem:[#allocation12 + $0x398] sm:$0xff] }
  0xb2   : > { %6168 = vst [vmem:[#allocation64_spill] sm:$0xff] %v4050_v23 }
  0xb3   : > { %6169 = vst [vmem:[#allocation65_spill] sm:$0xff] %v4053_v25  ;;  %951 = vmatpush.msra.mxu3 %v4048_v2  ;;  %910 = vmatpush.msra.mxu1 %v4050_v23  ;;  %v4074_v2 = vld [vmem:[#allocation12 + $0x3b0] sm:$0xff]  ;;  %v4078_v23 = vld [vmem:[#allocation12 + $0x378] sm:$0xff] }
  0xb4   : > { %6170 = vst [vmem:[#allocation66_spill] sm:$0xff] %v4056_v59 }
  0xb5   : > { %6171 = vst [vmem:[#allocation67_spill] sm:$0xff] %v4059_v51  ;;  %1016 = vmatpush.msrb.mxu3 %v4053_v25  ;;  %911 = vmatpush.msra.mxu1 %v4056_v59  ;;  %v4080_v25 = vld [vmem:[#allocation12 + $0x390] sm:$0xff]  ;;  %v4084_v59 = vld [vmem:[#allocation12 + $0x358] sm:$0xff] }
  0xb6   : > { %6172 = vst [vmem:[#allocation68_spill] sm:$0xff] %v4062_v43 }
  0xb7   : > { %6173 = vst [vmem:[#allocation69_spill] sm:$0xff] %v4065_v33  ;;  %1017 = vmatpush.msrb.mxu3 %v4059_v51  ;;  %976 = vmatpush.msrb.mxu1 %v4062_v43  ;;  %v4086_v51 = vld [vmem:[#allocation12 + $0x370] sm:$0xff]  ;;  %v4090_v43 = vld [vmem:[#allocation12 + $0x338] sm:$0xff] }
  0xb8   : > { %6174 = vst [vmem:[#allocation70_spill] sm:$0xff] %v4068_v35 }
  0xb9   : > { %6175 = vst [vmem:[#allocation71_spill] sm:$0xff] %v4072_v15  ;;  %1018 = vmatpush.msrb.mxu3 %v4065_v33  ;;  %977 = vmatpush.msrb.mxu1 %v4068_v35  ;;  %v4092_v33 = vld [vmem:[#allocation12 + $0x350] sm:$0xff]  ;;  %v4096_v35 = vld [vmem:[#allocation12 + $0x318] sm:$0xff] }
  0xba   : > { %6176 = vst [vmem:[#allocation72_spill] sm:$0xff] %v4074_v2 }
  0xbb   : > { %6177 = vst [vmem:[#allocation73_spill] sm:$0xff] %v4078_v23  ;;  %1019 = vmatpush.msrb.mxu3 %v4072_v15  ;;  %978 = vmatpush.msrb.mxu1 %v4074_v2  ;;  %v4098_v15 = vld [vmem:[#allocation12 + $0x330] sm:$0xff]  ;;  %v4102_v2 = vld [vmem:[#allocation12 + $0x2f8] sm:$0xff] }
  0xbc   : > { %6178 = vst [vmem:[#allocation74_spill] sm:$0xff] %v4080_v25 }
  0xbd   : > { %6179 = vst [vmem:[#allocation75_spill] sm:$0xff] %v4084_v59  ;;  %1020 = vmatpush.msrb.mxu3 %v4078_v23  ;;  %979 = vmatpush.msrb.mxu1 %v4080_v25  ;;  %v4104_v23 = vld [vmem:[#allocation12 + $0x310] sm:$0xff] }
  0xbe   : > { %6180 = vst [vmem:[#allocation76_spill] sm:$0xff] %v4086_v51  ;;  %v4108_v25 = vld [vmem:[#allocation12 + $0x2f0] sm:$0xff] }
  0xbf   : > { %6181 = vst [vmem:[#allocation77_spill] sm:$0xff] %v4090_v43  ;;  %1021 = vmatpush.msrb.mxu3 %v4084_v59  ;;  %980 = vmatpush.msrb.mxu1 %v4086_v51  ;;  %v4113_v59 = vld [vmem:[#allocation12 + $0x2d0] sm:$0xff]  ;;  %v4163_v51 = vld [vmem:[#allocation12 + $0x160] sm:$0xff] }
  0xc0   : > { %6182 = vst [vmem:[#allocation78_spill] sm:$0xff] %v4092_v33 }
  0xc1   : > { %6183 = vst [vmem:[#allocation79_spill] sm:$0xff] %v4096_v35  ;;  %1022 = vmatpush.msrb.mxu3 %v4090_v43  ;;  %981 = vmatpush.msrb.mxu1 %v4092_v33  ;;  %v4115_v43 = vld [vmem:[#allocation12 + $0x2d8] sm:$0xff]  ;;  %v4119_v33 = vld [vmem:[#allocation12 + $0x2b0] sm:$0xff] }
  0xc2   : > { %6184 = vst [vmem:[#allocation80_spill] sm:$0xff] %v4098_v15 }
  0xc3   : > { %6185 = vst [vmem:[#allocation81_spill] sm:$0xff] %v4102_v2  ;;  %1023 = vmatpush.msrb.mxu3 %v4096_v35  ;;  %982 = vmatpush.msrb.mxu1 %v4098_v15  ;;  %v4121_v35 = vld [vmem:[#allocation12 + $0x2b8] sm:$0xff]  ;;  %v4155_v15 = vld [vmem:[#allocation12 + $0x188] sm:$0xff] }
  0xc4   : > { %6186 = vst [vmem:[#allocation82_spill] sm:$0xff] %v4104_v23 }
  0xc5   : > { %6187 = vst [vmem:[#allocation83_spill] sm:$0xff] %v4108_v25  ;;  %1024 = vmatpush.msrb.mxu3 %v4102_v2  ;;  %983 = vmatpush.msrb.mxu1 %v4104_v23  ;;  %v4125_v2 = vld [vmem:[#allocation12 + $0x290] sm:$0xff]  ;;  %v4127_v23 = vld [vmem:[#allocation12 + $0x298] sm:$0xff] }
  0xc6   : > { %6188 = vst [vmem:[#allocation84_spill] sm:$0xff] %v4113_v59 }
  0xc7   : > { %984 = vmatpush.msrb.mxu1 %v4108_v25  ;;  %6189 = vst [vmem:[#allocation85_spill] sm:$0xff] %v4115_v43  ;;  %1025 = vmatpush.msrb.mxu3 %v4115_v43  ;;  %v4131_v25 = vld [vmem:[#allocation12 + $0x270] sm:$0xff]  ;;  %v4137_v43 = vld [vmem:[#allocation12 + $0x1a0] sm:$0xff] }
  0xc8   : > { %6190 = vst [vmem:[#allocation86_spill] sm:$0xff] %v4119_v33  ;;  %878 = vmatpush.msra.mxu0 %v4137_v43 }
  0xc9   : > { %985 = vmatpush.msrb.mxu1 %v4113_v59  ;;  %6191 = vst [vmem:[#allocation87_spill] sm:$0xff] %v4121_v35  ;;  %1026 = vmatpush.msrb.mxu3 %v4121_v35  ;;  %v4133_v59 = vld [vmem:[#allocation12 + $0x278] sm:$0xff]  ;;  %v4141_v35 = vld [vmem:[#allocation12 + $0x250] sm:$0xff] }
  0xca   : > { %6192 = vst [vmem:[#allocation88_spill] sm:$0xff] %v4125_v2 }
  0xcb   : > { %986 = vmatpush.msrb.mxu1 %v4119_v33  ;;  %6193 = vst [vmem:[#allocation89_spill] sm:$0xff] %v4127_v23  ;;  %1027 = vmatpush.msrb.mxu3 %v4127_v23  ;;  %v4139_v33 = vld [vmem:[#allocation12 + $0x1a8] sm:$0xff]  ;;  %v4149_v23 = vld [vmem:[#allocation12 + $0x230] sm:$0xff] }
  0xcc   : > { %6194 = vst [vmem:[#allocation90_spill] sm:$0xff] %v4131_v25  ;;  %918 = vmatpush.msra.mxu2 %v4139_v33 }
  0xcd   : > { %987 = vmatpush.msrb.mxu1 %v4125_v2  ;;  %6195 = vst [vmem:[#allocation91_spill] sm:$0xff] %v4133_v59  ;;  %1028 = vmatpush.msrb.mxu3 %v4133_v59  ;;  %v4145_v2 = vld [vmem:[#allocation12 + $0x258] sm:$0xff]  ;;  %v4153_v59 = vld [vmem:[#allocation12 + $0x180] sm:$0xff] }
  0xce   : > { %6196 = vst [vmem:[#allocation92_spill] sm:$0xff] %v4137_v43  ;;  %879 = vmatpush.msra.mxu0 %v4153_v59  ;;  %919 = vmatpush.msra.mxu2 %v4155_v15  ;;  %v4159_v43 = vld [vmem:[#allocation12 + $0x210] sm:$0xff] }
  0xcf   : > { %988 = vmatpush.msrb.mxu1 %v4131_v25  ;;  %6197 = vst [vmem:[#allocation93_spill] sm:$0xff] %v4139_v33  ;;  %1029 = vmatpush.msrb.mxu3 %v4145_v2  ;;  %v4151_v25 = vld [vmem:[#allocation12 + $0x238] sm:$0xff] }
  0xd0   : > { %6198 = vst [vmem:[#allocation94_spill] sm:$0xff] %v4141_v35  ;;  %v4161_v33 = vld [vmem:[#allocation12 + $0x218] sm:$0xff]  ;;  %880 = vmatpush.msra.mxu0 %v4163_v51 }
  0xd1   : > { %6199 = vst [vmem:[#allocation95_spill] sm:$0xff] %v4145_v2  ;;  %989 = vmatpush.msrb.mxu1 %v4141_v35  ;;  %v4165_v35 = vld [vmem:[#allocation12 + $0x168] sm:$0xff]  ;;  %1030 = vmatpush.msrb.mxu3 %v4151_v25 }
  0xd2   : > { %6200 = vst [vmem:[#allocation96_spill] sm:$0xff] %v4149_v23  ;;  %920 = vmatpush.msra.mxu2 %v4165_v35  ;;  %v4171_v2 = vld [vmem:[#allocation2 + $0x8] sm:$0xff] }
  0xd3   : > { %6201 = vst [vmem:[#allocation97_spill] sm:$0xff] %v4151_v25  ;;  %990 = vmatpush.msrb.mxu1 %v4149_v23  ;;  %1031 = vmatpush.msrb.mxu3 %v4161_v33  ;;  %v4181_v23 = vld [vmem:[#allocation12 + $0x120] sm:$0xff]  ;;  %v4183_v25 = vld [vmem:[#allocation12 + $0x128] sm:$0xff] }
  0xd4   : > { %6202 = vst [vmem:[#allocation98_spill] sm:$0xff] %v4153_v59  ;;  %v4173_v59 = vld [vmem:[#allocation12 + $0x140] sm:$0xff]  ;;  %912 = vmatmul.f32.vlgmr.msra.gmra.mxu1 %v4171_v2  ;;  %952 = vmatmul.f32.vlgmr.msra.gmra.mxu3 %v4171_v2 }
  0xd5   : > { %6203 = vst [vmem:[#allocation99_spill] sm:$0xff] %v4155_v15  ;;  %v4175_v15 = vld [vmem:[#allocation12 + $0x148] sm:$0xff]  ;;  %991 = vmatpush.msrb.mxu1 %v4159_v43  ;;  %881 = vmatpush.msra.mxu0 %v4173_v59 }
  0xd6   : > { %6204 = vst [vmem:[#allocation100_spill] sm:$0xff] %v4159_v43  ;;  %921 = vmatpush.msra.mxu2 %v4175_v15  ;;  %v4191_v43 = vld [vmem:[#allocation12 + $0x108] sm:$0xff]  ;;  %1177 = vmatpush.msra.mxu3 %v3746_v6  ;;  %v4213_v6 = vld [vmem:[#allocation12 + $0xa0] sm:$0xff] }
  0xd7   : > { %6205 = vst [vmem:[#allocation101_spill] sm:$0xff] %v4165_v35  ;;  %882 = vmatpush.msra.mxu0 %v4181_v23  ;;  %v4189_v35 = vld [vmem:[#allocation12 + $0x100] sm:$0xff]  ;;  %1137 = vmatpush.msra.mxu1 %v3751_v11  ;;  %v4207_v11 = vld [vmem:[#allocation12 + $0xc8] sm:$0xff] }
  0xd8   : > { %6206 = vst [vmem:[#allocation102_spill] sm:$0xff] %v4173_v59  ;;  %922 = vmatpush.msra.mxu2 %v4183_v25  ;;  %v4199_v59 = vld [vmem:[#allocation12 + $0xe8] sm:$0xff]  ;;  %1178 = vmatpush.msra.mxu3 %v3749_v8  ;;  %v4221_v8 = vld [vmem:[#allocation12 + $0x80] sm:$0xff] }
  0xd9   : > { %6207 = vst [vmem:[#allocation103_spill] sm:$0xff] %v4175_v15  ;;  %883 = vmatpush.msra.mxu0 %v4189_v35  ;;  %v4197_v15 = vld [vmem:[#allocation12 + $0xe0] sm:$0xff]  ;;  %1138 = vmatpush.msra.mxu1 %v3756_v14  ;;  %v4215_v14 = vld [vmem:[#allocation12 + $0xa8] sm:$0xff] }
  0xda   : > { %6208 = vst [vmem:[#allocation104_spill] sm:$0xff] %v4183_v25  ;;  %923 = vmatpush.msra.mxu2 %v4191_v43  ;;  %v4205_v25 = vld [vmem:[#allocation12 + $0xc0] sm:$0xff]  ;;  %1179 = vmatpush.msra.mxu3 %v3754_v12 }
  0xdb   : > { %884 = vmatpush.msra.mxu0 %v4197_v15  ;;  %1139 = vmatpush.msra.mxu1 %v3762_v18  ;;  %v4223_v18 = vld [vmem:[#allocation12 + $0x88] sm:$0xff]  ;;  %v4229_v12 = vld [vmem:[#allocation12 + $0x60] sm:$0xff] }
  0xdc   : > { %924 = vmatpush.msra.mxu2 %v4199_v59  ;;  %1180 = vmatpush.msra.mxu3 %v3759_v16  ;;  %v4237_v16 = vld [vmem:[#allocation12 + $0x40] sm:$0xff] }
  0xdd   : > { %885 = vmatpush.msra.mxu0 %v4205_v25  ;;  %1140 = vmatpush.msra.mxu1 %v3768_v22  ;;  %v4231_v22 = vld [vmem:[#allocation12 + $0x68] sm:$0xff]  ;;  %6210 = vst [vmem:[#allocation106_spill] sm:$0xff] %v4237_v16 }
  0xde   : > { %925 = vmatpush.msra.mxu2 %v4207_v11  ;;  %1181 = vmatpush.msra.mxu3 %v3765_v20  ;;  %6209 = vst [vmem:[#allocation105_spill] sm:$0xff] %v4231_v22  ;;  %v4245_v20 = vld [vmem:[#allocation13] sm:$0xf] }
  0xdf   : > { %886 = vmatpush.msra.mxu0 %v4213_v6  ;;  %1141 = vmatpush.msra.mxu1 %v3774_v26  ;;  %v4239_v26 = vld [vmem:[#allocation12 + $0x48] sm:$0xff] }
  0xe0   : > { %926 = vmatpush.msra.mxu2 %v4215_v14  ;;  %1182 = vmatpush.msra.mxu3 %v3771_v24  ;;  %6211 = vst [vmem:[#allocation107_spill] sm:$0xff] %v4239_v26  ;;  %v4249_v24 = vld [vmem:[#allocation12 + $0x28] sm:$0xff] }
  0xe1   : > { %887 = vmatpush.msra.mxu0 %v4221_v8  ;;  %1142 = vmatpush.msra.mxu1 %v3780_v30  ;;  %v4247_v30 = vld [vmem:[#allocation12 + $0x20] sm:$0xff]  ;;  %6213 = vst [vmem:[#allocation109_spill] sm:$0xff] %v4249_v24 }
  0xe2   : > { %927 = vmatpush.msra.mxu2 %v4223_v18  ;;  %1183 = vmatpush.msra.mxu3 %v3777_v28  ;;  %6212 = vst [vmem:[#allocation108_spill] sm:$0xff] %v4247_v30  ;;  %v4257_v28 = vld [vmem:[#allocation12 + $0x8] sm:$0xff] }
  0xe3   : > { %888 = vmatpush.msra.mxu0 %v4229_v12  ;;  %1143 = vmatpush.msra.mxu1 %v3786_v34  ;;  %v4255_v34 = vld [vmem:[#allocation12] sm:$0xff]  ;;  %6215 = vst [vmem:[#allocation111_spill] sm:$0xff] %v4257_v28 }
  0xe4   : > { %928 = vmatpush.msra.mxu2 %v4231_v22  ;;  %1184 = vmatpush.msra.mxu3 %v3783_v32  ;;  %6214 = vst [vmem:[#allocation110_spill] sm:$0xff] %v4255_v34  ;;  %v4265_v32 = vld [vmem:[#allocation12 + $0x1f0] sm:$0xff] }
  0xe5   : > { %889 = vmatpush.msra.mxu0 %v4237_v16  ;;  %1144 = vmatpush.msra.mxu1 %v3792_v38  ;;  %v630_v16 = vperm.slane %v4245_v20, 1  ;;  %6216 = vst [vmem:[#allocation112_spill] sm:$0xff] %v4265_v32  ;;  %v4267_v38 = vld [vmem:[#allocation12 + $0x1f8] sm:$0xff]  ;;  %v4279_v22 = vld [vmem:[#allocation12 + $0x1b0] sm:$0xff] }
  0xe6   : > { %929 = vmatpush.msra.mxu2 %v4239_v26  ;;  %1185 = vmatpush.msra.mxu3 %v3789_v36  ;;  %v629_v26 = vperm.slane %v4245_v20, 0  ;;  %6217 = vst [vmem:[#allocation113_spill] sm:$0xff] %v4267_v38 }
  0xe7   : > { %890 = vmatpush.msra.mxu0 %v4247_v30  ;;  %1145 = vmatpush.msra.mxu1 %v3798_v42  ;;  %v4273_v42 = vld [vmem:[#allocation12 + $0x1d8] sm:$0xff] }
  0xe8   : > { %930 = vmatpush.msra.mxu2 %v4249_v24  ;;  %v4271_v24 = vld [vmem:[#allocation12 + $0x1d0] sm:$0xff]  ;;  %6219 = vst [vmem:[#allocation115_spill] sm:$0xff] %v4273_v42  ;;  %1186 = vmatpush.msra.mxu3 %v3795_v40 }
  0xe9   : > { %891 = vmatpush.msra.mxu0 %v4255_v34  ;;  %6218 = vst [vmem:[#allocation114_spill] sm:$0xff] %v4271_v24  ;;  %1146 = vmatpush.msra.mxu1 %v3804_v46 }
  0xea   : > { %931 = vmatpush.msra.mxu2 %v4257_v28  ;;  %1187 = vmatpush.msra.mxu3 %v3801_v44 }
  0xeb   : > { %956 = vmatpush.msrb.mxu0 %v4265_v32  ;;  %v4281_v32 = vld [vmem:[#allocation12 + $0x1b8] sm:$0xff]  ;;  %1147 = vmatpush.msra.mxu1 %v3810_v50  ;;  %v4295_v50 = vld [vmem:[#allocation12 + $0x170] sm:$0xff] }
  0xec   : > { %996 = vmatpush.msrb.mxu2 %v4267_v38  ;;  %1188 = vmatpush.msra.mxu3 %v3807_v48  ;;  %v4303_v48 = vld [vmem:[#allocation12 + $0x150] sm:$0xff] }
  0xed   : > { %957 = vmatpush.msrb.mxu0 %v4271_v24  ;;  %v4287_v24 = vld [vmem:[#allocation12 + $0x190] sm:$0xff]  ;;  %1148 = vmatpush.msra.mxu1 %v3816_v54  ;;  %v4305_v54 = vld [vmem:[#allocation12 + $0x158] sm:$0xff] }
  0xee   : > { %997 = vmatpush.msrb.mxu2 %v4273_v42  ;;  %v4289_v42 = vld [vmem:[#allocation12 + $0x198] sm:$0xff]  ;;  %1189 = vmatpush.msra.mxu3 %v3813_v52  ;;  %v4311_v52 = vld [vmem:[#allocation12 + $0x130] sm:$0xff] }
  0xef   : > { %958 = vmatpush.msrb.mxu0 %v4279_v22  ;;  %1149 = vmatpush.msra.mxu1 %v3822_v58  ;;  %v4313_v58 = vld [vmem:[#allocation12 + $0x138] sm:$0xff] }
  0xf0   : > { %998 = vmatpush.msrb.mxu2 %v4281_v32  ;;  %1190 = vmatpush.msra.mxu3 %v3819_v56  ;;  %v4321_v56 = vld [vmem:[#allocation12 + $0x118] sm:$0xff] }
  0xf1   : > { %959 = vmatpush.msrb.mxu0 %v4287_v24  ;;  %1150 = vmatpush.msra.mxu1 %v3828_v62  ;;  %v4319_v62 = vld [vmem:[#allocation12 + $0x110] sm:$0xff] }
  0xf2   : > { %999 = vmatpush.msrb.mxu2 %v4289_v42  ;;  %1191 = vmatpush.msra.mxu3 %v3825_v60  ;;  %v4330_v60 = vld [vmem:[#allocation12 + $0xf8] sm:$0xff] }
  0xf3   : > { %960 = vmatpush.msrb.mxu0 %v4295_v50  ;;  %1151 = vmatpush.msra.mxu1 %v3835_v3  ;;  %v4327_v3 = vld [vmem:[#allocation12 + $0xf0] sm:$0xff] }
  0xf4   : > { %1192 = vmatpush.msra.mxu3 %v3831_v0  ;;  %992 = vmatmul.f32.vlgmr.msrb.gmra.mxu1 %v4171_v2 }
  0xf5   : > { %961 = vmatpush.msrb.mxu0 %v4303_v48  ;;  %1152 = vmatpush.msra.mxu1 %v3840_v9  ;;  %v4341_v9 = vld [vmem:[#allocation12 + $0xd0] sm:$0xff] }
  0xf6   : > { %1032 = vmatmul.f32.vlgmr.msrb.gmra.mxu3 %v4171_v2  ;;  %v4351_v2 = vld [vmem:[#allocation12 + $0xb0] sm:$0xff] }
  0xf7   : > { %962 = vmatpush.msrb.mxu0 %v4311_v52  ;;  %1217 = vmatpush.msrb.mxu1 %v3846_v17  ;;  %v4353_v17 = vld [vmem:[#allocation12 + $0xb8] sm:$0xff] }
  0xf8   : > { %1257 = vmatpush.msrb.mxu3 %v3837_v4  ;;  %6220 = vst [vmem:[#allocation116_spill] sm:$0xff] %v4353_v17  ;;  %v4359_v4 = vld [vmem:[#allocation12 + $0x90] sm:$0xff] }
  0xf9   : > { %v694_v34 = vpop.f32.mrf.mxu2  ;;  %963 = vmatpush.msrb.mxu0 %v4319_v62  ;;  %1218 = vmatpush.msrb.mxu1 %v3855_v27  ;;  %6221 = vst [vmem:[#allocation117_spill] sm:$0xff] %v4359_v4  ;;  %v4369_v27 = vld [vmem:[#allocation12 + $0x78] sm:$0xff] }
  0xfa   : > { %v695_v30 = vadd.f32 %v694_v34, %v630_v16  ;;  %1258 = vmatpush.msrb.mxu3 %v3842_v10  ;;  %v4367_v10 = vld [vmem:[#allocation12 + $0x70] sm:$0xff]  ;;  %6224 = vst [vmem:[#allocation120_spill] sm:$0xff] %v4369_v27 }
  0xfb   : > { %v654_v36 = vpop.f32.mrf.mxu0  ;;  %v714_v38 = vpop.f32.mrf.mxu3  ;;  %964 = vmatpush.msrb.mxu0 %v4327_v3  ;;  %1219 = vmatpush.msrb.mxu1 %v3865_v37  ;;  %6223 = vst [vmem:[#allocation119_spill] sm:$0xff] %v4367_v10 }
  0xfc   : > { %v655_v28 = vadd.f32 %v654_v36, %v629_v26  ;;  %v715_v46 = vadd.f32 %v714_v38, %v695_v30  ;;  %v4297_v26 = vld [vmem:[#allocation12 + $0x178] sm:$0xff]  ;;  %1259 = vmatpush.msrb.mxu3 %v3848_v19 }
  0xfd   : > { %v674_v40 = vpop.f32.mrf.mxu1  ;;  %1000 = vmatpush.msrb.mxu2 %v4297_v26  ;;  %v4343_v36 = vld [vmem:[#allocation12 + $0xd8] sm:$0xff]  ;;  %965 = vmatpush.msrb.mxu0 %v4341_v9 }
  0xfe   : > { %v675_v16 = vadd.f32 %v674_v40, %v655_v28  ;;  %v2696_v44 = vmul.f32 -1.442695, %v715_v46  ;;  %v4361_v40 = vld [vmem:[#allocation12 + $0x98] sm:$0xff]  ;;  %1220 = vmatpush.msrb.mxu1 %v3871_v45  ;;  %1260 = vmatpush.msrb.mxu3 %v3859_v31  ;;  %v4371_v46 = vld [vmem:[#allocation12 + $0x50] sm:$0xff]  ;;  %v631_v31 = vperm.slane %v4245_v20, 2 }
  0xff   : > { %1001 = vmatpush.msrb.mxu2 %v4305_v54  ;;  %966 = vmatpush.msrb.mxu0 %v4351_v2  ;;  %6222 = vst [vmem:[#allocation118_spill] sm:$0xff] %v4361_v40  ;;  %v4377_v19 = vld [vmem:[#allocation12 + $0x58] sm:$0xff] }
 0x100   : > { %v2695_v30 = vmul.f32 -1.442695, %v675_v16  ;;  %2837 = vpow2.f32 %v2696_v44  ;;  %6225 = vst [vmem:[#allocation121_spill] sm:$0xff] %v4377_v19  ;;  %v632_v44 = vperm.slane %v4245_v20, 3  ;;  %1221 = vmatpush.msrb.mxu1 %v3877_v53  ;;  %1261 = vmatpush.msrb.mxu3 %v3868_v41  ;;  %v4397_v20 = vld [vmem:[#allocation12 + $0x10] sm:$0xff]  ;;  %v4399_v53 = vld [vmem:[#allocation12 + $0x18] sm:$0xff] }
 0x101   : > { %1002 = vmatpush.msrb.mxu2 %v4313_v58  ;;  %967 = vmatpush.msrb.mxu0 %v4359_v4 }
 0x102   : > { %2839 = vpow2.f32 %v2695_v30  ;;  %v4387_v30 = vld [vmem:[#allocation12 + $0x30] sm:$0xff]  ;;  %1222 = vmatpush.msrb.mxu1 %v3885_v61  ;;  %1262 = vmatpush.msrb.mxu3 %v3874_v49 }
 0x103   : > { %1003 = vmatpush.msrb.mxu2 %v4321_v56  ;;  %968 = vmatpush.msrb.mxu0 %v4367_v10 }
 0x104   : > { %1223 = vmatpush.msrb.mxu1 %v3891_v5  ;;  %1263 = vmatpush.msrb.mxu3 %v3880_v57 }
 0x105   : > { %1004 = vmatpush.msrb.mxu2 %v4330_v60  ;;  %969 = vmatpush.msrb.mxu0 %v4371_v46 }
 0x106   : > { %v2838_v34 = vpop.eup %2837  ;;  %1224 = vmatpush.msrb.mxu1 %v3897_v21  ;;  %1264 = vmatpush.msrb.mxu3 %v3888_v1 }
 0x107   : > { %v4333_v38 = vadd.f32 1.0, %v2838_v34  ;;  %1005 = vmatpush.msrb.mxu2 %v4343_v36  ;;  %v4389_v34 = vld [vmem:[#allocation12 + $0x38] sm:$0xff]  ;;  %970 = vmatpush.msrb.mxu0 %v4387_v30 }
 0x108   : > { %v2840_v28 = vpop.eup %2839  ;;  %1225 = vmatpush.msrb.mxu1 %v3903_v39  ;;  %1265 = vmatpush.msrb.mxu3 %v3894_v13 }
 0x109   : > { %v4337_v0 = vadd.f32 1.0, %v2840_v28  ;;  %2841 = vrcp.f32 %v4333_v38  ;;  %1006 = vmatpush.msrb.mxu2 %v4353_v17  ;;  %971 = vmatpush.msrb.mxu0 %v4397_v20  ;;  %vm825_vm0 = vweird.f32 %v4333_v38  ;;  %v831_v1 = vand.u32 2147483648, %v4333_v38 }
 0x10b   : > { %2843 = vrcp.f32 %v4337_v0  ;;  %1007 = vmatpush.msrb.mxu2 %v4361_v40  ;;  %vm806_vm2 = vweird.f32 %v4337_v0  ;;  %v812_v21 = vand.u32 2147483648, %v4337_v0  ;;  %v810_v13 = vand.u32 2147483647, %v4337_v0 }
 0x10d   : > { %1008 = vmatpush.msrb.mxu2 %v4369_v27  ;;  %vm811_vm6 = vcmp.eq.f32.partialorder %v810_v13, 8.507059e+37 }
 0x10f   : > { %v4373_v37 = vpop.eup %2841  ;;  %1009 = vmatpush.msrb.mxu2 %v4377_v19 }
 0x110   : > { %v821_v45 = vmul.f32 %v4373_v37, %v4333_v38  ;;  %vm826_vm1 = vweird.f32 %v4373_v37 }
 0x111   : > { %v4379_v16 = vpop.eup %2843  ;;  %v734_v27 = vpop.f32.mrf.mxu0  ;;  %1010 = vmatpush.msrb.mxu2 %v4389_v34  ;;  %vm4421_vm4 = vmor %vm825_vm0, %vm826_vm1 }
 0x112   : > { %v802_v28 = vmul.f32 %v4379_v16, %v4337_v0  ;;  %v822_v10 = vsub.f32 1.0, %v821_v45  ;;  %v735_v4 = vadd.f32 %v734_v27, %v631_v31  ;;  %vm807_vm3 = vweird.f32 %v4379_v16 }
 0x113   : > { %v754_v61 = vpop.f32.mrf.mxu1  ;;  %1011 = vmatpush.msrb.mxu2 %v4399_v53  ;;  %vm4429_vm5 = vmor %vm806_vm2, %vm807_vm3 }
 0x114   : > { %v803_v41 = vsub.f32 1.0, %v802_v28  ;;  %v823_v45 = vmul.f32 %v4373_v37, %v822_v10  ;;  %v755_v57 = vadd.f32 %v754_v61, %v735_v4  ;;  %v6233_v28 = vld [vmem:[#allocation22_spill] sm:$0xff]  ;;  %v813_v61 = vor.u32 1.1754944e-38, %v812_v21  ;;  %v855_v21 = vld [vmem:[#allocation3 + $0x8] sm:$0xff] }
 0x115   : > { %v774_v40 = vpop.f32.mrf.mxu2  ;;  %v6238_v4 = vld [vmem:[#allocation31_spill] sm:$0xff] }
 0x116   : > { %v775_v17 = vadd.f32 %v774_v40, %v632_v44  ;;  %v804_v27 = vmul.f32 %v4379_v16, %v803_v41  ;;  %v6227_v40 = vld [vmem:[#allocation21_spill] sm:$0xff]  ;;  %v824_v10 = vadd.f32 %v4373_v37, %v823_v45  ;;  %v832_v41 = vor.u32 1.1754944e-38, %v831_v1 }
 0x117   : > { %v794_v19 = vpop.f32.mrf.mxu3  ;;  %1266 = vmatpush.msrb.mxu3 %v6227_v40  ;;  %v6232_v44 = vld [vmem:[#allocation25_spill] sm:$0xff] }
 0x118   : > { %v795_v49 = vadd.f32 %v794_v19, %v775_v17  ;;  %v6226_v17 = vld [vmem:[#allocation23_spill] sm:$0xff]  ;;  %v805_v39 = vadd.f32 %v4379_v16, %v804_v27  ;;  %v829_v19 = vand.u32 2147483647, %v4333_v38  ;;  %v828_v38 = vsel %vm4421_vm4, %v4373_v37, %v824_v10  ;;  %v6235_v27 = vld [vmem:[#allocation26_spill] sm:$0xff] }
 0x119   : > { %1226 = vmatpush.msrb.mxu1 %v6226_v17  ;;  %1267 = vmatpush.msrb.mxu3 %v6233_v28  ;;  %v6237_v17 = vld [vmem:[#allocation27_spill] sm:$0xff] }
 0x11a   : > { %v2697_v5 = vmul.f32 -1.442695, %v795_v49  ;;  %v6234_v49 = vld [vmem:[#allocation24_spill] sm:$0xff]  ;;  %v809_v0 = vsel %vm4429_vm5, %v4379_v16, %v805_v39  ;;  %vm830_vm7 = vcmp.eq.f32.partialorder %v829_v19, 8.507059e+37  ;;  %v6236_v16 = vld [vmem:[#allocation29_spill] sm:$0xff] }
 0x11b   : > { %1227 = vmatpush.msrb.mxu1 %v6232_v44  ;;  %1268 = vmatpush.msrb.mxu3 %v6234_v49  ;;  %v833_v1 = vsel %vm830_vm7, %v832_v41, %v828_v38  ;;  %v4454_v38 = vld [vmem:[#allocation10 + $0x1e0] sm:$0xff] }
 0x11c   : > { %2845 = vpow2.f32 %v2697_v5  ;;  %v856_v37 = vmul.f32 %v855_v21, %v833_v1  ;;  %v4468_v1 = vld [vmem:[#allocation10 + $0x1a0] sm:$0xff]  ;;  %v4471_v21 = vld [vmem:[#allocation10 + $0x1a8] sm:$0xff] }
 0x11d   : > { %2847 = vtanh.f32 %v755_v57  ;;  %1228 = vmatpush.msrb.mxu1 %v3921_v29  ;;  %1269 = vmatpush.msrb.mxu3 %v6235_v27  ;;  %v814_v29 = vsel %vm811_vm6, %v813_v61, %v809_v0  ;;  %v4460_v27 = vld [vmem:[#allocation10 + $0x1c0] sm:$0xff] }
 0x11f   : > { %1229 = vmatpush.msrb.mxu1 %v3927_v55  ;;  %1270 = vmatpush.msrb.mxu3 %v3924_v47  ;;  %v6239_v55 = vld [vmem:[#allocation28_spill] sm:$0xff] }
 0x121   : > { %1230 = vmatpush.msrb.mxu1 %v3933_v7  ;;  %1271 = vmatpush.msrb.mxu3 %v6237_v17  ;;  %v6243_v17 = vld [vmem:[#allocation32_spill] sm:$0xff] }
 0x122   : > { %v2846_v45 = vpop.eup %2845 }
 0x123   : > { %v839_v57 = vadd.f32 1.0, %v2846_v45  ;;  %v2848_v5 = vpop.eup %2847  ;;  %1231 = vmatpush.msrb.mxu1 %v6236_v16  ;;  %1272 = vmatpush.msrb.mxu3 %v6239_v55  ;;  %v4457_v45 = vld [vmem:[#allocation10 + $0x1e8] sm:$0xff]  ;;  %v6242_v16 = vld [vmem:[#allocation35_spill] sm:$0xff] }
 0x124   : > { %v857_v40 = vmul.f32 %v2848_v5, %v814_v29  ;;  %v6240_v5 = vld [vmem:[#allocation33_spill] sm:$0xff]  ;;  %v6241_v29 = vld [vmem:[#allocation30_spill] sm:$0xff] }
 0x125   : > { %2849 = vrcp.f32 %v839_v57  ;;  %1232 = vmatpush.msrb.mxu1 %v6238_v4  ;;  %v851_v7 = vand.u32 2147483648, %v839_v57  ;;  %v849_v31 = vand.u32 2147483647, %v839_v57  ;;  %vm845_vm9 = vweird.f32 %v839_v57  ;;  %v4482_v4 = vld [vmem:[#allocation10 + $0x160] sm:$0xff]  ;;  %v4485_v55 = vld [vmem:[#allocation10 + $0x168] sm:$0xff] }
 0x126   : > { %v4451_v13 = vadd.f32 %v857_v40, %v856_v37  ;;  %v4476_v37 = vld [vmem:[#allocation10 + $0x180] sm:$0xff]  ;;  %v4479_v40 = vld [vmem:[#allocation10 + $0x188] sm:$0xff] }
 0x127   : > { %v852_v28 = vor.u32 1.1754944e-38, %v851_v7  ;;  %vm850_vm11 = vcmp.eq.f32.partialorder %v849_v31, 8.507059e+37  ;;  %v6245_v7 = vld [vmem:[#allocation34_spill] sm:$0xff]  ;;  %v4499_v31 = vld [vmem:[#allocation10 + $0x128] sm:$0xff] }
 0x128   : > { %2851 = vtanh.f32 %v4451_v13 }
 0x12b   : > { %v2850_v39 = vpop.eup %2849 }
 0x12c   : > { %v841_v10 = vmul.f32 %v2850_v39, %v839_v57  ;;  %vm846_vm8 = vweird.f32 %v2850_v39  ;;  %v4463_v57 = vld [vmem:[#allocation10 + $0x1c8] sm:$0xff] }
 0x12d   : > { %vm847_vm10 = vmor %vm845_vm9, %vm846_vm8 }
 0x12e   : > { %v842_v19 = vsub.f32 1.0, %v841_v10  ;;  %v2852_v61 = vpop.eup %2851  ;;  %v4491_v10 = vld [vmem:[#allocation10 + $0x148] sm:$0xff] }
 0x130   : > { %v843_v47 = vmul.f32 %v2850_v39, %v842_v19  ;;  %v6244_v19 = vld [vmem:[#allocation37_spill] sm:$0xff] }
 0x132   : > { %v844_v44 = vadd.f32 %v2850_v39, %v843_v47  ;;  %v4496_v47 = vld [vmem:[#allocation10 + $0x120] sm:$0xff] }
 0x134   : > { %v848_v41 = vsel %vm847_vm10, %v2850_v39, %v844_v44  ;;  %v4488_v39 = vld [vmem:[#allocation10 + $0x140] sm:$0xff]  ;;  %v6246_v44 = vld [vmem:[#allocation39_spill] sm:$0xff] }
 0x135   : > { %v853_v49 = vsel %vm850_vm11, %v852_v28, %v848_v41  ;;  %v6247_v28 = vld [vmem:[#allocation36_spill] sm:$0xff] }
 0x136   : > { %v860_v0 = vmul.f32 %v2852_v61, %v853_v49  ;;  %v4504_v41 = vld [vmem:[#allocation10 + $0x100] sm:$0xff]  ;;  %v4507_v61 = vld [vmem:[#allocation10 + $0x108] sm:$0xff] }
 0x137   : > { %v6248_v49 = vld [vmem:[#allocation41_spill] sm:$0xff] }
 0x138   : > { %892 = vmatmul.f32.vlgmr.msra.gmra.mxu0 %v860_v0  ;;  %932 = vmatmul.f32.vlgmr.msra.gmra.mxu2 %v860_v0 }
 0x139   : > { %1117 = vmatpush.msra.mxu0 %v4454_v38  ;;  %1157 = vmatpush.msra.mxu2 %v4457_v45 }
 0x13a   : > { %1153 = vmatmul.f32.vlgmr.msra.gmra.mxu1 %v860_v0  ;;  %1193 = vmatmul.f32.vlgmr.msra.gmra.mxu3 %v860_v0 }
 0x13b   : > { %1118 = vmatpush.msra.mxu0 %v4460_v27  ;;  %1158 = vmatpush.msra.mxu2 %v4463_v57 }
 0x13c   : > { %1374 = vmatpush.msra.mxu1 %v6240_v5  ;;  %1414 = vmatpush.msra.mxu3 %v6241_v29  ;;  %v4512_v5 = vld [vmem:[#allocation10 + $0xe0] sm:$0xff]  ;;  %v4515_v29 = vld [vmem:[#allocation10 + $0xe8] sm:$0xff] }
 0x13d   : > { %1119 = vmatpush.msra.mxu0 %v4468_v1  ;;  %1159 = vmatpush.msra.mxu2 %v4471_v21  ;;  %6250 = vst [vmem:[#allocation23_spill] sm:$0xff] %v4512_v5 }
 0x13e   : > { %1375 = vmatpush.msra.mxu1 %v6242_v16  ;;  %1415 = vmatpush.msra.mxu3 %v6243_v17  ;;  %6251 = vst [vmem:[#allocation21_spill] sm:$0xff] %v4515_v29  ;;  %v6252_v16 = vld [vmem:[#allocation43_spill] sm:$0xff]  ;;  %v6253_v17 = vld [vmem:[#allocation40_spill] sm:$0xff] }
 0x13f   : > { %1120 = vmatpush.msra.mxu0 %v4476_v37  ;;  %1160 = vmatpush.msra.mxu2 %v4479_v40 }
 0x140   : > { %972 = vmatmul.f32.vlgmr.msrb.gmra.mxu0 %v860_v0  ;;  %1012 = vmatmul.f32.vlgmr.msrb.gmra.mxu2 %v860_v0 }
 0x141   : > { %1121 = vmatpush.msra.mxu0 %v4482_v4  ;;  %1161 = vmatpush.msra.mxu2 %v4485_v55 }
 0x142   : > { %1233 = vmatmul.f32.vlgmr.msrb.gmra.mxu1 %v860_v0  ;;  %1273 = vmatmul.f32.vlgmr.msrb.gmra.mxu3 %v860_v0  ;;  %v6249_v0 = vld [vmem:[#allocation38_spill] sm:$0xff] }
 0x143   : > { %1122 = vmatpush.msra.mxu0 %v4488_v39  ;;  %1162 = vmatpush.msra.mxu2 %v4491_v10 }
 0x144   : > { %1376 = vmatpush.msra.mxu1 %v6244_v19  ;;  %1416 = vmatpush.msra.mxu3 %v6245_v7  ;;  %v4520_v19 = vld [vmem:[#allocation10 + $0xc0] sm:$0xff]  ;;  %v4523_v7 = vld [vmem:[#allocation10 + $0xc8] sm:$0xff] }
 0x145   : > { %1123 = vmatpush.msra.mxu0 %v4496_v47  ;;  %1163 = vmatpush.msra.mxu2 %v4499_v31  ;;  %6254 = vst [vmem:[#allocation25_spill] sm:$0xff] %v4520_v19 }
 0x146   : > { %1377 = vmatpush.msra.mxu1 %v6246_v44  ;;  %1417 = vmatpush.msra.mxu3 %v6247_v28  ;;  %6255 = vst [vmem:[#allocation22_spill] sm:$0xff] %v4523_v7  ;;  %v6256_v44 = vld [vmem:[#allocation45_spill] sm:$0xff]  ;;  %v6257_v28 = vld [vmem:[#allocation42_spill] sm:$0xff] }
 0x147   : > { %1124 = vmatpush.msra.mxu0 %v4504_v41  ;;  %1164 = vmatpush.msra.mxu2 %v4507_v61 }
 0x148   : > { %1378 = vmatpush.msra.mxu1 %v6248_v49  ;;  %1418 = vmatpush.msra.mxu3 %v6249_v0  ;;  %v4528_v49 = vld [vmem:[#allocation10 + $0xa0] sm:$0xff]  ;;  %v4531_v0 = vld [vmem:[#allocation10 + $0xa8] sm:$0xff] }
 0x149   : > { %1125 = vmatpush.msra.mxu0 %v4512_v5  ;;  %1165 = vmatpush.msra.mxu2 %v4515_v29  ;;  %6258 = vst [vmem:[#allocation24_spill] sm:$0xff] %v4528_v49  ;;  %v6348_v29 = vld [vmem:[#allocation91_spill] sm:$0xff]  ;;  %v6350_v5 = vld [vmem:[#allocation93_spill] sm:$0xff] }
 0x14a   : > { %1379 = vmatpush.msra.mxu1 %v6252_v16  ;;  %1419 = vmatpush.msra.mxu3 %v6253_v17  ;;  %6259 = vst [vmem:[#allocation26_spill] sm:$0xff] %v4531_v0  ;;  %v6260_v16 = vld [vmem:[#allocation47_spill] sm:$0xff]  ;;  %v6261_v17 = vld [vmem:[#allocation44_spill] sm:$0xff] }
 0x14b   : > { %1126 = vmatpush.msra.mxu0 %v4520_v19  ;;  %1166 = vmatpush.msra.mxu2 %v4523_v7  ;;  %v4536_v19 = vld [vmem:[#allocation10 + $0x80] sm:$0xff]  ;;  %v4539_v7 = vld [vmem:[#allocation10 + $0x88] sm:$0xff] }
 0x14c   : > { %1380 = vmatpush.msra.mxu1 %v6256_v44  ;;  %1420 = vmatpush.msra.mxu3 %v6257_v28  ;;  %6262 = vst [vmem:[#allocation29_spill] sm:$0xff] %v4536_v19  ;;  %v6264_v44 = vld [vmem:[#allocation49_spill] sm:$0xff]  ;;  %v6265_v28 = vld [vmem:[#allocation46_spill] sm:$0xff] }
 0x14d   : > { %1127 = vmatpush.msra.mxu0 %v4528_v49  ;;  %1167 = vmatpush.msra.mxu2 %v4531_v0  ;;  %6263 = vst [vmem:[#allocation27_spill] sm:$0xff] %v4539_v7  ;;  %v4544_v49 = vld [vmem:[#allocation10 + $0x60] sm:$0xff] }
 0x14e   : > { %1381 = vmatpush.msra.mxu1 %v6260_v16  ;;  %1421 = vmatpush.msra.mxu3 %v6261_v17  ;;  %6266 = vst [vmem:[#allocation31_spill] sm:$0xff] %v4544_v49  ;;  %v4547_v16 = vld [vmem:[#allocation10 + $0x68] sm:$0xff]  ;;  %v6268_v17 = vld [vmem:[#allocation48_spill] sm:$0xff] }
 0x14f   : > { %1128 = vmatpush.msra.mxu0 %v4536_v19  ;;  %1168 = vmatpush.msra.mxu2 %v4539_v7  ;;  %6267 = vst [vmem:[#allocation28_spill] sm:$0xff] %v4547_v16  ;;  %v4552_v19 = vld [vmem:[#allocation10 + $0x40] sm:$0xff] }
 0x150   : > { %1382 = vmatpush.msra.mxu1 %v6264_v44  ;;  %1422 = vmatpush.msra.mxu3 %v6265_v28  ;;  %6269 = vst [vmem:[#allocation33_spill] sm:$0xff] %v4552_v19  ;;  %v4555_v44 = vld [vmem:[#allocation10 + $0x48] sm:$0xff]  ;;  %v6271_v28 = vld [vmem:[#allocation56_spill] sm:$0xff] }
 0x151   : > { %1129 = vmatpush.msra.mxu0 %v4544_v49  ;;  %1169 = vmatpush.msra.mxu2 %v4547_v16  ;;  %6270 = vst [vmem:[#allocation30_spill] sm:$0xff] %v4555_v44  ;;  %v6272_v7 = vld [vmem:[#allocation52_spill] sm:$0xff]  ;;  %v4563_v16 = vld [vmem:[#allocation10 + $0x28] sm:$0xff] }
 0x152   : > { %1383 = vmatpush.msra.mxu1 %v4013_v63  ;;  %1423 = vmatpush.msra.mxu3 %v6268_v17  ;;  %v4560_v49 = vld [vmem:[#allocation10 + $0x20] sm:$0xff]  ;;  %6274 = vst [vmem:[#allocation32_spill] sm:$0xff] %v4563_v16  ;;  %v4567_v63 = vld [vmem:[%s3724_s13 + $0x8] sm:$0xff]  ;;  %v6275_v17 = vld [vmem:[#allocation58_spill] sm:$0xff] }
 0x153   : > { %1130 = vmatpush.msra.mxu0 %v4552_v19  ;;  %1170 = vmatpush.msra.mxu2 %v4555_v44  ;;  %6273 = vst [vmem:[#allocation35_spill] sm:$0xff] %v4560_v49  ;;  %v6276_v19 = vld [vmem:[#allocation55_spill] sm:$0xff]  ;;  %v4571_v0 = vld [vmem:[#allocation10] sm:$0xff] }
 0x154   : > { %1384 = vmatpush.msra.mxu1 %v6271_v28  ;;  %1424 = vmatpush.msra.mxu3 %v6272_v7  ;;  %6277 = vst [vmem:[#allocation37_spill] sm:$0xff] %v4571_v0  ;;  %v4574_v28 = vld [vmem:[#allocation10 + $0x8] sm:$0xff]  ;;  %v4579_v7 = vld [vmem:[#allocation10 + $0x1f0] sm:$0xff]  ;;  %v6286_v44 = vld [vmem:[#allocation59_spill] sm:$0xff] }
 0x155   : > { %1131 = vmatpush.msra.mxu0 %v4560_v49  ;;  %1171 = vmatpush.msra.mxu2 %v4563_v16  ;;  %6278 = vst [vmem:[#allocation34_spill] sm:$0xff] %v4574_v28  ;;  %v4582_v16 = vld [vmem:[#allocation10 + $0x1f8] sm:$0xff]  ;;  %v6285_v49 = vld [vmem:[#allocation62_spill] sm:$0xff] }
 0x156   : > { %1385 = vmatpush.msra.mxu1 %v6275_v17  ;;  %1425 = vmatpush.msra.mxu3 %v6276_v19  ;;  %6279 = vst [vmem:[#allocation39_spill] sm:$0xff] %v4579_v7  ;;  %v6281_v19 = vld [vmem:[#allocation60_spill] sm:$0xff]  ;;  %v6282_v17 = vld [vmem:[#allocation57_spill] sm:$0xff] }
 0x157   : > { %1132 = vmatpush.msra.mxu0 %v4571_v0  ;;  %1172 = vmatpush.msra.mxu2 %v4574_v28  ;;  %6280 = vst [vmem:[#allocation36_spill] sm:$0xff] %v4582_v16  ;;  %v4587_v0 = vld [vmem:[#allocation10 + $0x1d0] sm:$0xff]  ;;  %v4590_v28 = vld [vmem:[#allocation10 + $0x1d8] sm:$0xff] }
 0x158   : > { %1133 = vmatmul.f32.vlgmr.msra.gmra.mxu0 %v4567_v63  ;;  %1173 = vmatmul.f32.vlgmr.msra.gmra.mxu2 %v4567_v63  ;;  %6283 = vst [vmem:[#allocation41_spill] sm:$0xff] %v4587_v0 }
 0x159   : > { %1197 = vmatpush.msrb.mxu0 %v4579_v7  ;;  %1237 = vmatpush.msrb.mxu2 %v4582_v16  ;;  %6284 = vst [vmem:[#allocation38_spill] sm:$0xff] %v4590_v28  ;;  %v4595_v7 = vld [vmem:[#allocation10 + $0x1b0] sm:$0xff]  ;;  %v4598_v16 = vld [vmem:[#allocation10 + $0x1b8] sm:$0xff] }
 0x15a   : > { %1386 = vmatpush.msra.mxu1 %v6281_v19  ;;  %1426 = vmatpush.msra.mxu3 %v6282_v17  ;;  %6287 = vst [vmem:[#allocation43_spill] sm:$0xff] %v4595_v7  ;;  %v6289_v19 = vld [vmem:[#allocation64_spill] sm:$0xff]  ;;  %v6290_v17 = vld [vmem:[#allocation61_spill] sm:$0xff] }
 0x15b   : > { %1198 = vmatpush.msrb.mxu0 %v4587_v0  ;;  %1238 = vmatpush.msrb.mxu2 %v4590_v28  ;;  %6288 = vst [vmem:[#allocation40_spill] sm:$0xff] %v4598_v16  ;;  %v4603_v0 = vld [vmem:[#allocation10 + $0x190] sm:$0xff]  ;;  %v4606_v28 = vld [vmem:[#allocation10 + $0x198] sm:$0xff] }
 0x15c   : > { %1387 = vmatpush.msra.mxu1 %v6285_v49  ;;  %1427 = vmatpush.msra.mxu3 %v6286_v44  ;;  %6291 = vst [vmem:[#allocation45_spill] sm:$0xff] %v4603_v0  ;;  %v6293_v49 = vld [vmem:[#allocation66_spill] sm:$0xff]  ;;  %v6294_v44 = vld [vmem:[#allocation63_spill] sm:$0xff] }
 0x15d   : > { %1199 = vmatpush.msrb.mxu0 %v4595_v7  ;;  %1239 = vmatpush.msrb.mxu2 %v4598_v16  ;;  %6292 = vst [vmem:[#allocation42_spill] sm:$0xff] %v4606_v28  ;;  %v4611_v7 = vld [vmem:[#allocation10 + $0x170] sm:$0xff]  ;;  %v4614_v16 = vld [vmem:[#allocation10 + $0x178] sm:$0xff] }
 0x15e   : > { %1388 = vmatpush.msra.mxu1 %v6289_v19  ;;  %1428 = vmatpush.msra.mxu3 %v6290_v17  ;;  %6295 = vst [vmem:[#allocation47_spill] sm:$0xff] %v4611_v7  ;;  %v6297_v19 = vld [vmem:[#allocation68_spill] sm:$0xff]  ;;  %v6298_v17 = vld [vmem:[#allocation65_spill] sm:$0xff] }
 0x15f   : > { %1200 = vmatpush.msrb.mxu0 %v4603_v0  ;;  %1240 = vmatpush.msrb.mxu2 %v4606_v28  ;;  %6296 = vst [vmem:[#allocation44_spill] sm:$0xff] %v4614_v16  ;;  %v4619_v0 = vld [vmem:[#allocation10 + $0x150] sm:$0xff]  ;;  %v4622_v28 = vld [vmem:[#allocation10 + $0x158] sm:$0xff] }
 0x160   : > { %1389 = vmatpush.msra.mxu1 %v6293_v49  ;;  %1429 = vmatpush.msra.mxu3 %v6294_v44  ;;  %6299 = vst [vmem:[#allocation49_spill] sm:$0xff] %v4619_v0  ;;  %v6301_v49 = vld [vmem:[#allocation70_spill] sm:$0xff]  ;;  %v6302_v44 = vld [vmem:[#allocation67_spill] sm:$0xff] }
 0x161   : > { %1201 = vmatpush.msrb.mxu0 %v4611_v7  ;;  %1241 = vmatpush.msrb.mxu2 %v4614_v16  ;;  %6300 = vst [vmem:[#allocation46_spill] sm:$0xff] %v4622_v28  ;;  %v4627_v7 = vld [vmem:[#allocation10 + $0x130] sm:$0xff]  ;;  %v4630_v16 = vld [vmem:[#allocation10 + $0x138] sm:$0xff] }
 0x162   : > { %1454 = vmatpush.msrb.mxu1 %v6297_v19  ;;  %1494 = vmatpush.msrb.mxu3 %v6298_v17  ;;  %6303 = vst [vmem:[#allocation48_spill] sm:$0xff] %v4627_v7  ;;  %v6305_v19 = vld [vmem:[#allocation72_spill] sm:$0xff]  ;;  %v6306_v17 = vld [vmem:[#allocation69_spill] sm:$0xff] }
 0x163   : > { %1202 = vmatpush.msrb.mxu0 %v4619_v0  ;;  %1242 = vmatpush.msrb.mxu2 %v4622_v28  ;;  %6304 = vst [vmem:[#allocation56_spill] sm:$0xff] %v4630_v16  ;;  %v4635_v0 = vld [vmem:[#allocation10 + $0x110] sm:$0xff]  ;;  %v4638_v28 = vld [vmem:[#allocation10 + $0x118] sm:$0xff] }
 0x164   : > { %1455 = vmatpush.msrb.mxu1 %v6301_v49  ;;  %1495 = vmatpush.msrb.mxu3 %v6302_v44  ;;  %6307 = vst [vmem:[#allocation52_spill] sm:$0xff] %v4635_v0  ;;  %v6309_v49 = vld [vmem:[#allocation74_spill] sm:$0xff]  ;;  %v6310_v44 = vld [vmem:[#allocation71_spill] sm:$0xff] }
 0x165   : > { %1203 = vmatpush.msrb.mxu0 %v4627_v7  ;;  %1243 = vmatpush.msrb.mxu2 %v4630_v16  ;;  %6308 = vst [vmem:[#allocation58_spill] sm:$0xff] %v4638_v28  ;;  %v4643_v7 = vld [vmem:[#allocation10 + $0xf0] sm:$0xff]  ;;  %v4646_v16 = vld [vmem:[#allocation10 + $0xf8] sm:$0xff] }
 0x166   : > { %1456 = vmatpush.msrb.mxu1 %v6305_v19  ;;  %1496 = vmatpush.msrb.mxu3 %v6306_v17  ;;  %6311 = vst [vmem:[#allocation55_spill] sm:$0xff] %v4643_v7  ;;  %v6313_v19 = vld [vmem:[#allocation76_spill] sm:$0xff]  ;;  %v6314_v17 = vld [vmem:[#allocation73_spill] sm:$0xff] }
 0x167   : > { %1204 = vmatpush.msrb.mxu0 %v4635_v0  ;;  %1244 = vmatpush.msrb.mxu2 %v4638_v28  ;;  %6312 = vst [vmem:[#allocation60_spill] sm:$0xff] %v4646_v16  ;;  %v4651_v0 = vld [vmem:[#allocation10 + $0xd0] sm:$0xff]  ;;  %v4654_v28 = vld [vmem:[#allocation10 + $0xd8] sm:$0xff] }
 0x168   : > { %1457 = vmatpush.msrb.mxu1 %v6309_v49  ;;  %1497 = vmatpush.msrb.mxu3 %v6310_v44  ;;  %6315 = vst [vmem:[#allocation57_spill] sm:$0xff] %v4651_v0  ;;  %v6317_v49 = vld [vmem:[#allocation78_spill] sm:$0xff]  ;;  %v6318_v44 = vld [vmem:[#allocation75_spill] sm:$0xff] }
 0x169   : > { %1205 = vmatpush.msrb.mxu0 %v4643_v7  ;;  %1245 = vmatpush.msrb.mxu2 %v4646_v16  ;;  %6316 = vst [vmem:[#allocation62_spill] sm:$0xff] %v4654_v28  ;;  %v4659_v7 = vld [vmem:[#allocation10 + $0xb0] sm:$0xff]  ;;  %v4662_v16 = vld [vmem:[#allocation10 + $0xb8] sm:$0xff] }
 0x16a   : > { %1458 = vmatpush.msrb.mxu1 %v6313_v19  ;;  %1498 = vmatpush.msrb.mxu3 %v6314_v17  ;;  %6319 = vst [vmem:[#allocation59_spill] sm:$0xff] %v4659_v7  ;;  %v6321_v19 = vld [vmem:[#allocation80_spill] sm:$0xff]  ;;  %v6322_v17 = vld [vmem:[#allocation77_spill] sm:$0xff] }
 0x16b   : > { %1206 = vmatpush.msrb.mxu0 %v4651_v0  ;;  %1246 = vmatpush.msrb.mxu2 %v4654_v28  ;;  %6320 = vst [vmem:[#allocation64_spill] sm:$0xff] %v4662_v16  ;;  %v4667_v0 = vld [vmem:[#allocation10 + $0x90] sm:$0xff]  ;;  %v4670_v28 = vld [vmem:[#allocation10 + $0x98] sm:$0xff] }
 0x16c   : > { %1459 = vmatpush.msrb.mxu1 %v6317_v49  ;;  %1499 = vmatpush.msrb.mxu3 %v6318_v44  ;;  %6323 = vst [vmem:[#allocation61_spill] sm:$0xff] %v4667_v0  ;;  %v6325_v49 = vld [vmem:[#allocation82_spill] sm:$0xff]  ;;  %v6326_v44 = vld [vmem:[#allocation79_spill] sm:$0xff] }
 0x16d   : > { %1207 = vmatpush.msrb.mxu0 %v4659_v7  ;;  %1247 = vmatpush.msrb.mxu2 %v4662_v16  ;;  %6324 = vst [vmem:[#allocation66_spill] sm:$0xff] %v4670_v28  ;;  %v4675_v7 = vld [vmem:[#allocation10 + $0x70] sm:$0xff]  ;;  %v4678_v16 = vld [vmem:[#allocation10 + $0x78] sm:$0xff] }
 0x16e   : > { %1460 = vmatpush.msrb.mxu1 %v6321_v19  ;;  %1500 = vmatpush.msrb.mxu3 %v6322_v17  ;;  %6327 = vst [vmem:[#allocation63_spill] sm:$0xff] %v4675_v7  ;;  %v6329_v19 = vld [vmem:[#allocation83_spill] sm:$0xff]  ;;  %v6330_v17 = vld [vmem:[#allocation81_spill] sm:$0xff] }
 0x16f   : > { %1208 = vmatpush.msrb.mxu0 %v4667_v0  ;;  %1248 = vmatpush.msrb.mxu2 %v4670_v28  ;;  %6328 = vst [vmem:[#allocation68_spill] sm:$0xff] %v4678_v16  ;;  %v4683_v0 = vld [vmem:[#allocation10 + $0x50] sm:$0xff]  ;;  %v4686_v28 = vld [vmem:[#allocation10 + $0x58] sm:$0xff] }
 0x170   : > { %1461 = vmatpush.msrb.mxu1 %v6325_v49  ;;  %1501 = vmatpush.msrb.mxu3 %v6326_v44  ;;  %6331 = vst [vmem:[#allocation65_spill] sm:$0xff] %v4683_v0  ;;  %v6333_v49 = vld [vmem:[#allocation84_spill] sm:$0xff]  ;;  %v6334_v44 = vld [vmem:[#allocation85_spill] sm:$0xff] }
 0x171   : > { %1209 = vmatpush.msrb.mxu0 %v4675_v7  ;;  %1249 = vmatpush.msrb.mxu2 %v4678_v16  ;;  %6332 = vst [vmem:[#allocation70_spill] sm:$0xff] %v4686_v28  ;;  %v4691_v7 = vld [vmem:[#allocation10 + $0x30] sm:$0xff]  ;;  %v4694_v16 = vld [vmem:[#allocation10 + $0x38] sm:$0xff] }
 0x172   : > { %1462 = vmatpush.msrb.mxu1 %v6329_v19  ;;  %1502 = vmatpush.msrb.mxu3 %v6330_v17  ;;  %6335 = vst [vmem:[#allocation67_spill] sm:$0xff] %v4691_v7  ;;  %v6337_v19 = vld [vmem:[#allocation86_spill] sm:$0xff]  ;;  %v6338_v17 = vld [vmem:[#allocation87_spill] sm:$0xff] }
 0x173   : > { %1210 = vmatpush.msrb.mxu0 %v4683_v0  ;;  %1250 = vmatpush.msrb.mxu2 %v4686_v28  ;;  %6336 = vst [vmem:[#allocation72_spill] sm:$0xff] %v4694_v16  ;;  %v4699_v0 = vld [vmem:[#allocation10 + $0x10] sm:$0xff]  ;;  %v4702_v28 = vld [vmem:[#allocation10 + $0x18] sm:$0xff] }
 0x174   : > { %1463 = vmatpush.msrb.mxu1 %v6333_v49  ;;  %1503 = vmatpush.msrb.mxu3 %v6334_v44  ;;  %6339 = vst [vmem:[#allocation69_spill] sm:$0xff] %v4699_v0  ;;  %v6341_v49 = vld [vmem:[#allocation50_spill] sm:$0xff]  ;;  %v6342_v44 = vld [vmem:[#allocation51_spill] sm:$0xff] }
 0x175   : > { %1211 = vmatpush.msrb.mxu0 %v4691_v7  ;;  %1251 = vmatpush.msrb.mxu2 %v4694_v16  ;;  %6340 = vst [vmem:[#allocation74_spill] sm:$0xff] %v4702_v28  ;;  %v6343_v16 = vld [vmem:[#allocation88_spill] sm:$0xff]  ;;  %v6346_v7 = vld [vmem:[#allocation54_spill] sm:$0xff] }
 0x176   : > { %1464 = vmatpush.msrb.mxu1 %v6337_v19  ;;  %1504 = vmatpush.msrb.mxu3 %v6338_v17  ;;  %v6344_v19 = vld [vmem:[#allocation89_spill] sm:$0xff] }
 0x177   : > { %1212 = vmatpush.msrb.mxu0 %v4699_v0  ;;  %1252 = vmatpush.msrb.mxu2 %v4702_v28  ;;  %v6345_v17 = vld [vmem:[#allocation53_spill] sm:$0xff]  ;;  %v6347_v0 = vld [vmem:[#allocation90_spill] sm:$0xff]  ;;  %v6349_v28 = vld [vmem:[#allocation92_spill] sm:$0xff] }
 0x178   : > { %1213 = vmatmul.f32.vlgmr.msrb.gmra.mxu0 %v4567_v63  ;;  %1253 = vmatmul.f32.vlgmr.msrb.gmra.mxu2 %v4567_v63  ;;  %v6351_v63 = vld [vmem:[#allocation94_spill] sm:$0xff] }
 0x179   : > { %1354 = vmatpush.msra.mxu0 %v6341_v49  ;;  %1394 = vmatpush.msra.mxu2 %v6342_v44  ;;  %v6352_v49 = vld [vmem:[#allocation95_spill] sm:$0xff]  ;;  %v6353_v44 = vld [vmem:[#allocation98_spill] sm:$0xff] }
 0x17a   : > { %1465 = vmatpush.msrb.mxu1 %v6343_v16  ;;  %1505 = vmatpush.msrb.mxu3 %v6344_v19  ;;  %v6354_v16 = vld [vmem:[#allocation99_spill] sm:$0xff]  ;;  %v6355_v19 = vld [vmem:[#allocation96_spill] sm:$0xff] }
 0x17b   : > { %1355 = vmatpush.msra.mxu0 %v6345_v17  ;;  %1395 = vmatpush.msra.mxu2 %v6346_v7  ;;  %v6356_v17 = vld [vmem:[#allocation97_spill] sm:$0xff]  ;;  %v6361_v7 = vld [vmem:[#allocation104_spill] sm:$0xff] }
 0x17c   : > { %1466 = vmatpush.msrb.mxu1 %v6347_v0  ;;  %1506 = vmatpush.msrb.mxu3 %v6348_v29  ;;  %v6357_v0 = vld [vmem:[#allocation101_spill] sm:$0xff]  ;;  %v6358_v29 = vld [vmem:[#allocation100_spill] sm:$0xff] }
 0x17d   : > { %1356 = vmatpush.msra.mxu0 %v6349_v28  ;;  %1396 = vmatpush.msra.mxu2 %v6350_v5  ;;  %v6359_v5 = vld [vmem:[#allocation102_spill] sm:$0xff]  ;;  %v6360_v28 = vld [vmem:[#allocation103_spill] sm:$0xff] }
 0x17e   : > { %1467 = vmatpush.msrb.mxu1 %v6351_v63  ;;  %1507 = vmatpush.msrb.mxu3 %v6352_v49 }
 0x17f   : > { %1357 = vmatpush.msra.mxu0 %v6353_v44  ;;  %1397 = vmatpush.msra.mxu2 %v6354_v16 }
 0x180   : > { %1468 = vmatpush.msrb.mxu1 %v6355_v19  ;;  %1508 = vmatpush.msrb.mxu3 %v6356_v17 }
 0x181   : > { %1358 = vmatpush.msra.mxu0 %v4163_v51  ;;  %1398 = vmatpush.msra.mxu2 %v6357_v0  ;;  %v6365_v51 = vld [vmem:[#allocation108_spill] sm:$0xff] }
 0x182   : > { %1469 = vmatpush.msrb.mxu1 %v6358_v29  ;;  %1509 = vmatpush.msrb.mxu3 %v4161_v33  ;;  %v6369_v33 = vld [vmem:[#allocation112_spill] sm:$0xff] }
 0x183   : > { %1359 = vmatpush.msra.mxu0 %v6359_v5  ;;  %1399 = vmatpush.msra.mxu2 %v6360_v28 }
 0x185   : > { %1360 = vmatpush.msra.mxu0 %v4181_v23  ;;  %1400 = vmatpush.msra.mxu2 %v6361_v7  ;;  %v6362_v23 = vld [vmem:[#allocation105_spill] sm:$0xff] }
 0x187   : > { %1361 = vmatpush.msra.mxu0 %v4189_v35  ;;  %1401 = vmatpush.msra.mxu2 %v4191_v43  ;;  %v6363_v43 = vld [vmem:[#allocation106_spill] sm:$0xff] }
 0x188   : > { %v6367_v35 = vld [vmem:[#allocation110_spill] sm:$0xff] }
 0x189   : > { %1362 = vmatpush.msra.mxu0 %v4197_v15  ;;  %1402 = vmatpush.msra.mxu2 %v4199_v59  ;;  %v6364_v15 = vld [vmem:[#allocation107_spill] sm:$0xff]  ;;  %v6366_v59 = vld [vmem:[#allocation109_spill] sm:$0xff] }
 0x18b   : > { %1363 = vmatpush.msra.mxu0 %v4205_v25  ;;  %1403 = vmatpush.msra.mxu2 %v4207_v11  ;;  %v6368_v25 = vld [vmem:[#allocation111_spill] sm:$0xff]  ;;  %v6370_v11 = vld [vmem:[#allocation113_spill] sm:$0xff] }
 0x18d   : > { %1364 = vmatpush.msra.mxu0 %v4213_v6  ;;  %1404 = vmatpush.msra.mxu2 %v4215_v14  ;;  %v6371_v6 = vld [vmem:[#allocation114_spill] sm:$0xff]  ;;  %v6372_v14 = vld [vmem:[#allocation115_spill] sm:$0xff] }
 0x18f   : > { %1365 = vmatpush.msra.mxu0 %v4221_v8  ;;  %1405 = vmatpush.msra.mxu2 %v4223_v18  ;;  %v6373_v8 = vld [vmem:[#allocation116_spill] sm:$0xff]  ;;  %v6374_v18 = vld [vmem:[#allocation117_spill] sm:$0xff] }
 0x191   : > { %1366 = vmatpush.msra.mxu0 %v4229_v12  ;;  %1406 = vmatpush.msra.mxu2 %v6362_v23  ;;  %v6375_v12 = vld [vmem:[#allocation118_spill] sm:$0xff]  ;;  %v4781_v23 = vld [vmem:[#allocation13] sm:$0xf] }
 0x193   : > { %1367 = vmatpush.msra.mxu0 %v6363_v43  ;;  %1407 = vmatpush.msra.mxu2 %v6364_v15 }
 0x195   : > { %1368 = vmatpush.msra.mxu0 %v6365_v51  ;;  %1408 = vmatpush.msra.mxu2 %v6366_v59 }
 0x197   : > { %1369 = vmatpush.msra.mxu0 %v6367_v35  ;;  %1409 = vmatpush.msra.mxu2 %v6368_v25 }
 0x199   : > { %1434 = vmatpush.msrb.mxu0 %v6369_v33  ;;  %1474 = vmatpush.msrb.mxu2 %v6370_v11  ;;  %v1109_v11 = vperm.slane %v4781_v23, 0 }
 0x19b   : > { %1435 = vmatpush.msrb.mxu0 %v6371_v6  ;;  %1475 = vmatpush.msrb.mxu2 %v6372_v14 }
 0x19d   : > { %1436 = vmatpush.msrb.mxu0 %v4279_v22  ;;  %1476 = vmatpush.msrb.mxu2 %v4281_v32  ;;  %v866_v22 = vld [vmem:[#allocation13 + $0x4] sm:$0xf] }
 0x19e   : > { %v6377_v32 = vld [vmem:[#allocation120_spill] sm:$0xff]  ;;  %v870_v19 = vperm.slane %v866_v22, 2 }
 0x19f   : > { %1437 = vmatpush.msrb.mxu0 %v4287_v24  ;;  %1477 = vmatpush.msrb.mxu2 %v4289_v42  ;;  %v6376_v24 = vld [vmem:[#allocation119_spill] sm:$0xff]  ;;  %v868_v42 = vperm.slane %v866_v22, 0 }
 0x1a1   : > { %1438 = vmatpush.msrb.mxu0 %v4295_v50  ;;  %1478 = vmatpush.msrb.mxu2 %v4297_v26  ;;  %v6378_v50 = vld [vmem:[#allocation121_spill] sm:$0xff] }
 0x1a3   : > { %1439 = vmatpush.msrb.mxu0 %v4303_v48  ;;  %1479 = vmatpush.msrb.mxu2 %v4305_v54  ;;  %v913_v54 = vpop.f32.mrf.mxu1 }
 0x1a5   : > { %1440 = vmatpush.msrb.mxu0 %v4311_v52  ;;  %1480 = vmatpush.msrb.mxu2 %v4313_v58  ;;  %v869_v58 = vperm.slane %v866_v22, 1 }
 0x1a7   : > { %1441 = vmatpush.msrb.mxu0 %v4319_v62  ;;  %1481 = vmatpush.msrb.mxu2 %v4321_v56  ;;  %v953_v56 = vpop.f32.mrf.mxu3 }
 0x1a9   : > { %1442 = vmatpush.msrb.mxu0 %v4327_v3  ;;  %1482 = vmatpush.msrb.mxu2 %v4330_v60 }
 0x1ab   : > { %1443 = vmatpush.msrb.mxu0 %v4341_v9  ;;  %1483 = vmatpush.msrb.mxu2 %v4343_v36  ;;  %v993_v7 = vpop.f32.mrf.mxu1 }
 0x1ad   : > { %1444 = vmatpush.msrb.mxu0 %v4351_v2  ;;  %1484 = vmatpush.msrb.mxu2 %v6373_v8  ;;  %v871_v2 = vperm.slane %v866_v22, 3 }
 0x1af   : > { %1445 = vmatpush.msrb.mxu0 %v6374_v18  ;;  %1485 = vmatpush.msrb.mxu2 %v6375_v12  ;;  %v4811_v12 = vld [vmem:[#allocation10 + $0x3a0] sm:$0xff] }
 0x1b1   : > { %1446 = vmatpush.msrb.mxu0 %v6376_v24  ;;  %1486 = vmatpush.msrb.mxu2 %v6377_v32 }
 0x1b3   : > { %1447 = vmatpush.msrb.mxu0 %v4371_v46  ;;  %1487 = vmatpush.msrb.mxu2 %v6378_v50 }
 0x1b5   : > { %1448 = vmatpush.msrb.mxu0 %v4387_v30  ;;  %1488 = vmatpush.msrb.mxu2 %v4389_v34  ;;  %v893_v26 = vpop.f32.mrf.mxu0 }
 0x1b6   : > { %v894_v48 = vadd.f32 %v893_v26, %v868_v42 }
 0x1b7   : > { %1449 = vmatpush.msrb.mxu0 %v4397_v20  ;;  %1489 = vmatpush.msrb.mxu2 %v4399_v53  ;;  %v1033_v20 = vpop.f32.mrf.mxu3 }
 0x1b8   : > { %v914_v52 = vadd.f32 %v913_v54, %v894_v48  ;;  %v1110_v54 = vperm.slane %v4781_v23, 1 }
 0x1ba   : > { %v2698_v62 = vmul.f32 -1.442695, %v914_v52 }
 0x1bb   : > { %v933_v3 = vpop.f32.mrf.mxu2 }
 0x1bc   : > { %2853 = vpow2.f32 %v2698_v62  ;;  %v934_v60 = vadd.f32 %v933_v3, %v869_v58  ;;  %v1154_v3 = vpop.f32.mrf.mxu1 }
 0x1bd   : > { %v973_v17 = vpop.f32.mrf.mxu0 }
 0x1be   : > { %v954_v9 = vadd.f32 %v953_v56, %v934_v60  ;;  %v974_v5 = vadd.f32 %v973_v17, %v870_v19  ;;  %v1095_v56 = vld [vmem:[#allocation3] sm:$0xff] }
 0x1c0   : > { %v2699_v36 = vmul.f32 -1.442695, %v954_v9  ;;  %v994_v59 = vadd.f32 %v993_v7, %v974_v5 }
 0x1c2   : > { %v2854_v46 = vpop.eup %2853  ;;  %2855 = vpow2.f32 %v2699_v36 }
 0x1c3   : > { %v1039_v30 = vadd.f32 1.0, %v2854_v46  ;;  %v1013_v34 = vpop.f32.mrf.mxu2 }
 0x1c4   : > { %v1014_v63 = vadd.f32 %v1013_v34, %v871_v2 }
 0x1c5   : > { %2857 = vrcp.f32 %v1039_v30  ;;  %v1051_v6 = vand.u32 2147483648, %v1039_v30  ;;  %vm1045_vm13 = vweird.f32 %v1039_v30  ;;  %v1049_v8 = vand.u32 2147483647, %v1039_v30 }
 0x1c6   : > { %v1034_v49 = vadd.f32 %v1033_v20, %v1014_v63 }
 0x1c7   : > { %v1052_v26 = vor.u32 1.1754944e-38, %v1051_v6  ;;  %vm1050_vm1 = vcmp.eq.f32.partialorder %v1049_v8, 8.507059e+37  ;;  %v4798_v6 = vld [vmem:[#allocation10 + $0x3e8] sm:$0xff]  ;;  %v4805_v8 = vld [vmem:[#allocation10 + $0x3c0] sm:$0xff] }
 0x1c8   : > { %v2856_v53 = vpop.eup %2855  ;;  %v2700_v44 = vmul.f32 -1.442695, %v1034_v49 }
 0x1c9   : > { %v1058_v16 = vadd.f32 1.0, %v2856_v53  ;;  %v1194_v53 = vpop.f32.mrf.mxu3 }
 0x1ca   : > { %2859 = vpow2.f32 %v2700_v44 }
 0x1cb   : > { %v2858_v0 = vpop.eup %2857  ;;  %2861 = vrcp.f32 %v1058_v16  ;;  %v1070_v18 = vand.u32 2147483648, %v1058_v16  ;;  %v1068_v22 = vand.u32 2147483647, %v1058_v16  ;;  %vm1064_vm0 = vweird.f32 %v1058_v16 }
 0x1cc   : > { %v1041_v29 = vmul.f32 %v2858_v0, %v1039_v30  ;;  %vm1046_vm12 = vweird.f32 %v2858_v0 }
 0x1cd   : > { %vm4784_vm14 = vmor %vm1045_vm13, %vm1046_vm12  ;;  %v1071_v58 = vor.u32 1.1754944e-38, %v1070_v18  ;;  %vm1069_vm3 = vcmp.eq.f32.partialorder %v1068_v22, 8.507059e+37  ;;  %v4808_v18 = vld [vmem:[#allocation10 + $0x3c8] sm:$0xff] }
 0x1ce   : > { %v1042_v28 = vsub.f32 1.0, %v1041_v29  ;;  %v4814_v22 = vld [vmem:[#allocation10 + $0x3a8] sm:$0xff] }
 0x1d0   : > { %v2860_v43 = vpop.eup %2859  ;;  %v1043_v15 = vmul.f32 %v2858_v0, %v1042_v28 }
 0x1d1   : > { %v2862_v51 = vpop.eup %2861  ;;  %v1078_v35 = vadd.f32 1.0, %v2860_v43 }
 0x1d2   : > { %v1060_v25 = vmul.f32 %v2862_v51, %v1058_v16  ;;  %v1044_v33 = vadd.f32 %v2858_v0, %v1043_v15  ;;  %vm1065_vm15 = vweird.f32 %v2862_v51 }
 0x1d3   : > { %2863 = vrcp.f32 %v1078_v35  ;;  %vm1066_vm2 = vmor %vm1064_vm0, %vm1065_vm15  ;;  %v1090_v29 = vand.u32 2147483648, %v1078_v35  ;;  %vm1084_vm5 = vweird.f32 %v1078_v35  ;;  %v1088_v28 = vand.u32 2147483647, %v1078_v35 }
 0x1d4   : > { %v1061_v14 = vsub.f32 1.0, %v1060_v25  ;;  %2865 = vtanh.f32 %v994_v59  ;;  %v1048_v42 = vsel %vm4784_vm14, %v2858_v0, %v1044_v33 }
 0x1d5   : > { %v1134_v24 = vpop.f32.mrf.mxu0  ;;  %v1053_v62 = vsel %vm1050_vm1, %v1052_v26, %v1048_v42  ;;  %v1091_v43 = vor.u32 1.1754944e-38, %v1090_v29  ;;  %vm1089_vm7 = vcmp.eq.f32.partialorder %v1088_v28, 8.507059e+37  ;;  %v4825_v42 = vld [vmem:[#allocation10 + $0x360] sm:$0xff]  ;;  %v1234_v28 = vpop.f32.mrf.mxu1 }
 0x1d6   : > { %v1062_v32 = vmul.f32 %v2862_v51, %v1061_v14  ;;  %v1135_v50 = vadd.f32 %v1134_v24, %v1109_v11  ;;  %v4795_v11 = vld [vmem:[#allocation10 + $0x3e0] sm:$0xff] }
 0x1d7   : > { %v4819_v24 = vld [vmem:[#allocation10 + $0x380] sm:$0xff] }
 0x1d8   : > { %v1063_v48 = vadd.f32 %v2862_v51, %v1062_v32  ;;  %v1155_v36 = vadd.f32 %v1154_v3, %v1135_v50  ;;  %v4822_v32 = vld [vmem:[#allocation10 + $0x388] sm:$0xff]  ;;  %v4831_v26 = vld [vmem:[#allocation10 + $0x340] sm:$0xff]  ;;  %v1112_v3 = vperm.slane %v4781_v23, 3 }
 0x1d9   : > { %v2864_v52 = vpop.eup %2863  ;;  %v4828_v50 = vld [vmem:[#allocation10 + $0x368] sm:$0xff]  ;;  %v4871_v29 = vld [vmem:[#allocation10 + $0x2a0] sm:$0xff] }
 0x1da   : > { %v1067_v60 = vsel %vm1066_vm2, %v2862_v51, %v1063_v48  ;;  %v1080_v9 = vmul.f32 %v2864_v52, %v1078_v35  ;;  %v2866_v2 = vpop.eup %2865  ;;  %v2702_v19 = vmul.f32 -1.442695, %v1155_v36  ;;  %vm1085_vm4 = vweird.f32 %v2864_v52  ;;  %v4834_v48 = vld [vmem:[#allocation10 + $0x348] sm:$0xff] }
 0x1db   : > { %v1072_v46 = vsel %vm1069_vm3, %v1071_v58, %v1067_v60  ;;  %v1174_v30 = vpop.f32.mrf.mxu2  ;;  %v1097_v63 = vmul.f32 %v2866_v2, %v1053_v62  ;;  %vm1086_vm6 = vmor %vm1084_vm5, %vm1085_vm4  ;;  %v4841_v58 = vld [vmem:[#allocation10 + $0x320] sm:$0xff]  ;;  %v4844_v62 = vld [vmem:[#allocation10 + $0x328] sm:$0xff] }
 0x1dc   : > { %v1096_v34 = vmul.f32 %v1095_v56, %v1072_v46  ;;  %v1081_v20 = vsub.f32 1.0, %v1080_v9  ;;  %v1175_v49 = vadd.f32 %v1174_v30, %v1110_v54  ;;  %v1111_v56 = vperm.slane %v4781_v23, 2  ;;  %v4849_v60 = vld [vmem:[#allocation10 + $0x300] sm:$0xff]  ;;  %v4852_v9 = vld [vmem:[#allocation10 + $0x308] sm:$0xff] }
 0x1dd   : > { %v4859_v30 = vld [vmem:[#allocation10 + $0x2e0] sm:$0xff]  ;;  %v4862_v23 = vld [vmem:[#allocation10 + $0x2e8] sm:$0xff] }
 0x1de   : > { %v4791_v44 = vadd.f32 %v1097_v63, %v1096_v34  ;;  %v1082_v16 = vmul.f32 %v2864_v52, %v1081_v20  ;;  %v1195_v17 = vadd.f32 %v1194_v53, %v1175_v49  ;;  %v4865_v49 = vld [vmem:[#allocation10 + $0x2c0] sm:$0xff]  ;;  %v4868_v53 = vld [vmem:[#allocation10 + $0x2c8] sm:$0xff] }
 0x1e0   : > { %2867 = vtanh.f32 %v4791_v44  ;;  %v1083_v0 = vadd.f32 %v2864_v52, %v1082_v16  ;;  %v2703_v5 = vmul.f32 -1.442695, %v1195_v17  ;;  %v1274_v16 = vpop.f32.mrf.mxu3 }
 0x1e1   : > { %2869 = vpow2.f32 %v2702_v19 }
 0x1e2   : > { %v1087_v7 = vsel %vm1086_vm6, %v2864_v52, %v1083_v0  ;;  %2871 = vpow2.f32 %v2703_v5  ;;  %v4874_v5 = vld [vmem:[#allocation10 + $0x2a8] sm:$0xff] }
 0x1e3   : > { %v1092_v51 = vsel %vm1089_vm7, %v1091_v43, %v1087_v7 }
 0x1e6   : > { %v2868_v15 = vpop.eup %2867 }
 0x1e7   : > { %v1100_v59 = vmul.f32 %v2868_v15, %v1092_v51  ;;  %v2870_v25 = vpop.eup %2869  ;;  %v4877_v15 = vld [vmem:[#allocation10 + $0x280] sm:$0xff]  ;;  %v4880_v51 = vld [vmem:[#allocation10 + $0x288] sm:$0xff] }
 0x1e8   : > { %v2872_v33 = vpop.eup %2871  ;;  %v4801_v35 = vadd.f32 1.0, %v2870_v25 }
 0x1e9   : > { %1103 = vst [vmem:[%s3742_s29] sm:$0xff] %v1100_v59  ;;  %1390 = vmatmul.f32.vlgmr.msra.gmra.mxu1 %v1100_v59  ;;  %1430 = vmatmul.f32.vlgmr.msra.gmra.mxu3 %v1100_v59  ;;  %v4803_v14 = vadd.f32 1.0, %v2872_v33  ;;  %v4885_v33 = vld [vmem:[#allocation10 + $0x260] sm:$0xff] }
 0x1ea   : > { %1615 = vmatpush.msra.mxu1 %v4795_v11  ;;  %1655 = vmatpush.msra.mxu3 %v4798_v6  ;;  %2873 = vrcp.f32 %v4801_v35  ;;  %vm1286_vm10 = vweird.f32 %v4801_v35 }
 0x1eb   : > { %2875 = vrcp.f32 %v4803_v14  ;;  %vm1305_vm11 = vweird.f32 %v4803_v14 }
 0x1ec   : > { %1616 = vmatpush.msra.mxu1 %v4805_v8  ;;  %1656 = vmatpush.msra.mxu3 %v4808_v18 }
 0x1ee   : > { %1617 = vmatpush.msra.mxu1 %v4811_v12  ;;  %1657 = vmatpush.msra.mxu3 %v4814_v22 }
 0x1f0   : > { %1618 = vmatpush.msra.mxu1 %v4819_v24  ;;  %1658 = vmatpush.msra.mxu3 %v4822_v32  ;;  %v4837_v54 = vpop.eup %2873 }
 0x1f1   : > { %1470 = vmatmul.f32.vlgmr.msrb.gmra.mxu1 %v1100_v59  ;;  %1510 = vmatmul.f32.vlgmr.msrb.gmra.mxu3 %v1100_v59  ;;  %v4839_v52 = vpop.eup %2875  ;;  %v1282_v36 = vmul.f32 %v4837_v54, %v4801_v35  ;;  %vm1287_vm8 = vweird.f32 %v4837_v54 }
 0x1f2   : > { %1619 = vmatpush.msra.mxu1 %v4825_v42  ;;  %1659 = vmatpush.msra.mxu3 %v4828_v50  ;;  %v1301_v2 = vmul.f32 %v4839_v52, %v4803_v14  ;;  %vm1306_vm9 = vweird.f32 %v4839_v52  ;;  %vm4913_vm12 = vmor %vm1286_vm10, %vm1287_vm8 }
 0x1f3   : > { %v1283_v19 = vsub.f32 1.0, %v1282_v36  ;;  %v4895_v36 = vld [vmem:[#allocation10 + $0x248] sm:$0xff]  ;;  %vm4921_vm13 = vmor %vm1305_vm11, %vm1306_vm9 }
 0x1f4   : > { %1620 = vmatpush.msra.mxu1 %v4831_v26  ;;  %1660 = vmatpush.msra.mxu3 %v4834_v48  ;;  %v1302_v17 = vsub.f32 1.0, %v1301_v2  ;;  %6381 = vst [vmem:[#allocation71_spill] sm:$0xff] %v4895_v36 }
 0x1f5   : > { %v1214_v46 = vpop.f32.mrf.mxu0  ;;  %v1284_v25 = vmul.f32 %v4837_v54, %v1283_v19 }
 0x1f6   : > { %1621 = vmatpush.msra.mxu1 %v4841_v58  ;;  %1661 = vmatpush.msra.mxu3 %v4844_v62  ;;  %v1215_v63 = vadd.f32 %v1214_v46, %v1111_v56  ;;  %v1303_v59 = vmul.f32 %v4839_v52, %v1302_v17  ;;  %v4888_v56 = vld [vmem:[#allocation10 + $0x268] sm:$0xff]  ;;  %v1290_v17 = vand.u32 2147483647, %v4801_v35 }
 0x1f7   : > { %v1285_v2 = vadd.f32 %v4837_v54, %v1284_v25 }
 0x1f8   : > { %1622 = vmatpush.msra.mxu1 %v4849_v60  ;;  %1662 = vmatpush.msra.mxu3 %v4852_v9  ;;  %v1235_v7 = vadd.f32 %v1234_v28, %v1215_v63  ;;  %v1304_v46 = vadd.f32 %v4839_v52, %v1303_v59  ;;  %v1292_v63 = vand.u32 2147483648, %v4801_v35  ;;  %v4928_v59 = vld [vmem:[#allocation10 + $0x208] sm:$0xff]  ;;  %vm1291_vm14 = vcmp.eq.f32.partialorder %v1290_v17, 8.507059e+37  ;;  %v4956_v17 = vld [vmem:[#allocation10 + $0x390] sm:$0xff] }
 0x1f9   : > { %6389 = vst [vmem:[#allocation75_spill] sm:$0xff] %v4928_v59  ;;  %v1289_v35 = vsel %vm4913_vm12, %v4837_v54, %v1285_v2  ;;  %v4943_v54 = vld [vmem:[#allocation10 + $0x3d0] sm:$0xff] }
 0x1fa   : > { %1623 = vmatpush.msra.mxu1 %v4859_v30  ;;  %1663 = vmatpush.msra.mxu3 %v4862_v23  ;;  %6390 = vst [vmem:[#allocation80_spill] sm:$0xff] %v4956_v17 }
 0x1fb   : > { %v1254_v34 = vpop.f32.mrf.mxu2 }
 0x1fc   : > { %v1255_v20 = vadd.f32 %v1254_v34, %v1112_v3  ;;  %1624 = vmatpush.msra.mxu1 %v4865_v49  ;;  %1664 = vmatpush.msra.mxu3 %v4868_v53  ;;  %v4892_v3 = vld [vmem:[#allocation10 + $0x240] sm:$0xff]  ;;  %v1311_v34 = vand.u32 2147483648, %v4803_v14 }
 0x1fe   : > { %v1275_v0 = vadd.f32 %v1274_v16, %v1255_v20  ;;  %1625 = vmatpush.msra.mxu1 %v4871_v29  ;;  %1665 = vmatpush.msra.mxu3 %v4874_v5  ;;  %v4904_v20 = vld [vmem:[#allocation10 + $0x220] sm:$0xff]  ;;  %v4907_v16 = vld [vmem:[#allocation10 + $0x228] sm:$0xff] }
 0x1ff   : > { %6382 = vst [vmem:[#allocation76_spill] sm:$0xff] %v4904_v20 }
 0x200   : > { %v2704_v43 = vmul.f32 -1.442695, %v1275_v0  ;;  %1626 = vmatpush.msra.mxu1 %v4877_v15  ;;  %1666 = vmatpush.msra.mxu3 %v4880_v51  ;;  %6383 = vst [vmem:[#allocation73_spill] sm:$0xff] %v4907_v16  ;;  %v1309_v0 = vand.u32 2147483647, %v4803_v14  ;;  %v1308_v14 = vsel %vm4921_vm13, %v4839_v52, %v1304_v46  ;;  %v4946_v52 = vld [vmem:[#allocation10 + $0x3d8] sm:$0xff] }
 0x202   : > { %2877 = vpow2.f32 %v2704_v43  ;;  %1627 = vmatpush.msra.mxu1 %v4885_v33  ;;  %1667 = vmatpush.msra.mxu3 %v4888_v56  ;;  %v4925_v43 = vld [vmem:[#allocation10 + $0x200] sm:$0xff]  ;;  %vm1310_vm15 = vcmp.eq.f32.partialorder %v1309_v0, 8.507059e+37  ;;  %v4959_v0 = vld [vmem:[#allocation10 + $0x398] sm:$0xff] }
 0x203   : > { %2879 = vtanh.f32 %v1235_v7  ;;  %6388 = vst [vmem:[#allocation78_spill] sm:$0xff] %v4925_v43 }
 0x204   : > { %1628 = vmatpush.msra.mxu1 %v4892_v3  ;;  %1668 = vmatpush.msra.mxu3 %v4895_v36  ;;  %v1312_v36 = vor.u32 1.1754944e-38, %v1311_v34  ;;  %v4952_v34 = vld [vmem:[#allocation10 + $0x3b8] sm:$0xff]  ;;  %6391 = vst [vmem:[#allocation77_spill] sm:$0xff] %v4959_v0 }
 0x206   : > { %1629 = vmatpush.msra.mxu1 %v4904_v20  ;;  %1669 = vmatpush.msra.mxu3 %v4907_v16  ;;  %v4937_v16 = vld [vmem:[#allocation10 + $0x3f0] sm:$0xff]  ;;  %v4940_v20 = vld [vmem:[#allocation10 + $0x3f8] sm:$0xff]  ;;  %v1313_v46 = vsel %vm1310_vm15, %v1312_v36, %v1308_v14 }
 0x207   : > { %v4973_v14 = vld [vmem:[#allocation10 + $0x358] sm:$0xff] }
 0x208   : > { %v2878_v28 = vpop.eup %2877  ;;  %1630 = vmatpush.msra.mxu1 %v4925_v43  ;;  %1670 = vmatpush.msra.mxu3 %v4928_v59  ;;  %v1293_v59 = vor.u32 1.1754944e-38, %v1292_v63  ;;  %v1336_v63 = vmul.f32 %v1313_v46, %v4451_v13  ;;  %6396 = vst [vmem:[#allocation84_spill] sm:$0xff] %v4973_v14 }
 0x209   : > { %v1319_v25 = vadd.f32 1.0, %v2878_v28  ;;  %v2880_v43 = vpop.eup %2879  ;;  %v4949_v28 = vld [vmem:[#allocation10 + $0x3b0] sm:$0xff] }
 0x20a   : > { %1695 = vmatpush.msrb.mxu1 %v4937_v16  ;;  %1735 = vmatpush.msrb.mxu3 %v4940_v20  ;;  %v1294_v2 = vsel %vm1291_vm14, %v1293_v59, %v1289_v35  ;;  %v4967_v59 = vld [vmem:[#allocation10 + $0x378] sm:$0xff]  ;;  %v4970_v35 = vld [vmem:[#allocation10 + $0x350] sm:$0xff] }
 0x20b   : > { %2881 = vrcp.f32 %v1319_v25  ;;  %v1337_v19 = vmul.f32 %v2880_v43, %v1294_v2  ;;  %v4964_v43 = vld [vmem:[#allocation10 + $0x370] sm:$0xff]  ;;  %6394 = vst [vmem:[#allocation83_spill] sm:$0xff] %v4967_v59  ;;  %v1331_v46 = vand.u32 2147483648, %v1319_v25  ;;  %vm1325_vm1 = vweird.f32 %v1319_v25 }
 0x20c   : > { %1696 = vmatpush.msrb.mxu1 %v4943_v54  ;;  %1736 = vmatpush.msrb.mxu3 %v4946_v52  ;;  %6393 = vst [vmem:[#allocation79_spill] sm:$0xff] %v4964_v43 }
 0x20d   : > { %v4962_v7 = vadd.f32 %v1337_v19, %v1336_v63  ;;  %6395 = vst [vmem:[#allocation81_spill] sm:$0xff] %v4970_v35  ;;  %v4977_v19 = vld [vmem:[#allocation10 + $0x330] sm:$0xff]  ;;  %v4980_v63 = vld [vmem:[#allocation10 + $0x338] sm:$0xff] }
 0x20e   : > { %1697 = vmatpush.msrb.mxu1 %v4949_v28  ;;  %1737 = vmatpush.msrb.mxu3 %v4952_v34  ;;  %6397 = vst [vmem:[#allocation85_spill] sm:$0xff] %v4977_v19 }
 0x20f   : > { %6392 = vst [vmem:[#allocation82_spill] sm:$0xff] %v4962_v7  ;;  %2883 = vtanh.f32 %v4962_v7  ;;  %v4995_v7 = vld [vmem:[#allocation10 + $0x2d0] sm:$0xff] }
 0x210   : > { %1698 = vmatpush.msrb.mxu1 %v4956_v17  ;;  %1738 = vmatpush.msrb.mxu3 %v4959_v0  ;;  %6398 = vst [vmem:[#allocation86_spill] sm:$0xff] %v4980_v63  ;;  %v1332_v0 = vor.u32 1.1754944e-38, %v1331_v46  ;;  %v5001_v46 = vld [vmem:[#allocation10 + $0x2b0] sm:$0xff] }
 0x211   : > { %v2882_v36 = vpop.eup %2881  ;;  %6401 = vst [vmem:[#allocation51_spill] sm:$0xff] %v4995_v7 }
 0x212   : > { %1699 = vmatpush.msrb.mxu1 %v4964_v43  ;;  %1739 = vmatpush.msrb.mxu3 %v4967_v59  ;;  %v1321_v13 = vmul.f32 %v2882_v36, %v1319_v25  ;;  %vm1326_vm0 = vweird.f32 %v2882_v36  ;;  %v1329_v43 = vand.u32 2147483647, %v1319_v25  ;;  %v4998_v25 = vld [vmem:[#allocation10 + $0x2d8] sm:$0xff]  ;;  %6403 = vst [vmem:[#allocation89_spill] sm:$0xff] %v5001_v46 }
 0x213   : > { %vm1327_vm2 = vmor %vm1325_vm1, %vm1326_vm0  ;;  %6402 = vst [vmem:[#allocation88_spill] sm:$0xff] %v4998_v25 }
 0x214   : > { %1700 = vmatpush.msrb.mxu1 %v4970_v35  ;;  %1740 = vmatpush.msrb.mxu3 %v4973_v14  ;;  %v1322_v2 = vsub.f32 1.0, %v1321_v13  ;;  %v4983_v35 = vld [vmem:[#allocation10 + $0x310] sm:$0xff]  ;;  %v4986_v14 = vld [vmem:[#allocation10 + $0x318] sm:$0xff]  ;;  %vm1330_vm3 = vcmp.eq.f32.partialorder %v1329_v43, 8.507059e+37 }
 0x215   : > { %6399 = vst [vmem:[#allocation87_spill] sm:$0xff] %v4983_v35  ;;  %v2884_v17 = vpop.eup %2883  ;;  %v6424_v43 = vld [vmem:[#allocation26_spill] sm:$0xff] }
 0x216   : > { %1701 = vmatpush.msrb.mxu1 %v4977_v19  ;;  %1741 = vmatpush.msrb.mxu3 %v4980_v63  ;;  %v1323_v59 = vmul.f32 %v2882_v36, %v1322_v2  ;;  %v4989_v19 = vld [vmem:[#allocation10 + $0x2f0] sm:$0xff]  ;;  %v4992_v63 = vld [vmem:[#allocation10 + $0x2f8] sm:$0xff] }
 0x217   : > { %6400 = vst [vmem:[#allocation50_spill] sm:$0xff] %v4989_v19 }
 0x218   : > { %1702 = vmatpush.msrb.mxu1 %v4983_v35  ;;  %1742 = vmatpush.msrb.mxu3 %v4986_v14  ;;  %v1324_v13 = vadd.f32 %v2882_v36, %v1323_v59 }
 0x21a   : > { %1703 = vmatpush.msrb.mxu1 %v4989_v19  ;;  %1743 = vmatpush.msrb.mxu3 %v4992_v63  ;;  %v1328_v2 = vsel %vm1327_vm2, %v2882_v36, %v1324_v13  ;;  %v5004_v19 = vld [vmem:[#allocation10 + $0x2b8] sm:$0xff]  ;;  %v6423_v36 = vld [vmem:[#allocation24_spill] sm:$0xff]  ;;  %v5074_v13 = vld [vmem:[#allocation12 + $0x3a8] sm:$0xff] }
 0x21b   : > { %v1333_v35 = vsel %vm1330_vm3, %v1332_v0, %v1328_v2  ;;  %6404 = vst [vmem:[#allocation53_spill] sm:$0xff] %v5004_v19  ;;  %v5014_v0 = vld [vmem:[#allocation10 + $0x298] sm:$0xff]  ;;  %v6427_v2 = vld [vmem:[#allocation29_spill] sm:$0xff] }
 0x21c   : > { %1704 = vmatpush.msrb.mxu1 %v4995_v7  ;;  %1744 = vmatpush.msrb.mxu3 %v4998_v25  ;;  %v1340_v59 = vmul.f32 %v2884_v17, %v1333_v35  ;;  %v5011_v17 = vld [vmem:[#allocation10 + $0x290] sm:$0xff]  ;;  %6406 = vst [vmem:[#allocation90_spill] sm:$0xff] %v5014_v0  ;;  %v5071_v35 = vld [vmem:[#allocation12 + $0x3a0] sm:$0xff] }
 0x21d   : > { %6405 = vst [vmem:[#allocation54_spill] sm:$0xff] %v5011_v17 }
 0x21e   : > { %1705 = vmatpush.msrb.mxu1 %v5001_v46  ;;  %1745 = vmatpush.msrb.mxu3 %v5004_v19  ;;  %6425 = vst [vmem:[#allocation103_spill] sm:$0xff] %v5071_v35 }
 0x21f   : > { %1370 = vmatmul.f32.vlgmr.msra.gmra.mxu0 %v1340_v59  ;;  %1410 = vmatmul.f32.vlgmr.msra.gmra.mxu2 %v1340_v59  ;;  %6426 = vst [vmem:[#allocation104_spill] sm:$0xff] %v5074_v13 }
 0x220   : > { %1595 = vmatpush.msra.mxu0 %v4454_v38  ;;  %1635 = vmatpush.msra.mxu2 %v4457_v45  ;;  %v5019_v38 = vld [vmem:[#allocation10 + $0x270] sm:$0xff]  ;;  %v5022_v45 = vld [vmem:[#allocation10 + $0x278] sm:$0xff] }
 0x221   : > { %1631 = vmatmul.f32.vlgmr.msra.gmra.mxu1 %v1340_v59  ;;  %1671 = vmatmul.f32.vlgmr.msra.gmra.mxu3 %v1340_v59  ;;  %6407 = vst [vmem:[#allocation91_spill] sm:$0xff] %v5019_v38 }
 0x222   : > { %1596 = vmatpush.msra.mxu0 %v4460_v27  ;;  %1636 = vmatpush.msra.mxu2 %v4463_v57  ;;  %6408 = vst [vmem:[#allocation92_spill] sm:$0xff] %v5022_v45  ;;  %v5029_v27 = vld [vmem:[#allocation10 + $0x250] sm:$0xff]  ;;  %v5032_v57 = vld [vmem:[#allocation10 + $0x258] sm:$0xff] }
 0x223   : > { %1706 = vmatpush.msrb.mxu1 %v5011_v17  ;;  %1746 = vmatpush.msrb.mxu3 %v5014_v0  ;;  %6409 = vst [vmem:[#allocation93_spill] sm:$0xff] %v5029_v27 }
 0x224   : > { %1597 = vmatpush.msra.mxu0 %v4468_v1  ;;  %1637 = vmatpush.msra.mxu2 %v4471_v21  ;;  %6410 = vst [vmem:[#allocation94_spill] sm:$0xff] %v5032_v57  ;;  %v5037_v1 = vld [vmem:[#allocation10 + $0x230] sm:$0xff]  ;;  %v5040_v21 = vld [vmem:[#allocation10 + $0x238] sm:$0xff] }
 0x225   : > { %1707 = vmatpush.msrb.mxu1 %v5019_v38  ;;  %1747 = vmatpush.msrb.mxu3 %v5022_v45  ;;  %6411 = vst [vmem:[#allocation95_spill] sm:$0xff] %v5037_v1 }
 0x226   : > { %1598 = vmatpush.msra.mxu0 %v4476_v37  ;;  %1638 = vmatpush.msra.mxu2 %v4479_v40  ;;  %6412 = vst [vmem:[#allocation98_spill] sm:$0xff] %v5040_v21  ;;  %v5045_v37 = vld [vmem:[#allocation10 + $0x210] sm:$0xff]  ;;  %v5048_v40 = vld [vmem:[#allocation10 + $0x218] sm:$0xff] }
 0x227   : > { %1450 = vmatmul.f32.vlgmr.msrb.gmra.mxu0 %v1340_v59  ;;  %1490 = vmatmul.f32.vlgmr.msrb.gmra.mxu2 %v1340_v59  ;;  %6413 = vst [vmem:[#allocation99_spill] sm:$0xff] %v5045_v37 }
 0x228   : > { %1599 = vmatpush.msra.mxu0 %v4482_v4  ;;  %1639 = vmatpush.msra.mxu2 %v4485_v55  ;;  %6414 = vst [vmem:[#allocation96_spill] sm:$0xff] %v5048_v40  ;;  %v6415_v4 = vld [vmem:[#allocation23_spill] sm:$0xff]  ;;  %v6416_v55 = vld [vmem:[#allocation21_spill] sm:$0xff] }
 0x229   : > { %1708 = vmatpush.msrb.mxu1 %v5029_v27  ;;  %1748 = vmatpush.msrb.mxu3 %v5032_v57 }
 0x22a   : > { %1600 = vmatpush.msra.mxu0 %v4488_v39  ;;  %1640 = vmatpush.msra.mxu2 %v4491_v10  ;;  %v5055_v39 = vld [vmem:[#allocation12 + $0x3e0] sm:$0xff]  ;;  %v5058_v10 = vld [vmem:[#allocation12 + $0x3e8] sm:$0xff] }
 0x22b   : > { %1709 = vmatpush.msrb.mxu1 %v5037_v1  ;;  %1749 = vmatpush.msrb.mxu3 %v5040_v21  ;;  %6417 = vst [vmem:[#allocation97_spill] sm:$0xff] %v5055_v39 }
 0x22c   : > { %1601 = vmatpush.msra.mxu0 %v4496_v47  ;;  %1641 = vmatpush.msra.mxu2 %v4499_v31  ;;  %6418 = vst [vmem:[#allocation101_spill] sm:$0xff] %v5058_v10  ;;  %v6419_v47 = vld [vmem:[#allocation25_spill] sm:$0xff]  ;;  %v6420_v31 = vld [vmem:[#allocation22_spill] sm:$0xff] }
 0x22d   : > { %1710 = vmatpush.msrb.mxu1 %v5045_v37  ;;  %1750 = vmatpush.msrb.mxu3 %v5048_v40 }
 0x22e   : > { %1602 = vmatpush.msra.mxu0 %v4504_v41  ;;  %1642 = vmatpush.msra.mxu2 %v4507_v61  ;;  %v5063_v41 = vld [vmem:[#allocation12 + $0x3c0] sm:$0xff]  ;;  %v5066_v61 = vld [vmem:[#allocation12 + $0x3c8] sm:$0xff] }
 0x22f   : > { %1711 = vmatmul.f32.vlgmr.msrb.gmra.mxu1 %v1340_v59  ;;  %1751 = vmatmul.f32.vlgmr.msrb.gmra.mxu3 %v1340_v59  ;;  %6421 = vst [vmem:[#allocation100_spill] sm:$0xff] %v5063_v41  ;;  %v6428_v59 = vld [vmem:[#allocation27_spill] sm:$0xff] }
 0x230   : > { %1603 = vmatpush.msra.mxu0 %v6415_v4  ;;  %1643 = vmatpush.msra.mxu2 %v6416_v55  ;;  %6422 = vst [vmem:[#allocation102_spill] sm:$0xff] %v5066_v61  ;;  %v5079_v4 = vld [vmem:[#allocation12 + $0x380] sm:$0xff]  ;;  %v5082_v55 = vld [vmem:[#allocation12 + $0x388] sm:$0xff] }
 0x231   : > { %1852 = vmatpush.msra.mxu1 %v5055_v39  ;;  %1892 = vmatpush.msra.mxu3 %v5058_v10  ;;  %6429 = vst [vmem:[#allocation105_spill] sm:$0xff] %v5079_v4 }
 0x232   : > { %1604 = vmatpush.msra.mxu0 %v6419_v47  ;;  %1644 = vmatpush.msra.mxu2 %v6420_v31  ;;  %6430 = vst [vmem:[#allocation106_spill] sm:$0xff] %v5082_v55  ;;  %v6431_v47 = vld [vmem:[#allocation31_spill] sm:$0xff]  ;;  %v6432_v31 = vld [vmem:[#allocation28_spill] sm:$0xff] }
 0x233   : > { %1853 = vmatpush.msra.mxu1 %v5063_v41  ;;  %1893 = vmatpush.msra.mxu3 %v5066_v61 }
 0x234   : > { %1605 = vmatpush.msra.mxu0 %v6423_v36  ;;  %1645 = vmatpush.msra.mxu2 %v6424_v43  ;;  %v5087_v36 = vld [vmem:[#allocation12 + $0x360] sm:$0xff]  ;;  %v5090_v43 = vld [vmem:[#allocation12 + $0x368] sm:$0xff] }
 0x235   : > { %1854 = vmatpush.msra.mxu1 %v5071_v35  ;;  %1894 = vmatpush.msra.mxu3 %v5074_v13  ;;  %6433 = vst [vmem:[#allocation107_spill] sm:$0xff] %v5087_v36  ;;  %v5106_v13 = vld [vmem:[#allocation12 + $0x320] sm:$0xff]  ;;  %v5489_v35 = vld [vmem:[#allocation12 + $0x18] sm:$0xff] }
 0x236   : > { %1606 = vmatpush.msra.mxu0 %v6427_v2  ;;  %1646 = vmatpush.msra.mxu2 %v6428_v59  ;;  %6434 = vst [vmem:[#allocation108_spill] sm:$0xff] %v5090_v43  ;;  %v6435_v2 = vld [vmem:[#allocation33_spill] sm:$0xff]  ;;  %v6436_v59 = vld [vmem:[#allocation30_spill] sm:$0xff] }
 0x237   : > { %1855 = vmatpush.msra.mxu1 %v5079_v4  ;;  %1895 = vmatpush.msra.mxu3 %v5082_v55  ;;  %v5095_v4 = vld [vmem:[#allocation12 + $0x340] sm:$0xff]  ;;  %v5098_v55 = vld [vmem:[#allocation12 + $0x348] sm:$0xff]  ;;  %6441 = vst [vmem:[#allocation111_spill] sm:$0xff] %v5106_v13 }
 0x238   : > { %1607 = vmatpush.msra.mxu0 %v6431_v47  ;;  %1647 = vmatpush.msra.mxu2 %v6432_v31  ;;  %6437 = vst [vmem:[#allocation109_spill] sm:$0xff] %v5095_v4  ;;  %v6439_v47 = vld [vmem:[#allocation35_spill] sm:$0xff]  ;;  %v6440_v31 = vld [vmem:[#allocation32_spill] sm:$0xff] }
 0x239   : > { %1856 = vmatpush.msra.mxu1 %v5087_v36  ;;  %1896 = vmatpush.msra.mxu3 %v5090_v43  ;;  %6438 = vst [vmem:[#allocation110_spill] sm:$0xff] %v5098_v55  ;;  %v5104_v36 = vld [vmem:[%s3724_s13 + $0x10] sm:$0xff]  ;;  %v5129_v43 = vld [vmem:[#allocation12 + $0x2e8] sm:$0xff] }
 0x23a   : > { %1608 = vmatpush.msra.mxu0 %v6435_v2  ;;  %1648 = vmatpush.msra.mxu2 %v6436_v59  ;;  %v5109_v2 = vld [vmem:[#allocation12 + $0x328] sm:$0xff]  ;;  %6452 = vst [vmem:[#allocation116_spill] sm:$0xff] %v5129_v43 }
 0x23b   : > { %1857 = vmatpush.msra.mxu1 %v5095_v4  ;;  %1897 = vmatpush.msra.mxu3 %v5098_v55  ;;  %6442 = vst [vmem:[#allocation112_spill] sm:$0xff] %v5109_v2  ;;  %v6443_v59 = vld [vmem:[#allocation37_spill] sm:$0xff]  ;;  %v6444_v4 = vld [vmem:[#allocation34_spill] sm:$0xff]  ;;  %v5118_v55 = vld [vmem:[#allocation12 + $0x300] sm:$0xff] }
 0x23c   : > { %1609 = vmatpush.msra.mxu0 %v6439_v47  ;;  %1649 = vmatpush.msra.mxu2 %v6440_v31  ;;  %v6445_v47 = vld [vmem:[#allocation39_spill] sm:$0xff]  ;;  %v6446_v31 = vld [vmem:[#allocation36_spill] sm:$0xff]  ;;  %6447 = vst [vmem:[#allocation113_spill] sm:$0xff] %v5118_v55 }
 0x23d   : > { %1858 = vmatpush.msra.mxu1 %v5106_v13  ;;  %1898 = vmatpush.msra.mxu3 %v5109_v2  ;;  %v5121_v13 = vld [vmem:[#allocation12 + $0x308] sm:$0xff]  ;;  %6590 = vst [vmem:[#allocation178_spill] sm:$0xff] %v5489_v35 }
 0x23e   : > { %1610 = vmatpush.msra.mxu0 %v6443_v59  ;;  %1650 = vmatpush.msra.mxu2 %v6444_v4  ;;  %6448 = vst [vmem:[#allocation114_spill] sm:$0xff] %v5121_v13  ;;  %v6449_v2 = vld [vmem:[#allocation41_spill] sm:$0xff]  ;;  %v6450_v59 = vld [vmem:[#allocation38_spill] sm:$0xff]  ;;  %v5126_v4 = vld [vmem:[#allocation12 + $0x2e0] sm:$0xff] }
 0x23f   : > { %1611 = vmatmul.f32.vlgmr.msra.gmra.mxu0 %v5104_v36  ;;  %1651 = vmatmul.f32.vlgmr.msra.gmra.mxu2 %v5104_v36  ;;  %6451 = vst [vmem:[#allocation115_spill] sm:$0xff] %v5126_v4 }
 0x240   : > { %1675 = vmatpush.msrb.mxu0 %v6445_v47  ;;  %1715 = vmatpush.msrb.mxu2 %v6446_v31  ;;  %v6453_v47 = vld [vmem:[#allocation43_spill] sm:$0xff]  ;;  %v6454_v31 = vld [vmem:[#allocation40_spill] sm:$0xff] }
 0x241   : > { %1859 = vmatpush.msra.mxu1 %v5118_v55  ;;  %1899 = vmatpush.msra.mxu3 %v5121_v13  ;;  %v5134_v55 = vld [vmem:[#allocation12 + $0x2c0] sm:$0xff]  ;;  %v5137_v13 = vld [vmem:[#allocation12 + $0x2c8] sm:$0xff] }
 0x242   : > { %1676 = vmatpush.msrb.mxu0 %v6449_v2  ;;  %1716 = vmatpush.msrb.mxu2 %v6450_v59  ;;  %6455 = vst [vmem:[#allocation117_spill] sm:$0xff] %v5134_v55  ;;  %v6457_v2 = vld [vmem:[#allocation45_spill] sm:$0xff]  ;;  %v6458_v59 = vld [vmem:[#allocation42_spill] sm:$0xff] }
 0x243   : > { %1860 = vmatpush.msra.mxu1 %v5126_v4  ;;  %1900 = vmatpush.msra.mxu3 %v5129_v43  ;;  %6456 = vst [vmem:[#allocation118_spill] sm:$0xff] %v5137_v13  ;;  %v5142_v4 = vld [vmem:[#allocation12 + $0x2a0] sm:$0xff]  ;;  %v5145_v43 = vld [vmem:[#allocation12 + $0x2a8] sm:$0xff] }
 0x244   : > { %1677 = vmatpush.msrb.mxu0 %v6453_v47  ;;  %1717 = vmatpush.msrb.mxu2 %v6454_v31  ;;  %6459 = vst [vmem:[#allocation119_spill] sm:$0xff] %v5142_v4  ;;  %v6461_v47 = vld [vmem:[#allocation47_spill] sm:$0xff]  ;;  %v6462_v31 = vld [vmem:[#allocation44_spill] sm:$0xff] }
 0x245   : > { %1861 = vmatpush.msra.mxu1 %v5134_v55  ;;  %1901 = vmatpush.msra.mxu3 %v5137_v13  ;;  %6460 = vst [vmem:[#allocation120_spill] sm:$0xff] %v5145_v43  ;;  %v5150_v55 = vld [vmem:[#allocation12 + $0x280] sm:$0xff]  ;;  %v5153_v13 = vld [vmem:[#allocation12 + $0x288] sm:$0xff] }
 0x246   : > { %1678 = vmatpush.msrb.mxu0 %v6457_v2  ;;  %1718 = vmatpush.msrb.mxu2 %v6458_v59  ;;  %6463 = vst [vmem:[#allocation121_spill] sm:$0xff] %v5150_v55  ;;  %v6465_v2 = vld [vmem:[#allocation49_spill] sm:$0xff]  ;;  %v6466_v59 = vld [vmem:[#allocation46_spill] sm:$0xff] }
 0x247   : > { %1862 = vmatpush.msra.mxu1 %v5142_v4  ;;  %1902 = vmatpush.msra.mxu3 %v5145_v43  ;;  %6464 = vst [vmem:[#allocation23_spill] sm:$0xff] %v5153_v13  ;;  %v5158_v4 = vld [vmem:[#allocation12 + $0x260] sm:$0xff]  ;;  %v5161_v43 = vld [vmem:[#allocation12 + $0x268] sm:$0xff] }
 0x248   : > { %1679 = vmatpush.msrb.mxu0 %v6461_v47  ;;  %1719 = vmatpush.msrb.mxu2 %v6462_v31  ;;  %6467 = vst [vmem:[#allocation21_spill] sm:$0xff] %v5158_v4  ;;  %v6469_v47 = vld [vmem:[#allocation48_spill] sm:$0xff] }
 0x249   : > { %1863 = vmatpush.msra.mxu1 %v5150_v55  ;;  %1903 = vmatpush.msra.mxu3 %v5153_v13  ;;  %6468 = vst [vmem:[#allocation25_spill] sm:$0xff] %v5161_v43  ;;  %v6470_v31 = vld [vmem:[#allocation56_spill] sm:$0xff]  ;;  %v5169_v13 = vld [vmem:[#allocation12 + $0x248] sm:$0xff] }
 0x24a   : > { %1680 = vmatpush.msrb.mxu0 %v6465_v2  ;;  %1720 = vmatpush.msrb.mxu2 %v6466_v59  ;;  %v5166_v55 = vld [vmem:[#allocation12 + $0x240] sm:$0xff]  ;;  %6472 = vst [vmem:[#allocation24_spill] sm:$0xff] %v5169_v13  ;;  %v6474_v59 = vld [vmem:[#allocation58_spill] sm:$0xff] }
 0x24b   : > { %1864 = vmatpush.msra.mxu1 %v5158_v4  ;;  %1904 = vmatpush.msra.mxu3 %v5161_v43  ;;  %6471 = vst [vmem:[#allocation22_spill] sm:$0xff] %v5166_v55  ;;  %v6473_v2 = vld [vmem:[#allocation52_spill] sm:$0xff]  ;;  %v5177_v43 = vld [vmem:[#allocation12 + $0x228] sm:$0xff] }
 0x24c   : > { %1681 = vmatpush.msrb.mxu0 %v6469_v47  ;;  %1721 = vmatpush.msrb.mxu2 %v6470_v31  ;;  %v5174_v4 = vld [vmem:[#allocation12 + $0x220] sm:$0xff]  ;;  %6476 = vst [vmem:[#allocation29_spill] sm:$0xff] %v5177_v43  ;;  %v6477_v47 = vld [vmem:[#allocation55_spill] sm:$0xff] }
 0x24d   : > { %1865 = vmatpush.msra.mxu1 %v5166_v55  ;;  %1905 = vmatpush.msra.mxu3 %v5169_v13  ;;  %6475 = vst [vmem:[#allocation26_spill] sm:$0xff] %v5174_v4  ;;  %v6478_v31 = vld [vmem:[#allocation60_spill] sm:$0xff]  ;;  %v5185_v13 = vld [vmem:[#allocation12 + $0x208] sm:$0xff] }
 0x24e   : > { %1682 = vmatpush.msrb.mxu0 %v6473_v2  ;;  %1722 = vmatpush.msrb.mxu2 %v6474_v59  ;;  %v5182_v55 = vld [vmem:[#allocation12 + $0x200] sm:$0xff]  ;;  %6480 = vst [vmem:[#allocation31_spill] sm:$0xff] %v5185_v13  ;;  %v6481_v2 = vld [vmem:[#allocation57_spill] sm:$0xff]  ;;  %v6482_v59 = vld [vmem:[#allocation62_spill] sm:$0xff] }
 0x24f   : > { %1866 = vmatpush.msra.mxu1 %v5174_v4  ;;  %1906 = vmatpush.msra.mxu3 %v5177_v43  ;;  %6479 = vst [vmem:[#allocation27_spill] sm:$0xff] %v5182_v55  ;;  %v5190_v4 = vld [vmem:[#allocation12 + $0x3f0] sm:$0xff]  ;;  %v5193_v43 = vld [vmem:[#allocation12 + $0x3f8] sm:$0xff] }
 0x250   : > { %1683 = vmatpush.msrb.mxu0 %v6477_v47  ;;  %1723 = vmatpush.msrb.mxu2 %v6478_v31  ;;  %6483 = vst [vmem:[#allocation28_spill] sm:$0xff] %v5190_v4  ;;  %v6485_v47 = vld [vmem:[#allocation59_spill] sm:$0xff]  ;;  %v6486_v31 = vld [vmem:[#allocation64_spill] sm:$0xff] }
 0x251   : > { %1867 = vmatpush.msra.mxu1 %v5182_v55  ;;  %1907 = vmatpush.msra.mxu3 %v5185_v13  ;;  %6484 = vst [vmem:[#allocation33_spill] sm:$0xff] %v5193_v43  ;;  %v5198_v55 = vld [vmem:[#allocation12 + $0x3d0] sm:$0xff]  ;;  %v5201_v13 = vld [vmem:[#allocation12 + $0x3d8] sm:$0xff] }
 0x252   : > { %1684 = vmatpush.msrb.mxu0 %v6481_v2  ;;  %1724 = vmatpush.msrb.mxu2 %v6482_v59  ;;  %6487 = vst [vmem:[#allocation30_spill] sm:$0xff] %v5198_v55  ;;  %v6489_v2 = vld [vmem:[#allocation61_spill] sm:$0xff]  ;;  %v6490_v59 = vld [vmem:[#allocation66_spill] sm:$0xff] }
 0x253   : > { %1932 = vmatpush.msrb.mxu1 %v5190_v4  ;;  %1972 = vmatpush.msrb.mxu3 %v5193_v43  ;;  %6488 = vst [vmem:[#allocation35_spill] sm:$0xff] %v5201_v13  ;;  %v5206_v4 = vld [vmem:[#allocation12 + $0x3b0] sm:$0xff]  ;;  %v5209_v43 = vld [vmem:[#allocation12 + $0x3b8] sm:$0xff] }
 0x254   : > { %1685 = vmatpush.msrb.mxu0 %v6485_v47  ;;  %1725 = vmatpush.msrb.mxu2 %v6486_v31  ;;  %6491 = vst [vmem:[#allocation32_spill] sm:$0xff] %v5206_v4  ;;  %v6493_v47 = vld [vmem:[#allocation63_spill] sm:$0xff]  ;;  %v6494_v31 = vld [vmem:[#allocation68_spill] sm:$0xff] }
 0x255   : > { %1933 = vmatpush.msrb.mxu1 %v5198_v55  ;;  %1973 = vmatpush.msrb.mxu3 %v5201_v13  ;;  %6492 = vst [vmem:[#allocation37_spill] sm:$0xff] %v5209_v43  ;;  %v5214_v55 = vld [vmem:[#allocation12 + $0x390] sm:$0xff]  ;;  %v5217_v13 = vld [vmem:[#allocation12 + $0x398] sm:$0xff] }
 0x256   : > { %1686 = vmatpush.msrb.mxu0 %v6489_v2  ;;  %1726 = vmatpush.msrb.mxu2 %v6490_v59  ;;  %6495 = vst [vmem:[#allocation34_spill] sm:$0xff] %v5214_v55  ;;  %v6497_v2 = vld [vmem:[#allocation65_spill] sm:$0xff]  ;;  %v6498_v59 = vld [vmem:[#allocation70_spill] sm:$0xff] }
 0x257   : > { %1934 = vmatpush.msrb.mxu1 %v5206_v4  ;;  %1974 = vmatpush.msrb.mxu3 %v5209_v43  ;;  %6496 = vst [vmem:[#allocation39_spill] sm:$0xff] %v5217_v13  ;;  %v5222_v4 = vld [vmem:[#allocation12 + $0x370] sm:$0xff]  ;;  %v5225_v43 = vld [vmem:[#allocation12 + $0x378] sm:$0xff] }
 0x258   : > { %1687 = vmatpush.msrb.mxu0 %v6493_v47  ;;  %1727 = vmatpush.msrb.mxu2 %v6494_v31  ;;  %6499 = vst [vmem:[#allocation36_spill] sm:$0xff] %v5222_v4  ;;  %v6501_v47 = vld [vmem:[#allocation67_spill] sm:$0xff]  ;;  %v6502_v31 = vld [vmem:[#allocation72_spill] sm:$0xff] }
 0x259   : > { %1935 = vmatpush.msrb.mxu1 %v5214_v55  ;;  %1975 = vmatpush.msrb.mxu3 %v5217_v13  ;;  %6500 = vst [vmem:[#allocation41_spill] sm:$0xff] %v5225_v43  ;;  %v5230_v55 = vld [vmem:[#allocation12 + $0x350] sm:$0xff]  ;;  %v5233_v13 = vld [vmem:[#allocation12 + $0x358] sm:$0xff] }
 0x25a   : > { %1688 = vmatpush.msrb.mxu0 %v6497_v2  ;;  %1728 = vmatpush.msrb.mxu2 %v6498_v59  ;;  %6503 = vst [vmem:[#allocation38_spill] sm:$0xff] %v5230_v55  ;;  %v6505_v2 = vld [vmem:[#allocation69_spill] sm:$0xff]  ;;  %v6506_v59 = vld [vmem:[#allocation74_spill] sm:$0xff] }
 0x25b   : > { %1936 = vmatpush.msrb.mxu1 %v5222_v4  ;;  %1976 = vmatpush.msrb.mxu3 %v5225_v43  ;;  %6504 = vst [vmem:[#allocation43_spill] sm:$0xff] %v5233_v13  ;;  %v5240_v43 = vld [vmem:[#allocation12 + $0x1e0] sm:$0xff] }
 0x25c   : > { %1689 = vmatpush.msrb.mxu0 %v6501_v47  ;;  %1729 = vmatpush.msrb.mxu2 %v6502_v31  ;;  %6507 = vst [vmem:[#allocation40_spill] sm:$0xff] %v5240_v43  ;;  %v5243_v47 = vld [vmem:[#allocation12 + $0x1e8] sm:$0xff]  ;;  %v5246_v31 = vld [vmem:[#allocation12 + $0x330] sm:$0xff] }
 0x25d   : > { %1937 = vmatpush.msrb.mxu1 %v5230_v55  ;;  %1977 = vmatpush.msrb.mxu3 %v5233_v13  ;;  %6508 = vst [vmem:[#allocation45_spill] sm:$0xff] %v5243_v47  ;;  %v5249_v13 = vld [vmem:[#allocation12 + $0x338] sm:$0xff]  ;;  %v5474_v55 = vld [vmem:[#allocation12 + $0x50] sm:$0xff] }
 0x25e   : > { %1690 = vmatpush.msrb.mxu0 %v6505_v2  ;;  %1730 = vmatpush.msrb.mxu2 %v6506_v59  ;;  %6509 = vst [vmem:[#allocation42_spill] sm:$0xff] %v5246_v31  ;;  %v5252_v2 = vld [vmem:[#allocation12 + $0x1c0] sm:$0xff]  ;;  %v5258_v59 = vld [vmem:[#allocation12 + $0x310] sm:$0xff] }
 0x25f   : > { %1691 = vmatmul.f32.vlgmr.msrb.gmra.mxu0 %v5104_v36  ;;  %1731 = vmatmul.f32.vlgmr.msrb.gmra.mxu2 %v5104_v36  ;;  %6510 = vst [vmem:[#allocation47_spill] sm:$0xff] %v5249_v13  ;;  %v5255_v36 = vld [vmem:[#allocation12 + $0x1c8] sm:$0xff] }
 0x260   : > { %1832 = vmatpush.msra.mxu0 %v5240_v43  ;;  %1872 = vmatpush.msra.mxu2 %v5243_v47  ;;  %6511 = vst [vmem:[#allocation44_spill] sm:$0xff] %v5252_v2  ;;  %v5261_v47 = vld [vmem:[#allocation12 + $0x318] sm:$0xff]  ;;  %v5468_v43 = vld [vmem:[#allocation12 + $0x70] sm:$0xff] }
 0x261   : > { %1938 = vmatpush.msrb.mxu1 %v5246_v31  ;;  %1978 = vmatpush.msrb.mxu3 %v5249_v13  ;;  %6512 = vst [vmem:[#allocation49_spill] sm:$0xff] %v5255_v36  ;;  %v5264_v31 = vld [vmem:[#allocation12 + $0x1a0] sm:$0xff]  ;;  %v5267_v13 = vld [vmem:[#allocation12 + $0x1a8] sm:$0xff] }
 0x262   : > { %1833 = vmatpush.msra.mxu0 %v5252_v2  ;;  %1873 = vmatpush.msra.mxu2 %v5255_v36  ;;  %6513 = vst [vmem:[#allocation46_spill] sm:$0xff] %v5258_v59  ;;  %v5270_v2 = vld [vmem:[#allocation12 + $0x2f0] sm:$0xff]  ;;  %v5273_v36 = vld [vmem:[#allocation12 + $0x2f8] sm:$0xff] }
 0x263   : > { %1939 = vmatpush.msrb.mxu1 %v5258_v59  ;;  %6514 = vst [vmem:[#allocation48_spill] sm:$0xff] %v5261_v47  ;;  %1979 = vmatpush.msrb.mxu3 %v5261_v47  ;;  %v5276_v59 = vld [vmem:[#allocation12 + $0x180] sm:$0xff]  ;;  %v5279_v47 = vld [vmem:[#allocation12 + $0x188] sm:$0xff] }
 0x264   : > { %6515 = vst [vmem:[#allocation56_spill] sm:$0xff] %v5264_v31  ;;  %1834 = vmatpush.msra.mxu0 %v5264_v31  ;;  %1874 = vmatpush.msra.mxu2 %v5267_v13  ;;  %v5282_v31 = vld [vmem:[#allocation12 + $0x2d0] sm:$0xff] }
 0x265   : > { %6516 = vst [vmem:[#allocation52_spill] sm:$0xff] %v5267_v13  ;;  %1940 = vmatpush.msrb.mxu1 %v5270_v2  ;;  %1980 = vmatpush.msrb.mxu3 %v5273_v36  ;;  %v5285_v13 = vld [vmem:[#allocation12 + $0x2d8] sm:$0xff] }
 0x266   : > { %6517 = vst [vmem:[#allocation58_spill] sm:$0xff] %v5270_v2  ;;  %1835 = vmatpush.msra.mxu0 %v5276_v59  ;;  %1875 = vmatpush.msra.mxu2 %v5279_v47  ;;  %v5288_v2 = vld [vmem:[#allocation12 + $0x160] sm:$0xff] }
 0x267   : > { %6518 = vst [vmem:[#allocation55_spill] sm:$0xff] %v5273_v36  ;;  %1941 = vmatpush.msrb.mxu1 %v5282_v31  ;;  %1981 = vmatpush.msrb.mxu3 %v5285_v13  ;;  %v5291_v36 = vld [vmem:[#allocation12 + $0x168] sm:$0xff] }
 0x268   : > { %6519 = vst [vmem:[#allocation60_spill] sm:$0xff] %v5276_v59  ;;  %1836 = vmatpush.msra.mxu0 %v5288_v2  ;;  %1876 = vmatpush.msra.mxu2 %v5291_v36  ;;  %v5294_v59 = vld [vmem:[#allocation12 + $0x2b0] sm:$0xff] }
 0x269   : > { %6520 = vst [vmem:[#allocation57_spill] sm:$0xff] %v5279_v47  ;;  %1942 = vmatpush.msrb.mxu1 %v5294_v59  ;;  %v5297_v47 = vld [vmem:[#allocation12 + $0x2b8] sm:$0xff] }
 0x26a   : > { %6521 = vst [vmem:[#allocation62_spill] sm:$0xff] %v5282_v31  ;;  %1982 = vmatpush.msrb.mxu3 %v5297_v47  ;;  %v5300_v31 = vld [vmem:[#allocation12 + $0x140] sm:$0xff] }
 0x26b   : > { %6522 = vst [vmem:[#allocation59_spill] sm:$0xff] %v5285_v13  ;;  %1837 = vmatpush.msra.mxu0 %v5300_v31  ;;  %v5303_v13 = vld [vmem:[#allocation12 + $0x148] sm:$0xff] }
 0x26c   : > { %6523 = vst [vmem:[#allocation64_spill] sm:$0xff] %v5288_v2  ;;  %1877 = vmatpush.msra.mxu2 %v5303_v13  ;;  %v5306_v2 = vld [vmem:[#allocation12 + $0x290] sm:$0xff]  ;;  %v1431_v10 = vpop.f32.mrf.mxu3 }
 0x26d   : > { %6524 = vst [vmem:[#allocation61_spill] sm:$0xff] %v5291_v36  ;;  %1943 = vmatpush.msrb.mxu1 %v5306_v2  ;;  %v5309_v36 = vld [vmem:[#allocation12 + $0x298] sm:$0xff] }
 0x26e   : > { %6525 = vst [vmem:[#allocation66_spill] sm:$0xff] %v5294_v59  ;;  %1983 = vmatpush.msrb.mxu3 %v5309_v36  ;;  %v5312_v59 = vld [vmem:[#allocation12 + $0x120] sm:$0xff] }
 0x26f   : > { %6526 = vst [vmem:[#allocation63_spill] sm:$0xff] %v5297_v47  ;;  %1838 = vmatpush.msra.mxu0 %v5312_v59  ;;  %v5315_v47 = vld [vmem:[#allocation12 + $0x128] sm:$0xff] }
 0x270   : > { %6527 = vst [vmem:[#allocation68_spill] sm:$0xff] %v5300_v31  ;;  %1878 = vmatpush.msra.mxu2 %v5315_v47  ;;  %v5318_v31 = vld [vmem:[#allocation12 + $0x270] sm:$0xff] }
 0x271   : > { %6528 = vst [vmem:[#allocation65_spill] sm:$0xff] %v5303_v13  ;;  %1944 = vmatpush.msrb.mxu1 %v5318_v31  ;;  %v5321_v13 = vld [vmem:[#allocation12 + $0x278] sm:$0xff] }
 0x272   : > { %6529 = vst [vmem:[#allocation70_spill] sm:$0xff] %v5306_v2  ;;  %1984 = vmatpush.msrb.mxu3 %v5321_v13  ;;  %v5324_v2 = vld [vmem:[#allocation12 + $0x100] sm:$0xff] }
 0x273   : > { %6530 = vst [vmem:[#allocation67_spill] sm:$0xff] %v5309_v36  ;;  %1839 = vmatpush.msra.mxu0 %v5324_v2  ;;  %v5327_v36 = vld [vmem:[#allocation12 + $0x108] sm:$0xff] }
 0x274   : > { %6531 = vst [vmem:[#allocation72_spill] sm:$0xff] %v5312_v59  ;;  %1879 = vmatpush.msra.mxu2 %v5327_v36  ;;  %v5330_v59 = vld [vmem:[#allocation12 + $0x250] sm:$0xff]  ;;  %v1511_v1 = vpop.f32.mrf.mxu3 }
 0x275   : > { %6532 = vst [vmem:[#allocation69_spill] sm:$0xff] %v5315_v47  ;;  %1945 = vmatpush.msrb.mxu1 %v5330_v59  ;;  %v5333_v47 = vld [vmem:[#allocation12 + $0x258] sm:$0xff] }
 0x276   : > { %6533 = vst [vmem:[#allocation74_spill] sm:$0xff] %v5318_v31  ;;  %1985 = vmatpush.msrb.mxu3 %v5333_v47  ;;  %v5336_v31 = vld [vmem:[#allocation12 + $0xe0] sm:$0xff] }
 0x277   : > { %6534 = vst [vmem:[#allocation122_spill] sm:$0xff] %v5321_v13  ;;  %1840 = vmatpush.msra.mxu0 %v5336_v31  ;;  %v5339_v13 = vld [vmem:[#allocation12 + $0xe8] sm:$0xff] }
 0x278   : > { %6535 = vst [vmem:[#allocation123_spill] sm:$0xff] %v5324_v2  ;;  %1880 = vmatpush.msra.mxu2 %v5339_v13  ;;  %v5342_v2 = vld [vmem:[#allocation12 + $0x230] sm:$0xff] }
 0x279   : > { %6536 = vst [vmem:[#allocation124_spill] sm:$0xff] %v5327_v36  ;;  %1946 = vmatpush.msrb.mxu1 %v5342_v2  ;;  %v5345_v36 = vld [vmem:[#allocation12 + $0x238] sm:$0xff] }
 0x27a   : > { %6537 = vst [vmem:[#allocation125_spill] sm:$0xff] %v5330_v59  ;;  %1986 = vmatpush.msrb.mxu3 %v5345_v36  ;;  %v5348_v59 = vld [vmem:[#allocation12 + $0xc0] sm:$0xff] }
 0x27b   : > { %6538 = vst [vmem:[#allocation126_spill] sm:$0xff] %v5333_v47  ;;  %1841 = vmatpush.msra.mxu0 %v5348_v59  ;;  %v5351_v47 = vld [vmem:[#allocation12 + $0xc8] sm:$0xff] }
 0x27c   : > { %6539 = vst [vmem:[#allocation127_spill] sm:$0xff] %v5336_v31  ;;  %1881 = vmatpush.msra.mxu2 %v5351_v47  ;;  %v5354_v31 = vld [vmem:[#allocation12 + $0x210] sm:$0xff] }
 0x27d   : > { %6540 = vst [vmem:[#allocation128_spill] sm:$0xff] %v5339_v13  ;;  %1947 = vmatpush.msrb.mxu1 %v5354_v31  ;;  %v5357_v13 = vld [vmem:[#allocation12 + $0x218] sm:$0xff] }
 0x27e   : > { %6541 = vst [vmem:[#allocation129_spill] sm:$0xff] %v5342_v2  ;;  %1987 = vmatpush.msrb.mxu3 %v5357_v13  ;;  %v5360_v2 = vld [vmem:[#allocation12 + $0xa0] sm:$0xff] }
 0x27f   : > { %6542 = vst [vmem:[#allocation130_spill] sm:$0xff] %v5345_v36  ;;  %1842 = vmatpush.msra.mxu0 %v5360_v2  ;;  %v5363_v36 = vld [vmem:[#allocation12 + $0xa8] sm:$0xff] }
 0x280   : > { %6543 = vst [vmem:[#allocation131_spill] sm:$0xff] %v5348_v59  ;;  %1882 = vmatpush.msra.mxu2 %v5363_v36  ;;  %v5366_v59 = vld [vmem:[#allocation12 + $0x80] sm:$0xff] }
 0x281   : > { %6544 = vst [vmem:[#allocation132_spill] sm:$0xff] %v5351_v47  ;;  %1843 = vmatpush.msra.mxu0 %v5366_v59  ;;  %v5369_v47 = vld [vmem:[#allocation12 + $0x88] sm:$0xff] }
 0x282   : > { %6545 = vst [vmem:[#allocation133_spill] sm:$0xff] %v5354_v31  ;;  %1883 = vmatpush.msra.mxu2 %v5369_v47  ;;  %v5372_v31 = vld [vmem:[#allocation12 + $0x60] sm:$0xff] }
 0x283   : > { %6546 = vst [vmem:[#allocation134_spill] sm:$0xff] %v5357_v13  ;;  %1844 = vmatpush.msra.mxu0 %v5372_v31  ;;  %v5375_v13 = vld [vmem:[#allocation12 + $0x68] sm:$0xff] }
 0x284   : > { %6547 = vst [vmem:[#allocation135_spill] sm:$0xff] %v5360_v2  ;;  %1884 = vmatpush.msra.mxu2 %v5375_v13  ;;  %v5378_v2 = vld [vmem:[#allocation12 + $0x40] sm:$0xff] }
 0x285   : > { %6548 = vst [vmem:[#allocation136_spill] sm:$0xff] %v5363_v36  ;;  %1845 = vmatpush.msra.mxu0 %v5378_v2  ;;  %v5381_v36 = vld [vmem:[#allocation12 + $0x48] sm:$0xff] }
 0x286   : > { %6549 = vst [vmem:[#allocation137_spill] sm:$0xff] %v5366_v59  ;;  %1885 = vmatpush.msra.mxu2 %v5381_v36  ;;  %v5384_v59 = vld [vmem:[#allocation12 + $0x20] sm:$0xff] }
 0x287   : > { %6550 = vst [vmem:[#allocation138_spill] sm:$0xff] %v5369_v47  ;;  %1846 = vmatpush.msra.mxu0 %v5384_v59  ;;  %v5387_v47 = vld [vmem:[#allocation12 + $0x28] sm:$0xff] }
 0x288   : > { %6551 = vst [vmem:[#allocation139_spill] sm:$0xff] %v5372_v31  ;;  %1886 = vmatpush.msra.mxu2 %v5387_v47  ;;  %v5390_v31 = vld [vmem:[#allocation12] sm:$0xff] }
 0x289   : > { %6552 = vst [vmem:[#allocation140_spill] sm:$0xff] %v5375_v13  ;;  %1847 = vmatpush.msra.mxu0 %v5390_v31  ;;  %v5393_v13 = vld [vmem:[#allocation12 + $0x8] sm:$0xff] }
 0x28a   : > { %6553 = vst [vmem:[#allocation141_spill] sm:$0xff] %v5378_v2  ;;  %1887 = vmatpush.msra.mxu2 %v5393_v13  ;;  %v5396_v2 = vld [vmem:[#allocation12 + $0x1f0] sm:$0xff] }
 0x28b   : > { %6554 = vst [vmem:[#allocation142_spill] sm:$0xff] %v5381_v36  ;;  %1912 = vmatpush.msrb.mxu0 %v5396_v2  ;;  %v5399_v36 = vld [vmem:[#allocation12 + $0x1f8] sm:$0xff] }
 0x28c   : > { %6555 = vst [vmem:[#allocation143_spill] sm:$0xff] %v5384_v59  ;;  %1952 = vmatpush.msrb.mxu2 %v5399_v36  ;;  %v5402_v59 = vld [vmem:[#allocation12 + $0x1d0] sm:$0xff] }
 0x28d   : > { %6556 = vst [vmem:[#allocation144_spill] sm:$0xff] %v5387_v47  ;;  %1913 = vmatpush.msrb.mxu0 %v5402_v59  ;;  %v5405_v47 = vld [vmem:[#allocation12 + $0x1d8] sm:$0xff] }
 0x28e   : > { %6557 = vst [vmem:[#allocation145_spill] sm:$0xff] %v5390_v31  ;;  %1953 = vmatpush.msrb.mxu2 %v5405_v47  ;;  %v5408_v31 = vld [vmem:[#allocation12 + $0x1b0] sm:$0xff] }
 0x28f   : > { %6558 = vst [vmem:[#allocation146_spill] sm:$0xff] %v5393_v13  ;;  %1914 = vmatpush.msrb.mxu0 %v5408_v31  ;;  %v5411_v13 = vld [vmem:[#allocation12 + $0x1b8] sm:$0xff] }
 0x290   : > { %6559 = vst [vmem:[#allocation147_spill] sm:$0xff] %v5396_v2  ;;  %1954 = vmatpush.msrb.mxu2 %v5411_v13  ;;  %v5414_v2 = vld [vmem:[#allocation12 + $0x190] sm:$0xff] }
 0x291   : > { %6560 = vst [vmem:[#allocation148_spill] sm:$0xff] %v5399_v36  ;;  %1915 = vmatpush.msrb.mxu0 %v5414_v2  ;;  %v5417_v36 = vld [vmem:[#allocation12 + $0x198] sm:$0xff] }
 0x292   : > { %6561 = vst [vmem:[#allocation149_spill] sm:$0xff] %v5402_v59  ;;  %1955 = vmatpush.msrb.mxu2 %v5417_v36  ;;  %v5420_v59 = vld [vmem:[#allocation12 + $0x170] sm:$0xff] }
 0x293   : > { %6562 = vst [vmem:[#allocation150_spill] sm:$0xff] %v5405_v47  ;;  %1916 = vmatpush.msrb.mxu0 %v5420_v59  ;;  %v5423_v47 = vld [vmem:[#allocation12 + $0x178] sm:$0xff] }
 0x294   : > { %6563 = vst [vmem:[#allocation151_spill] sm:$0xff] %v5408_v31  ;;  %1956 = vmatpush.msrb.mxu2 %v5423_v47  ;;  %v5426_v31 = vld [vmem:[#allocation12 + $0x150] sm:$0xff] }
 0x295   : > { %6564 = vst [vmem:[#allocation152_spill] sm:$0xff] %v5411_v13  ;;  %1917 = vmatpush.msrb.mxu0 %v5426_v31  ;;  %v5429_v13 = vld [vmem:[#allocation12 + $0x158] sm:$0xff] }
 0x296   : > { %6565 = vst [vmem:[#allocation153_spill] sm:$0xff] %v5414_v2  ;;  %1957 = vmatpush.msrb.mxu2 %v5429_v13  ;;  %v5432_v2 = vld [vmem:[#allocation12 + $0x130] sm:$0xff] }
 0x297   : > { %6566 = vst [vmem:[#allocation154_spill] sm:$0xff] %v5417_v36  ;;  %1918 = vmatpush.msrb.mxu0 %v5432_v2  ;;  %v5435_v36 = vld [vmem:[#allocation12 + $0x138] sm:$0xff] }
 0x298   : > { %6567 = vst [vmem:[#allocation155_spill] sm:$0xff] %v5420_v59  ;;  %1958 = vmatpush.msrb.mxu2 %v5435_v36  ;;  %v5438_v59 = vld [vmem:[#allocation12 + $0x110] sm:$0xff] }
 0x299   : > { %6568 = vst [vmem:[#allocation156_spill] sm:$0xff] %v5423_v47  ;;  %1919 = vmatpush.msrb.mxu0 %v5438_v59  ;;  %v5441_v47 = vld [vmem:[#allocation12 + $0x118] sm:$0xff] }
 0x29a   : > { %6569 = vst [vmem:[#allocation157_spill] sm:$0xff] %v5426_v31  ;;  %1959 = vmatpush.msrb.mxu2 %v5441_v47  ;;  %v5444_v31 = vld [vmem:[#allocation12 + $0xf0] sm:$0xff] }
 0x29b   : > { %6570 = vst [vmem:[#allocation158_spill] sm:$0xff] %v5429_v13  ;;  %1920 = vmatpush.msrb.mxu0 %v5444_v31  ;;  %v5447_v13 = vld [vmem:[#allocation12 + $0xf8] sm:$0xff] }
 0x29c   : > { %6571 = vst [vmem:[#allocation159_spill] sm:$0xff] %v5432_v2  ;;  %1960 = vmatpush.msrb.mxu2 %v5447_v13  ;;  %v5450_v2 = vld [vmem:[#allocation12 + $0xd0] sm:$0xff] }
 0x29d   : > { %6572 = vst [vmem:[#allocation160_spill] sm:$0xff] %v5435_v36  ;;  %1921 = vmatpush.msrb.mxu0 %v5450_v2  ;;  %v5453_v36 = vld [vmem:[#allocation12 + $0xd8] sm:$0xff] }
 0x29e   : > { %6573 = vst [vmem:[#allocation161_spill] sm:$0xff] %v5438_v59  ;;  %1961 = vmatpush.msrb.mxu2 %v5453_v36  ;;  %v5456_v59 = vld [vmem:[#allocation12 + $0xb0] sm:$0xff] }
 0x29f   : > { %6574 = vst [vmem:[#allocation162_spill] sm:$0xff] %v5441_v47  ;;  %1922 = vmatpush.msrb.mxu0 %v5456_v59  ;;  %v5459_v47 = vld [vmem:[#allocation12 + $0xb8] sm:$0xff] }
 0x2a0   : > { %6575 = vst [vmem:[#allocation163_spill] sm:$0xff] %v5444_v31  ;;  %1962 = vmatpush.msrb.mxu2 %v5459_v47  ;;  %v5462_v31 = vld [vmem:[#allocation12 + $0x90] sm:$0xff] }
 0x2a1   : > { %6576 = vst [vmem:[#allocation164_spill] sm:$0xff] %v5447_v13  ;;  %1923 = vmatpush.msrb.mxu0 %v5462_v31  ;;  %v5465_v13 = vld [vmem:[#allocation12 + $0x98] sm:$0xff] }
 0x2a2   : > { %6577 = vst [vmem:[#allocation165_spill] sm:$0xff] %v5450_v2  ;;  %1963 = vmatpush.msrb.mxu2 %v5465_v13  ;;  %v1344_v2 = vld [vmem:[#allocation13 + $0x4] sm:$0xf] }
 0x2a3   : > { %6578 = vst [vmem:[#allocation166_spill] sm:$0xff] %v5453_v36  ;;  %1924 = vmatpush.msrb.mxu0 %v5468_v43  ;;  %v5471_v36 = vld [vmem:[#allocation12 + $0x78] sm:$0xff]  ;;  %v1347_v61 = vperm.slane %v1344_v2, 1  ;;  %v1349_v37 = vperm.slane %v1344_v2, 3 }
 0x2a4   : > { %6579 = vst [vmem:[#allocation167_spill] sm:$0xff] %v5456_v59  ;;  %1964 = vmatpush.msrb.mxu2 %v5471_v36  ;;  %v1346_v59 = vperm.slane %v1344_v2, 0 }
 0x2a5   : > { %6580 = vst [vmem:[#allocation168_spill] sm:$0xff] %v5459_v47  ;;  %1925 = vmatpush.msrb.mxu0 %v5474_v55  ;;  %v5477_v47 = vld [vmem:[#allocation12 + $0x58] sm:$0xff] }
 0x2a6   : > { %6581 = vst [vmem:[#allocation169_spill] sm:$0xff] %v5462_v31  ;;  %1965 = vmatpush.msrb.mxu2 %v5477_v47  ;;  %v5480_v31 = vld [vmem:[#allocation12 + $0x30] sm:$0xff] }
 0x2a7   : > { %6582 = vst [vmem:[#allocation170_spill] sm:$0xff] %v5465_v13  ;;  %1926 = vmatpush.msrb.mxu0 %v5480_v31  ;;  %v5483_v13 = vld [vmem:[#allocation12 + $0x38] sm:$0xff] }
 0x2a8   : > { %6583 = vst [vmem:[#allocation171_spill] sm:$0xff] %v5468_v43  ;;  %1966 = vmatpush.msrb.mxu2 %v5483_v13  ;;  %v1371_v43 = vpop.f32.mrf.mxu0 }
 0x2a9   : > { %6584 = vst [vmem:[#allocation172_spill] sm:$0xff] %v5471_v36  ;;  %v1372_v4 = vadd.f32 %v1371_v43, %v1346_v59  ;;  %v5486_v36 = vld [vmem:[#allocation12 + $0x10] sm:$0xff] }
 0x2aa   : > { %6585 = vst [vmem:[#allocation173_spill] sm:$0xff] %v5474_v55  ;;  %1927 = vmatpush.msrb.mxu0 %v5486_v36  ;;  %1967 = vmatpush.msrb.mxu2 %v5489_v35  ;;  %v1391_v55 = vpop.f32.mrf.mxu1 }
 0x2ab   : > { %6586 = vst [vmem:[#allocation174_spill] sm:$0xff] %v5477_v47  ;;  %v1392_v47 = vadd.f32 %v1391_v55, %v1372_v4  ;;  %v1348_v4 = vperm.slane %v1344_v2, 2 }
 0x2ac   : > { %6587 = vst [vmem:[#allocation175_spill] sm:$0xff] %v5480_v31  ;;  %v1411_v31 = vpop.f32.mrf.mxu2 }
 0x2ad   : > { %6588 = vst [vmem:[#allocation176_spill] sm:$0xff] %v5483_v13  ;;  %v2705_v41 = vmul.f32 -1.442695, %v1392_v47  ;;  %v1412_v39 = vadd.f32 %v1411_v31, %v1347_v61 }
 0x2ae   : > { %6589 = vst [vmem:[#allocation177_spill] sm:$0xff] %v5486_v36 }
 0x2af   : > { %2885 = vpow2.f32 %v2705_v41  ;;  %v1432_v40 = vadd.f32 %v1431_v10, %v1412_v39  ;;  %v5492_v10 = vld [vmem:[#allocation13] sm:$0xf] }
 0x2b0   : > { %v1451_v47 = vpop.f32.mrf.mxu0 }
 0x2b1   : > { %v2706_v13 = vmul.f32 -1.442695, %v1432_v40  ;;  %v1452_v39 = vadd.f32 %v1451_v47, %v1348_v4 }
 0x2b3   : > { %2887 = vpow2.f32 %v2706_v13  ;;  %v1471_v13 = vpop.f32.mrf.mxu1 }
 0x2b4   : > { %v1491_v21 = vpop.f32.mrf.mxu2 }
 0x2b5   : > { %v2886_v43 = vpop.eup %2885  ;;  %v1492_v36 = vadd.f32 %v1491_v21, %v1349_v37  ;;  %v1472_v37 = vadd.f32 %v1471_v13, %v1452_v39 }
 0x2b6   : > { %v1517_v59 = vadd.f32 1.0, %v2886_v43 }
 0x2b7   : > { %v1512_v57 = vadd.f32 %v1511_v1, %v1492_v36 }
 0x2b8   : > { %2889 = vrcp.f32 %v1517_v59  ;;  %vm1523_vm5 = vweird.f32 %v1517_v59  ;;  %v1527_v2 = vand.u32 2147483647, %v1517_v59 }
 0x2b9   : > { %v2888_v35 = vpop.eup %2887  ;;  %v2707_v27 = vmul.f32 -1.442695, %v1512_v57  ;;  %v1587_v57 = vperm.slane %v5492_v10, 0 }
 0x2ba   : > { %v1536_v55 = vadd.f32 1.0, %v2888_v35  ;;  %v1529_v35 = vand.u32 2147483648, %v1517_v59  ;;  %vm1528_vm9 = vcmp.eq.f32.partialorder %v1527_v2, 8.507059e+37 }
 0x2bb   : > { %2891 = vpow2.f32 %v2707_v27  ;;  %v1632_v19 = vpop.f32.mrf.mxu1 }
 0x2bc   : > { %2893 = vrcp.f32 %v1536_v55  ;;  %v1548_v4 = vand.u32 2147483648, %v1536_v55  ;;  %vm1542_vm8 = vweird.f32 %v1536_v55 }
 0x2be   : > { %v2890_v45 = vpop.eup %2889  ;;  %v1549_v0 = vor.u32 1.1754944e-38, %v1548_v4 }
 0x2bf   : > { %v1519_v41 = vmul.f32 %v2890_v45, %v1517_v59  ;;  %vm1524_vm4 = vweird.f32 %v2890_v45  ;;  %v1588_v59 = vperm.slane %v5492_v10, 1 }
 0x2c0   : > { %vm5495_vm6 = vmor %vm1523_vm5, %vm1524_vm4 }
 0x2c1   : > { %v1520_v40 = vsub.f32 1.0, %v1519_v41  ;;  %v2892_v61 = vpop.eup %2891  ;;  %v1546_v41 = vand.u32 2147483647, %v1536_v55 }
 0x2c2   : > { %v2894_v21 = vpop.eup %2893  ;;  %v1556_v43 = vadd.f32 1.0, %v2892_v61  ;;  %v1652_v47 = vpop.f32.mrf.mxu2 }
 0x2c3   : > { %v1521_v31 = vmul.f32 %v2890_v45, %v1520_v40  ;;  %v1538_v1 = vmul.f32 %v2894_v21, %v1536_v55  ;;  %v1612_v40 = vpop.f32.mrf.mxu0  ;;  %vm1543_vm7 = vweird.f32 %v2894_v21  ;;  %vm1547_vm11 = vcmp.eq.f32.partialorder %v1546_v41, 8.507059e+37 }
 0x2c4   : > { %2895 = vrcp.f32 %v1556_v43  ;;  %v1613_v13 = vadd.f32 %v1612_v40, %v1587_v57  ;;  %vm1544_vm10 = vmor %vm1542_vm8, %vm1543_vm7  ;;  %v1653_v57 = vadd.f32 %v1652_v47, %v1588_v59  ;;  %vm1562_vm13 = vweird.f32 %v1556_v43  ;;  %v6625_v59 = vld [vmem:[#allocation99_spill] sm:$0xff] }
 0x2c5   : > { %v1522_v36 = vadd.f32 %v2890_v45, %v1521_v31  ;;  %v1539_v27 = vsub.f32 1.0, %v1538_v1  ;;  %2897 = vtanh.f32 %v1472_v37  ;;  %v1530_v31 = vor.u32 1.1754944e-38, %v1529_v35  ;;  %v1672_v35 = vpop.f32.mrf.mxu3 }
 0x2c6   : > { %v1673_v4 = vadd.f32 %v1672_v35, %v1653_v57 }
 0x2c7   : > { %v1540_v39 = vmul.f32 %v2894_v21, %v1539_v27  ;;  %v1526_v61 = vsel %vm5495_vm6, %v2890_v45, %v1522_v36  ;;  %v1633_v27 = vadd.f32 %v1632_v19, %v1613_v13  ;;  %v1568_v19 = vand.u32 2147483648, %v1556_v43 }
 0x2c8   : > { %v1531_v17 = vsel %vm1528_vm9, %v1530_v31, %v1526_v61  ;;  %v2711_v41 = vmul.f32 -1.442695, %v1673_v4 }
 0x2c9   : > { %v1541_v1 = vadd.f32 %v2894_v21, %v1540_v39  ;;  %v2710_v39 = vmul.f32 -1.442695, %v1633_v27  ;;  %v6601_v27 = vld [vmem:[#allocation75_spill] sm:$0xff] }
 0x2ca   : > { %v2896_v38 = vpop.eup %2895 }
 0x2cb   : > { %v1545_v46 = vsel %vm1544_vm10, %v2894_v21, %v1541_v1  ;;  %v1558_v37 = vmul.f32 %v2896_v38, %v1556_v43  ;;  %v2898_v25 = vpop.eup %2897  ;;  %vm1563_vm12 = vweird.f32 %v2896_v38 }
 0x2cc   : > { %v1550_v7 = vsel %vm1547_vm11, %v1549_v0, %v1545_v46  ;;  %v1574_v36 = vmul.f32 %v2898_v25, %v1531_v17  ;;  %v1566_v46 = vand.u32 2147483647, %v1556_v43  ;;  %vm1564_vm14 = vmor %vm1562_vm13, %vm1563_vm12 }
 0x2cd   : > { %v1573_v45 = vmul.f32 %v1550_v7, %v4791_v44  ;;  %v1559_v55 = vsub.f32 1.0, %v1558_v37  ;;  %v1569_v7 = vor.u32 1.1754944e-38, %v1568_v19  ;;  %v6600_v37 = vld [vmem:[#allocation78_spill] sm:$0xff]  ;;  %v6604_v19 = vld [vmem:[#allocation77_spill] sm:$0xff] }
 0x2ce   : > { %vm1567_vm15 = vcmp.eq.f32.partialorder %v1566_v46, 8.507059e+37 }
 0x2cf   : > { %v5503_v2 = vadd.f32 %v1574_v36, %v1573_v45  ;;  %v1560_v40 = vmul.f32 %v2896_v38, %v1559_v55 }
 0x2d1   : > { %2899 = vtanh.f32 %v5503_v2  ;;  %v1561_v21 = vadd.f32 %v2896_v38, %v1560_v40 }
 0x2d2   : > { %2901 = vpow2.f32 %v2710_v39 }
 0x2d3   : > { %v1565_v44 = vsel %vm1564_vm14, %v2896_v38, %v1561_v21  ;;  %2903 = vpow2.f32 %v2711_v41 }
 0x2d4   : > { %v1570_v17 = vsel %vm1567_vm15, %v1569_v7, %v1565_v44  ;;  %v6605_v44 = vld [vmem:[#allocation79_spill] sm:$0xff]  ;;  %v6607_v7 = vld [vmem:[#allocation81_spill] sm:$0xff] }
 0x2d7   : > { %v2900_v25 = vpop.eup %2899 }
 0x2d8   : > { %v1577_v0 = vmul.f32 %v2900_v25, %v1570_v17  ;;  %v2902_v61 = vpop.eup %2901  ;;  %v6608_v25 = vld [vmem:[#allocation84_spill] sm:$0xff]  ;;  %v6609_v17 = vld [vmem:[#allocation85_spill] sm:$0xff] }
 0x2d9   : > { %v2904_v13 = vpop.eup %2903  ;;  %v5509_v31 = vadd.f32 1.0, %v2902_v61 }
 0x2da   : > { %2708 = vst [vmem:[%s3742_s29 + $0x8] sm:$0xff] %v1577_v0  ;;  %1868 = vmatmul.f32.vlgmr.msra.gmra.mxu1 %v1577_v0  ;;  %1908 = vmatmul.f32.vlgmr.msra.gmra.mxu3 %v1577_v0  ;;  %v5511_v43 = vadd.f32 1.0, %v2904_v13 }
 0x2db   : > { %2093 = vmatpush.msra.mxu1 %v4795_v11  ;;  %2133 = vmatpush.msra.mxu3 %v4798_v6  ;;  %2905 = vrcp.f32 %v5509_v31  ;;  %vm1764_vm2 = vweird.f32 %v5509_v31  ;;  %v1768_v38 = vand.u32 2147483647, %v5509_v31 }
 0x2dc   : > { %2907 = vrcp.f32 %v5511_v43  ;;  %vm1783_vm3 = vweird.f32 %v5511_v43 }
 0x2dd   : > { %2094 = vmatpush.msra.mxu1 %v4805_v8  ;;  %2134 = vmatpush.msra.mxu3 %v4808_v18  ;;  %v1589_v8 = vperm.slane %v5492_v10, 2  ;;  %v1590_v18 = vperm.slane %v5492_v10, 3  ;;  %v1787_v10 = vand.u32 2147483647, %v5511_v43  ;;  %vm1769_vm6 = vcmp.eq.f32.partialorder %v1768_v38, 8.507059e+37  ;;  %v6624_v38 = vld [vmem:[#allocation98_spill] sm:$0xff] }
 0x2df   : > { %2095 = vmatpush.msra.mxu1 %v4811_v12  ;;  %2135 = vmatpush.msra.mxu3 %v4814_v22  ;;  %vm1788_vm7 = vcmp.eq.f32.partialorder %v1787_v10, 8.507059e+37  ;;  %v3233_v10 = vld [vmem:[#allocation10 + $0x120] sm:$0xff] }
 0x2e1   : > { %2096 = vmatpush.msra.mxu1 %v4819_v24  ;;  %2136 = vmatpush.msra.mxu3 %v4822_v32  ;;  %v5525_v11 = vpop.eup %2905  ;;  %v1692_v24 = vpop.f32.mrf.mxu0 }
 0x2e2   : > { %1948 = vmatmul.f32.vlgmr.msrb.gmra.mxu1 %v1577_v0  ;;  %1988 = vmatmul.f32.vlgmr.msrb.gmra.mxu3 %v1577_v0  ;;  %v5527_v6 = vpop.eup %2907  ;;  %v1760_v12 = vmul.f32 %v5525_v11, %v5509_v31  ;;  %v1732_v32 = vpop.f32.mrf.mxu2  ;;  %vm1765_vm0 = vweird.f32 %v5525_v11  ;;  %v6610_v0 = vld [vmem:[#allocation86_spill] sm:$0xff] }
 0x2e3   : > { %2097 = vmatpush.msra.mxu1 %v4825_v42  ;;  %2137 = vmatpush.msra.mxu3 %v4828_v50  ;;  %v1779_v22 = vmul.f32 %v5527_v6, %v5511_v43  ;;  %v1693_v42 = vadd.f32 %v1692_v24, %v1589_v8  ;;  %v1733_v50 = vadd.f32 %v1732_v32, %v1590_v18  ;;  %vm1784_vm1 = vweird.f32 %v5527_v6  ;;  %vm5563_vm4 = vmor %vm1764_vm2, %vm1765_vm0  ;;  %v6614_v24 = vld [vmem:[#allocation88_spill] sm:$0xff] }
 0x2e4   : > { %vm5569_vm5 = vmor %vm1783_vm3, %vm1784_vm1 }
 0x2e5   : > { %2098 = vmatpush.msra.mxu1 %v4831_v26  ;;  %2138 = vmatpush.msra.mxu3 %v4834_v48  ;;  %v1752_v26 = vpop.f32.mrf.mxu3  ;;  %v1761_v48 = vsub.f32 1.0, %v1760_v12 }
 0x2e7   : > { %2099 = vmatpush.msra.mxu1 %v4841_v58  ;;  %2139 = vmatpush.msra.mxu3 %v4844_v62  ;;  %v1780_v58 = vsub.f32 1.0, %v1779_v22  ;;  %v1753_v62 = vadd.f32 %v1752_v26, %v1733_v50  ;;  %v6613_v22 = vld [vmem:[#allocation51_spill] sm:$0xff]  ;;  %v3221_v50 = vld [vmem:[#allocation10 + $0x1e0] sm:$0xff]  ;;  %v3222_v26 = vld [vmem:[#allocation10 + $0x1e8] sm:$0xff] }
 0x2e9   : > { %2100 = vmatpush.msra.mxu1 %v4849_v60  ;;  %2140 = vmatpush.msra.mxu3 %v4852_v9  ;;  %v1712_v60 = vpop.f32.mrf.mxu1 }
 0x2ea   : > { %v1713_v9 = vadd.f32 %v1712_v60, %v1693_v42  ;;  %v6615_v42 = vld [vmem:[#allocation89_spill] sm:$0xff]  ;;  %v3225_v60 = vld [vmem:[#allocation10 + $0x1a0] sm:$0xff] }
 0x2eb   : > { %2101 = vmatpush.msra.mxu1 %v4859_v30  ;;  %2141 = vmatpush.msra.mxu3 %v4862_v23  ;;  %v2712_v30 = vmul.f32 -1.442695, %v1753_v62  ;;  %v1781_v23 = vmul.f32 %v5527_v6, %v1780_v58  ;;  %v6617_v58 = vld [vmem:[#allocation54_spill] sm:$0xff] }
 0x2ec   : > { %v6618_v62 = vld [vmem:[#allocation90_spill] sm:$0xff] }
 0x2ed   : > { %2102 = vmatpush.msra.mxu1 %v4865_v49  ;;  %2142 = vmatpush.msra.mxu3 %v4868_v53  ;;  %v1762_v49 = vmul.f32 %v5525_v11, %v1761_v48  ;;  %2909 = vpow2.f32 %v2712_v30  ;;  %v6593_v53 = vld [vmem:[#allocation71_spill] sm:$0xff]  ;;  %v3224_v48 = vld [vmem:[#allocation10 + $0x1c8] sm:$0xff] }
 0x2ee   : > { %2911 = vtanh.f32 %v1713_v9  ;;  %v3226_v9 = vld [vmem:[#allocation10 + $0x1a8] sm:$0xff]  ;;  %v6619_v30 = vld [vmem:[#allocation91_spill] sm:$0xff] }
 0x2ef   : > { %2103 = vmatpush.msra.mxu1 %v4871_v29  ;;  %2143 = vmatpush.msra.mxu3 %v4874_v5  ;;  %v1763_v29 = vadd.f32 %v5525_v11, %v1762_v49  ;;  %v1782_v5 = vadd.f32 %v5527_v6, %v1781_v23  ;;  %v6620_v23 = vld [vmem:[#allocation92_spill] sm:$0xff] }
 0x2f0   : > { %v3227_v49 = vld [vmem:[#allocation10 + $0x180] sm:$0xff] }
 0x2f1   : > { %2104 = vmatpush.msra.mxu1 %v4877_v15  ;;  %2144 = vmatpush.msra.mxu3 %v4880_v51  ;;  %v1789_v15 = vand.u32 2147483648, %v5511_v43  ;;  %v1770_v51 = vand.u32 2147483648, %v5509_v31  ;;  %v1767_v47 = vsel %vm5563_vm4, %v5525_v11, %v1763_v29  ;;  %v1786_v45 = vsel %vm5569_vm5, %v5527_v6, %v1782_v5  ;;  %v6611_v31 = vld [vmem:[#allocation87_spill] sm:$0xff]  ;;  %v6612_v6 = vld [vmem:[#allocation50_spill] sm:$0xff]  ;;  %v3229_v29 = vld [vmem:[#allocation10 + $0x160] sm:$0xff] }
 0x2f2   : > { %v3230_v5 = vld [vmem:[#allocation10 + $0x168] sm:$0xff] }
 0x2f3   : > { %2105 = vmatpush.msra.mxu1 %v4885_v33  ;;  %2145 = vmatpush.msra.mxu3 %v4888_v56  ;;  %v6594_v33 = vld [vmem:[#allocation76_spill] sm:$0xff]  ;;  %v6595_v56 = vld [vmem:[#allocation73_spill] sm:$0xff]  ;;  %v2910_v1 = vpop.eup %2909  ;;  %v1790_v57 = vor.u32 1.1754944e-38, %v1789_v15  ;;  %v1771_v35 = vor.u32 1.1754944e-38, %v1770_v51  ;;  %v6622_v51 = vld [vmem:[#allocation94_spill] sm:$0xff] }
 0x2f4   : > { %v1797_v36 = vadd.f32 1.0, %v2910_v1  ;;  %v2912_v55 = vpop.eup %2911  ;;  %v6621_v15 = vld [vmem:[#allocation93_spill] sm:$0xff] }
 0x2f5   : > { %2106 = vmatpush.msra.mxu1 %v4892_v3  ;;  %2146 = vmatpush.msra.mxu3 %v6593_v53  ;;  %v1772_v40 = vsel %vm1769_vm6, %v1771_v35, %v1767_v47  ;;  %v1791_v39 = vsel %vm1788_vm7, %v1790_v57, %v1786_v45  ;;  %v3228_v53 = vld [vmem:[#allocation10 + $0x188] sm:$0xff]  ;;  %v6623_v3 = vld [vmem:[#allocation95_spill] sm:$0xff]  ;;  %v3237_v45 = vld [vmem:[#allocation10 + $0xe0] sm:$0xff] }
 0x2f6   : > { %2913 = vrcp.f32 %v1797_v36  ;;  %v1815_v4 = vmul.f32 %v2912_v55, %v1772_v40  ;;  %v1807_v13 = vand.u32 2147483647, %v1797_v36  ;;  %vm1803_vm9 = vweird.f32 %v1797_v36  ;;  %v3234_v1 = vld [vmem:[#allocation10 + $0x128] sm:$0xff]  ;;  %v3239_v35 = vld [vmem:[#allocation10 + $0xc0] sm:$0xff] }
 0x2f7   : > { %2107 = vmatpush.msra.mxu1 %v6594_v33  ;;  %2147 = vmatpush.msra.mxu3 %v6595_v56  ;;  %v3231_v33 = vld [vmem:[#allocation10 + $0x140] sm:$0xff]  ;;  %v3232_v56 = vld [vmem:[#allocation10 + $0x148] sm:$0xff] }
 0x2f8   : > { %vm1808_vm11 = vcmp.eq.f32.partialorder %v1807_v13, 8.507059e+37  ;;  %v3236_v47 = vld [vmem:[#allocation10 + $0x108] sm:$0xff]  ;;  %v6638_v13 = vld [vmem:[#allocation110_spill] sm:$0xff] }
 0x2f9   : > { %2108 = vmatpush.msra.mxu1 %v6600_v37  ;;  %2148 = vmatpush.msra.mxu3 %v6601_v27  ;;  %v6626_v37 = vld [vmem:[#allocation96_spill] sm:$0xff]  ;;  %v6627_v55 = vld [vmem:[#allocation97_spill] sm:$0xff] }
 0x2fa   : > { %v3235_v27 = vld [vmem:[#allocation10 + $0x100] sm:$0xff]  ;;  %v6628_v57 = vld [vmem:[#allocation101_spill] sm:$0xff] }
 0x2fb   : > { %2173 = vmatpush.msrb.mxu1 %v4937_v16  ;;  %2213 = vmatpush.msrb.mxu3 %v4940_v20  ;;  %v6602_v16 = vld [vmem:[#allocation82_spill] sm:$0xff]  ;;  %v6603_v20 = vld [vmem:[#allocation80_spill] sm:$0xff]  ;;  %v3240_v40 = vld [vmem:[#allocation10 + $0xc8] sm:$0xff] }
 0x2fc   : > { %v1814_v21 = vmul.f32 %v1791_v39, %v6602_v16  ;;  %v2914_v41 = vpop.eup %2913  ;;  %v6629_v39 = vld [vmem:[#allocation100_spill] sm:$0xff] }
 0x2fd   : > { %2174 = vmatpush.msrb.mxu1 %v4943_v54  ;;  %2214 = vmatpush.msrb.mxu3 %v4946_v52  ;;  %v6606_v54 = vld [vmem:[#allocation83_spill] sm:$0xff]  ;;  %v1799_v52 = vmul.f32 %v2914_v41, %v1797_v36  ;;  %vm1804_vm8 = vweird.f32 %v2914_v41  ;;  %v3241_v16 = vld [vmem:[#allocation10 + $0xa0] sm:$0xff] }
 0x2fe   : > { %v5590_v46 = vadd.f32 %v1815_v4, %v1814_v21  ;;  %vm1805_vm10 = vmor %vm1803_vm9, %vm1804_vm8  ;;  %v6630_v4 = vld [vmem:[#allocation102_spill] sm:$0xff]  ;;  %v3242_v21 = vld [vmem:[#allocation10 + $0xa8] sm:$0xff] }
 0x2ff   : > { %2175 = vmatpush.msrb.mxu1 %v4949_v28  ;;  %2215 = vmatpush.msrb.mxu3 %v4952_v34  ;;  %v1800_v28 = vsub.f32 1.0, %v1799_v52  ;;  %v1809_v34 = vand.u32 2147483648, %v1797_v36  ;;  %v3238_v36 = vld [vmem:[#allocation10 + $0xe8] sm:$0xff]  ;;  %v6634_v52 = vld [vmem:[#allocation106_spill] sm:$0xff] }
 0x300   : > { %2915 = vtanh.f32 %v5590_v46 }
 0x301   : > { %2176 = vmatpush.msrb.mxu1 %v6603_v20  ;;  %2216 = vmatpush.msrb.mxu3 %v6604_v19  ;;  %v1801_v61 = vmul.f32 %v2914_v41, %v1800_v28  ;;  %v1810_v11 = vor.u32 1.1754944e-38, %v1809_v34  ;;  %v6631_v20 = vld [vmem:[#allocation103_spill] sm:$0xff]  ;;  %v6632_v19 = vld [vmem:[#allocation104_spill] sm:$0xff] }
 0x302   : > { %v6635_v28 = vld [vmem:[#allocation107_spill] sm:$0xff]  ;;  %v6636_v34 = vld [vmem:[#allocation108_spill] sm:$0xff] }
 0x303   : > { %2177 = vmatpush.msrb.mxu1 %v6605_v44  ;;  %2217 = vmatpush.msrb.mxu3 %v6606_v54  ;;  %v1802_v43 = vadd.f32 %v2914_v41, %v1801_v61  ;;  %v3244_v44 = vld [vmem:[#allocation10 + $0x88] sm:$0xff] }
 0x304   : > { %v6633_v54 = vld [vmem:[#allocation105_spill] sm:$0xff] }
 0x305   : > { %2178 = vmatpush.msrb.mxu1 %v6607_v7  ;;  %2218 = vmatpush.msrb.mxu3 %v6608_v25  ;;  %v1806_v8 = vsel %vm1805_vm10, %v2914_v41, %v1802_v43  ;;  %v3243_v41 = vld [vmem:[#allocation10 + $0x80] sm:$0xff]  ;;  %v3246_v25 = vld [vmem:[#allocation10 + $0x68] sm:$0xff] }
 0x306   : > { %v2916_v18 = vpop.eup %2915  ;;  %v1811_v12 = vsel %vm1808_vm11, %v1810_v11, %v1806_v8  ;;  %v3245_v7 = vld [vmem:[#allocation10 + $0x60] sm:$0xff]  ;;  %v6637_v61 = vld [vmem:[#allocation109_spill] sm:$0xff]  ;;  %v5630_v11 = vld [vmem:[%s3724_s13 + $0x18] sm:$0xff] }
 0x307   : > { %2179 = vmatpush.msrb.mxu1 %v6609_v17  ;;  %2219 = vmatpush.msrb.mxu3 %v6610_v0  ;;  %v1818_v32 = vmul.f32 %v2916_v18, %v1811_v12  ;;  %v3247_v17 = vld [vmem:[#allocation10 + $0x40] sm:$0xff]  ;;  %v3248_v0 = vld [vmem:[#allocation10 + $0x48] sm:$0xff] }
 0x308   : > { %v3250_v43 = vld [vmem:[#allocation10 + $0x28] sm:$0xff]  ;;  %v6640_v8 = vld [vmem:[#allocation112_spill] sm:$0xff] }
 0x309   : > { %2180 = vmatpush.msrb.mxu1 %v6611_v31  ;;  %2220 = vmatpush.msrb.mxu3 %v4986_v14  ;;  %v6616_v14 = vld [vmem:[#allocation53_spill] sm:$0xff]  ;;  %v3249_v31 = vld [vmem:[#allocation10 + $0x20] sm:$0xff] }
 0x30a   : > { %1848 = vmatmul.f32.vlgmr.msra.gmra.mxu0 %v1818_v32  ;;  %1888 = vmatmul.f32.vlgmr.msra.gmra.mxu2 %v1818_v32  ;;  %v3251_v18 = vld [vmem:[#allocation10] sm:$0xff]  ;;  %v3252_v12 = vld [vmem:[#allocation10 + $0x8] sm:$0xff] }
 0x30b   : > { %2181 = vmatpush.msrb.mxu1 %v6612_v6  ;;  %2221 = vmatpush.msrb.mxu3 %v4992_v63  ;;  %v3223_v63 = vld [vmem:[#allocation10 + $0x1c0] sm:$0xff]  ;;  %v6639_v6 = vld [vmem:[#allocation111_spill] sm:$0xff] }
 0x30c   : > { %2073 = vmatpush.msra.mxu0 %v3221_v50  ;;  %2113 = vmatpush.msra.mxu2 %v3222_v26  ;;  %v3256_v50 = vld [vmem:[#allocation10 + $0x1d8] sm:$0xff] }
 0x30d   : > { %2182 = vmatpush.msrb.mxu1 %v6613_v22  ;;  %2222 = vmatpush.msrb.mxu3 %v6614_v24  ;;  %v3253_v22 = vld [vmem:[#allocation10 + $0x1f0] sm:$0xff]  ;;  %v3254_v24 = vld [vmem:[#allocation10 + $0x1f8] sm:$0xff] }
 0x30e   : > { %2109 = vmatmul.f32.vlgmr.msra.gmra.mxu1 %v1818_v32  ;;  %2149 = vmatmul.f32.vlgmr.msra.gmra.mxu3 %v1818_v32  ;;  %v6643_v26 = vld [vmem:[#allocation115_spill] sm:$0xff] }
 0x30f   : > { %2183 = vmatpush.msrb.mxu1 %v6615_v42  ;;  %2223 = vmatpush.msrb.mxu3 %v6616_v14  ;;  %v6642_v42 = vld [vmem:[#allocation114_spill] sm:$0xff] }
 0x310   : > { %2074 = vmatpush.msra.mxu0 %v3223_v63  ;;  %2114 = vmatpush.msra.mxu2 %v3224_v48  ;;  %v3255_v14 = vld [vmem:[#allocation10 + $0x1d0] sm:$0xff]  ;;  %v6644_v63 = vld [vmem:[#allocation116_spill] sm:$0xff] }
 0x311   : > { %2184 = vmatpush.msrb.mxu1 %v6617_v58  ;;  %2224 = vmatpush.msrb.mxu3 %v6618_v62  ;;  %v3257_v48 = vld [vmem:[#allocation10 + $0x1b0] sm:$0xff]  ;;  %v3258_v58 = vld [vmem:[#allocation10 + $0x1b8] sm:$0xff]  ;;  %v6645_v62 = vld [vmem:[#allocation117_spill] sm:$0xff] }
 0x312   : > { %2075 = vmatpush.msra.mxu0 %v3225_v60  ;;  %2115 = vmatpush.msra.mxu2 %v3226_v9  ;;  %v6646_v60 = vld [vmem:[#allocation118_spill] sm:$0xff] }
 0x313   : > { %2185 = vmatpush.msrb.mxu1 %v6619_v30  ;;  %2225 = vmatpush.msrb.mxu3 %v6620_v23  ;;  %v3259_v9 = vld [vmem:[#allocation10 + $0x190] sm:$0xff]  ;;  %v3260_v30 = vld [vmem:[#allocation10 + $0x198] sm:$0xff] }
 0x314   : > { %2076 = vmatpush.msra.mxu0 %v3227_v49  ;;  %2116 = vmatpush.msra.mxu2 %v3228_v53  ;;  %v6647_v23 = vld [vmem:[#allocation119_spill] sm:$0xff]  ;;  %v6648_v49 = vld [vmem:[#allocation120_spill] sm:$0xff]  ;;  %v3261_v53 = vld [vmem:[#allocation10 + $0x170] sm:$0xff] }
 0x315   : > { %1928 = vmatmul.f32.vlgmr.msrb.gmra.mxu0 %v1818_v32  ;;  %1968 = vmatmul.f32.vlgmr.msrb.gmra.mxu2 %v1818_v32 }
 0x316   : > { %2077 = vmatpush.msra.mxu0 %v3229_v29  ;;  %2117 = vmatpush.msra.mxu2 %v3230_v5  ;;  %v3262_v29 = vld [vmem:[#allocation10 + $0x178] sm:$0xff]  ;;  %v6649_v5 = vld [vmem:[#allocation121_spill] sm:$0xff] }
 0x317   : > { %2186 = vmatpush.msrb.mxu1 %v6621_v15  ;;  %2226 = vmatpush.msrb.mxu3 %v6622_v51  ;;  %v6650_v15 = vld [vmem:[#allocation23_spill] sm:$0xff]  ;;  %v3263_v51 = vld [vmem:[#allocation10 + $0x150] sm:$0xff] }
 0x318   : > { %2078 = vmatpush.msra.mxu0 %v3231_v33  ;;  %2118 = vmatpush.msra.mxu2 %v3232_v56  ;;  %v3264_v33 = vld [vmem:[#allocation10 + $0x158] sm:$0xff]  ;;  %v6651_v56 = vld [vmem:[#allocation21_spill] sm:$0xff] }
 0x319   : > { %2187 = vmatpush.msrb.mxu1 %v6623_v3  ;;  %2227 = vmatpush.msrb.mxu3 %v6624_v38  ;;  %v6652_v3 = vld [vmem:[#allocation25_spill] sm:$0xff]  ;;  %v3265_v38 = vld [vmem:[#allocation10 + $0x130] sm:$0xff] }
 0x31a   : > { %2079 = vmatpush.msra.mxu0 %v3233_v10  ;;  %2119 = vmatpush.msra.mxu2 %v3234_v1  ;;  %v3266_v10 = vld [vmem:[#allocation10 + $0x138] sm:$0xff]  ;;  %v6653_v1 = vld [vmem:[#allocation22_spill] sm:$0xff] }
 0x31b   : > { %2188 = vmatpush.msrb.mxu1 %v6625_v59  ;;  %2228 = vmatpush.msrb.mxu3 %v6626_v37  ;;  %v6654_v59 = vld [vmem:[#allocation24_spill] sm:$0xff]  ;;  %v3267_v37 = vld [vmem:[#allocation10 + $0x110] sm:$0xff] }
 0x31c   : > { %2080 = vmatpush.msra.mxu0 %v3235_v27  ;;  %2120 = vmatpush.msra.mxu2 %v3236_v47  ;;  %v3268_v27 = vld [vmem:[#allocation10 + $0x118] sm:$0xff]  ;;  %v6655_v47 = vld [vmem:[#allocation26_spill] sm:$0xff] }
 0x31d   : > { %2189 = vmatmul.f32.vlgmr.msrb.gmra.mxu1 %v1818_v32  ;;  %2229 = vmatmul.f32.vlgmr.msrb.gmra.mxu3 %v1818_v32  ;;  %v6641_v32 = vld [vmem:[#allocation113_spill] sm:$0xff] }
 0x31e   : > { %2081 = vmatpush.msra.mxu0 %v3237_v45  ;;  %2121 = vmatpush.msra.mxu2 %v3238_v36  ;;  %v6656_v45 = vld [vmem:[#allocation29_spill] sm:$0xff]  ;;  %v3269_v36 = vld [vmem:[#allocation10 + $0xf0] sm:$0xff] }
 0x31f   : > { %2330 = vmatpush.msra.mxu1 %v6627_v55  ;;  %2370 = vmatpush.msra.mxu3 %v6628_v57  ;;  %v3270_v55 = vld [vmem:[#allocation10 + $0xf8] sm:$0xff] }
 0x320   : > { %2082 = vmatpush.msra.mxu0 %v3239_v35  ;;  %2122 = vmatpush.msra.mxu2 %v3240_v40  ;;  %v6657_v57 = vld [vmem:[#allocation27_spill] sm:$0xff]  ;;  %v3271_v40 = vld [vmem:[#allocation10 + $0xd0] sm:$0xff] }
 0x321   : > { %2331 = vmatpush.msra.mxu1 %v6629_v39  ;;  %2371 = vmatpush.msra.mxu3 %v6630_v4  ;;  %v6658_v35 = vld [vmem:[#allocation31_spill] sm:$0xff]  ;;  %v6659_v4 = vld [vmem:[#allocation28_spill] sm:$0xff] }
 0x322   : > { %2083 = vmatpush.msra.mxu0 %v3241_v16  ;;  %2123 = vmatpush.msra.mxu2 %v3242_v21  ;;  %v3272_v39 = vld [vmem:[#allocation10 + $0xd8] sm:$0xff]  ;;  %v6660_v16 = vld [vmem:[#allocation33_spill] sm:$0xff]  ;;  %v3273_v21 = vld [vmem:[#allocation10 + $0xb0] sm:$0xff] }
 0x323   : > { %2332 = vmatpush.msra.mxu1 %v6631_v20  ;;  %2372 = vmatpush.msra.mxu3 %v6632_v19  ;;  %v3274_v20 = vld [vmem:[#allocation10 + $0xb8] sm:$0xff]  ;;  %v6661_v19 = vld [vmem:[#allocation30_spill] sm:$0xff] }
 0x324   : > { %2084 = vmatpush.msra.mxu0 %v3243_v41  ;;  %2124 = vmatpush.msra.mxu2 %v3244_v44  ;;  %v6662_v41 = vld [vmem:[#allocation35_spill] sm:$0xff]  ;;  %v3275_v44 = vld [vmem:[#allocation10 + $0x90] sm:$0xff] }
 0x325   : > { %2333 = vmatpush.msra.mxu1 %v6633_v54  ;;  %2373 = vmatpush.msra.mxu3 %v6634_v52  ;;  %v3276_v54 = vld [vmem:[#allocation10 + $0x98] sm:$0xff]  ;;  %v6663_v52 = vld [vmem:[#allocation32_spill] sm:$0xff] }
 0x326   : > { %2085 = vmatpush.msra.mxu0 %v3245_v7  ;;  %2125 = vmatpush.msra.mxu2 %v3246_v25  ;;  %v6664_v7 = vld [vmem:[#allocation37_spill] sm:$0xff]  ;;  %v3277_v25 = vld [vmem:[#allocation10 + $0x70] sm:$0xff] }
 0x327   : > { %2334 = vmatpush.msra.mxu1 %v6635_v28  ;;  %2374 = vmatpush.msra.mxu3 %v6636_v34  ;;  %v3278_v28 = vld [vmem:[#allocation10 + $0x78] sm:$0xff]  ;;  %v6665_v34 = vld [vmem:[#allocation34_spill] sm:$0xff] }
 0x328   : > { %2086 = vmatpush.msra.mxu0 %v3247_v17  ;;  %2126 = vmatpush.msra.mxu2 %v3248_v0  ;;  %v6666_v17 = vld [vmem:[#allocation39_spill] sm:$0xff]  ;;  %v3279_v0 = vld [vmem:[#allocation10 + $0x50] sm:$0xff] }
 0x329   : > { %2335 = vmatpush.msra.mxu1 %v6637_v61  ;;  %2375 = vmatpush.msra.mxu3 %v6638_v13  ;;  %v3280_v61 = vld [vmem:[#allocation10 + $0x58] sm:$0xff]  ;;  %v6667_v13 = vld [vmem:[#allocation36_spill] sm:$0xff] }
 0x32a   : > { %2087 = vmatpush.msra.mxu0 %v3249_v31  ;;  %2127 = vmatpush.msra.mxu2 %v3250_v43  ;;  %v6668_v31 = vld [vmem:[#allocation41_spill] sm:$0xff]  ;;  %v3281_v43 = vld [vmem:[#allocation10 + $0x30] sm:$0xff] }
 0x32b   : > { %2336 = vmatpush.msra.mxu1 %v6639_v6  ;;  %2376 = vmatpush.msra.mxu3 %v6640_v8  ;;  %v3282_v6 = vld [vmem:[#allocation10 + $0x38] sm:$0xff]  ;;  %v6669_v8 = vld [vmem:[#allocation38_spill] sm:$0xff] }
 0x32c   : > { %2088 = vmatpush.msra.mxu0 %v3251_v18  ;;  %2128 = vmatpush.msra.mxu2 %v3252_v12  ;;  %v6670_v18 = vld [vmem:[#allocation43_spill] sm:$0xff]  ;;  %v3283_v12 = vld [vmem:[#allocation10 + $0x10] sm:$0xff] }
 0x32d   : > { %2089 = vmatmul.f32.vlgmr.msra.gmra.mxu0 %v5630_v11  ;;  %2129 = vmatmul.f32.vlgmr.msra.gmra.mxu2 %v5630_v11 }
 0x32e   : > { %2153 = vmatpush.msrb.mxu0 %v3253_v22  ;;  %2193 = vmatpush.msrb.mxu2 %v3254_v24  ;;  %v3284_v22 = vld [vmem:[#allocation10 + $0x18] sm:$0xff]  ;;  %v6671_v24 = vld [vmem:[#allocation40_spill] sm:$0xff] }
 0x32f   : > { %2337 = vmatpush.msra.mxu1 %v6641_v32  ;;  %2377 = vmatpush.msra.mxu3 %v6642_v42  ;;  %v6672_v32 = vld [vmem:[#allocation45_spill] sm:$0xff]  ;;  %v6673_v42 = vld [vmem:[#allocation42_spill] sm:$0xff] }
 0x330   : > { %2154 = vmatpush.msrb.mxu0 %v3255_v14  ;;  %2194 = vmatpush.msrb.mxu2 %v3256_v50  ;;  %v6674_v14 = vld [vmem:[#allocation47_spill] sm:$0xff]  ;;  %v6675_v50 = vld [vmem:[#allocation44_spill] sm:$0xff] }
 0x331   : > { %2338 = vmatpush.msra.mxu1 %v6643_v26  ;;  %2378 = vmatpush.msra.mxu3 %v6644_v63  ;;  %v6676_v26 = vld [vmem:[#allocation49_spill] sm:$0xff]  ;;  %v6677_v63 = vld [vmem:[#allocation46_spill] sm:$0xff] }
 0x332   : > { %2155 = vmatpush.msrb.mxu0 %v3257_v48  ;;  %2195 = vmatpush.msrb.mxu2 %v3258_v58  ;;  %v6678_v48 = vld [vmem:[#allocation48_spill] sm:$0xff] }
 0x333   : > { %2339 = vmatpush.msra.mxu1 %v6645_v62  ;;  %2379 = vmatpush.msra.mxu3 %v6646_v60  ;;  %v6679_v58 = vld [vmem:[#allocation56_spill] sm:$0xff]  ;;  %v6682_v60 = vld [vmem:[#allocation55_spill] sm:$0xff] }
 0x334   : > { %2156 = vmatpush.msrb.mxu0 %v3259_v9  ;;  %2196 = vmatpush.msrb.mxu2 %v3260_v30  ;;  %v6680_v62 = vld [vmem:[#allocation52_spill] sm:$0xff]  ;;  %v6684_v30 = vld [vmem:[#allocation57_spill] sm:$0xff] }
 0x335   : > { %2340 = vmatpush.msra.mxu1 %v6647_v23  ;;  %2380 = vmatpush.msra.mxu3 %v6648_v49  ;;  %v6683_v9 = vld [vmem:[#allocation60_spill] sm:$0xff]  ;;  %v6685_v23 = vld [vmem:[#allocation62_spill] sm:$0xff]  ;;  %v6686_v49 = vld [vmem:[#allocation59_spill] sm:$0xff] }
 0x336   : > { %2157 = vmatpush.msrb.mxu0 %v3261_v53  ;;  %2197 = vmatpush.msrb.mxu2 %v3262_v29  ;;  %v6687_v53 = vld [vmem:[#allocation64_spill] sm:$0xff]  ;;  %v6688_v29 = vld [vmem:[#allocation61_spill] sm:$0xff] }
 0x337   : > { %2341 = vmatpush.msra.mxu1 %v6649_v5  ;;  %2381 = vmatpush.msra.mxu3 %v6650_v15  ;;  %v6689_v5 = vld [vmem:[#allocation66_spill] sm:$0xff]  ;;  %v6690_v15 = vld [vmem:[#allocation63_spill] sm:$0xff] }
 0x338   : > { %2158 = vmatpush.msrb.mxu0 %v3263_v51  ;;  %2198 = vmatpush.msrb.mxu2 %v3264_v33  ;;  %v6691_v51 = vld [vmem:[#allocation68_spill] sm:$0xff]  ;;  %v6692_v33 = vld [vmem:[#allocation65_spill] sm:$0xff] }
 0x339   : > { %2342 = vmatpush.msra.mxu1 %v6651_v56  ;;  %2382 = vmatpush.msra.mxu3 %v6652_v3  ;;  %v6693_v56 = vld [vmem:[#allocation70_spill] sm:$0xff]  ;;  %v6694_v3 = vld [vmem:[#allocation67_spill] sm:$0xff] }
 0x33a   : > { %2159 = vmatpush.msrb.mxu0 %v3265_v38  ;;  %2199 = vmatpush.msrb.mxu2 %v3266_v10  ;;  %v6695_v38 = vld [vmem:[#allocation72_spill] sm:$0xff]  ;;  %v6696_v10 = vld [vmem:[#allocation69_spill] sm:$0xff] }
 0x33b   : > { %2343 = vmatpush.msra.mxu1 %v6653_v1  ;;  %2383 = vmatpush.msra.mxu3 %v6654_v59  ;;  %v6697_v1 = vld [vmem:[#allocation74_spill] sm:$0xff] }
 0x33c   : > { %2160 = vmatpush.msrb.mxu0 %v3267_v37  ;;  %2200 = vmatpush.msrb.mxu2 %v3268_v27  ;;  %v6698_v59 = vld [vmem:[#allocation122_spill] sm:$0xff]  ;;  %v6699_v37 = vld [vmem:[#allocation123_spill] sm:$0xff]  ;;  %v6700_v27 = vld [vmem:[#allocation124_spill] sm:$0xff] }
 0x33d   : > { %2344 = vmatpush.msra.mxu1 %v6655_v47  ;;  %2384 = vmatpush.msra.mxu3 %v6656_v45  ;;  %v6701_v47 = vld [vmem:[#allocation125_spill] sm:$0xff]  ;;  %v6702_v45 = vld [vmem:[#allocation126_spill] sm:$0xff] }
 0x33e   : > { %2161 = vmatpush.msrb.mxu0 %v3269_v36  ;;  %2201 = vmatpush.msrb.mxu2 %v3270_v55  ;;  %v6703_v36 = vld [vmem:[#allocation127_spill] sm:$0xff]  ;;  %v6704_v55 = vld [vmem:[#allocation128_spill] sm:$0xff] }
 0x33f   : > { %2345 = vmatpush.msra.mxu1 %v6657_v57  ;;  %2385 = vmatpush.msra.mxu3 %v6658_v35  ;;  %v6705_v57 = vld [vmem:[#allocation129_spill] sm:$0xff]  ;;  %v6706_v35 = vld [vmem:[#allocation130_spill] sm:$0xff] }
 0x340   : > { %2162 = vmatpush.msrb.mxu0 %v3271_v40  ;;  %2202 = vmatpush.msrb.mxu2 %v3272_v39  ;;  %v6707_v40 = vld [vmem:[#allocation131_spill] sm:$0xff]  ;;  %v6708_v39 = vld [vmem:[#allocation132_spill] sm:$0xff] }
 0x341   : > { %2410 = vmatpush.msrb.mxu1 %v6659_v4  ;;  %2450 = vmatpush.msrb.mxu3 %v6660_v16  ;;  %v6709_v4 = vld [vmem:[#allocation133_spill] sm:$0xff]  ;;  %v6710_v16 = vld [vmem:[#allocation134_spill] sm:$0xff] }
 0x342   : > { %2163 = vmatpush.msrb.mxu0 %v3273_v21  ;;  %2203 = vmatpush.msrb.mxu2 %v3274_v20  ;;  %v6711_v21 = vld [vmem:[#allocation135_spill] sm:$0xff]  ;;  %v6712_v20 = vld [vmem:[#allocation136_spill] sm:$0xff] }
 0x343   : > { %2411 = vmatpush.msrb.mxu1 %v6661_v19  ;;  %2451 = vmatpush.msrb.mxu3 %v6662_v41  ;;  %v6713_v19 = vld [vmem:[#allocation137_spill] sm:$0xff]  ;;  %v6714_v41 = vld [vmem:[#allocation138_spill] sm:$0xff] }
 0x344   : > { %2164 = vmatpush.msrb.mxu0 %v3275_v44  ;;  %2204 = vmatpush.msrb.mxu2 %v3276_v54  ;;  %v6715_v44 = vld [vmem:[#allocation139_spill] sm:$0xff]  ;;  %v6716_v54 = vld [vmem:[#allocation140_spill] sm:$0xff] }
 0x345   : > { %2412 = vmatpush.msrb.mxu1 %v6663_v52  ;;  %2452 = vmatpush.msrb.mxu3 %v6664_v7  ;;  %v6717_v52 = vld [vmem:[#allocation141_spill] sm:$0xff]  ;;  %v6718_v7 = vld [vmem:[#allocation142_spill] sm:$0xff] }
 0x346   : > { %2165 = vmatpush.msrb.mxu0 %v3277_v25  ;;  %2205 = vmatpush.msrb.mxu2 %v3278_v28  ;;  %v6719_v25 = vld [vmem:[#allocation143_spill] sm:$0xff]  ;;  %v6720_v28 = vld [vmem:[#allocation144_spill] sm:$0xff] }
 0x347   : > { %2413 = vmatpush.msrb.mxu1 %v6665_v34  ;;  %2453 = vmatpush.msrb.mxu3 %v6666_v17  ;;  %v6721_v34 = vld [vmem:[#allocation145_spill] sm:$0xff]  ;;  %v6722_v17 = vld [vmem:[#allocation146_spill] sm:$0xff] }
 0x348   : > { %2166 = vmatpush.msrb.mxu0 %v3279_v0  ;;  %2206 = vmatpush.msrb.mxu2 %v3280_v61  ;;  %v6723_v0 = vld [vmem:[#allocation147_spill] sm:$0xff]  ;;  %v6724_v61 = vld [vmem:[#allocation148_spill] sm:$0xff] }
 0x349   : > { %2414 = vmatpush.msrb.mxu1 %v6667_v13  ;;  %2454 = vmatpush.msrb.mxu3 %v6668_v31  ;;  %v6725_v13 = vld [vmem:[#allocation149_spill] sm:$0xff]  ;;  %v6726_v31 = vld [vmem:[#allocation150_spill] sm:$0xff] }
 0x34a   : > { %2167 = vmatpush.msrb.mxu0 %v3281_v43  ;;  %2207 = vmatpush.msrb.mxu2 %v3282_v6  ;;  %v6727_v43 = vld [vmem:[#allocation151_spill] sm:$0xff]  ;;  %v6728_v6 = vld [vmem:[#allocation152_spill] sm:$0xff] }
 0x34b   : > { %2415 = vmatpush.msrb.mxu1 %v6669_v8  ;;  %2455 = vmatpush.msrb.mxu3 %v6670_v18  ;;  %v6729_v8 = vld [vmem:[#allocation153_spill] sm:$0xff]  ;;  %v6730_v18 = vld [vmem:[#allocation154_spill] sm:$0xff] }
 0x34c   : > { %2168 = vmatpush.msrb.mxu0 %v3283_v12  ;;  %2208 = vmatpush.msrb.mxu2 %v3284_v22  ;;  %v6731_v12 = vld [vmem:[#allocation155_spill] sm:$0xff]  ;;  %v6732_v22 = vld [vmem:[#allocation156_spill] sm:$0xff] }
 0x34d   : > { %2169 = vmatmul.f32.vlgmr.msrb.gmra.mxu0 %v5630_v11  ;;  %2209 = vmatmul.f32.vlgmr.msrb.gmra.mxu2 %v5630_v11  ;;  %v6681_v11 = vld [vmem:[#allocation58_spill] sm:$0xff] }
 0x34e   : > { %2310 = vmatpush.msra.mxu0 %v6671_v24  ;;  %2350 = vmatpush.msra.mxu2 %v6672_v32  ;;  %v6733_v24 = vld [vmem:[#allocation157_spill] sm:$0xff]  ;;  %v6734_v32 = vld [vmem:[#allocation158_spill] sm:$0xff] }
 0x34f   : > { %2416 = vmatpush.msrb.mxu1 %v6673_v42  ;;  %2456 = vmatpush.msrb.mxu3 %v6674_v14  ;;  %v6735_v42 = vld [vmem:[#allocation159_spill] sm:$0xff]  ;;  %v6736_v14 = vld [vmem:[#allocation160_spill] sm:$0xff] }
 0x350   : > { %2311 = vmatpush.msra.mxu0 %v6675_v50  ;;  %2351 = vmatpush.msra.mxu2 %v6676_v26  ;;  %v6737_v50 = vld [vmem:[#allocation161_spill] sm:$0xff]  ;;  %v6738_v26 = vld [vmem:[#allocation162_spill] sm:$0xff] }
 0x351   : > { %2417 = vmatpush.msrb.mxu1 %v6677_v63  ;;  %2457 = vmatpush.msrb.mxu3 %v6678_v48  ;;  %v6739_v63 = vld [vmem:[#allocation163_spill] sm:$0xff]  ;;  %v6740_v48 = vld [vmem:[#allocation164_spill] sm:$0xff] }
 0x352   : > { %2312 = vmatpush.msra.mxu0 %v6679_v58  ;;  %2352 = vmatpush.msra.mxu2 %v6680_v62  ;;  %v6741_v58 = vld [vmem:[#allocation165_spill] sm:$0xff]  ;;  %v6742_v62 = vld [vmem:[#allocation166_spill] sm:$0xff] }
 0x353   : > { %2418 = vmatpush.msrb.mxu1 %v6681_v11  ;;  %2458 = vmatpush.msrb.mxu3 %v6682_v60  ;;  %v6743_v11 = vld [vmem:[#allocation167_spill] sm:$0xff]  ;;  %v6744_v60 = vld [vmem:[#allocation168_spill] sm:$0xff] }
 0x354   : > { %2313 = vmatpush.msra.mxu0 %v6683_v9  ;;  %2353 = vmatpush.msra.mxu2 %v6684_v30  ;;  %v6745_v9 = vld [vmem:[#allocation169_spill] sm:$0xff]  ;;  %v6746_v30 = vld [vmem:[#allocation170_spill] sm:$0xff] }
 0x355   : > { %2419 = vmatpush.msrb.mxu1 %v6685_v23  ;;  %2459 = vmatpush.msrb.mxu3 %v6686_v49  ;;  %v1822_v23 = vld [vmem:[#allocation13 + $0x4] sm:$0xf]  ;;  %v6747_v49 = vld [vmem:[#allocation171_spill] sm:$0xff] }
 0x356   : > { %2314 = vmatpush.msra.mxu0 %v6687_v53  ;;  %2354 = vmatpush.msra.mxu2 %v6688_v29  ;;  %v6748_v53 = vld [vmem:[#allocation172_spill] sm:$0xff]  ;;  %v1824_v29 = vperm.slane %v1822_v23, 0 }
 0x357   : > { %2420 = vmatpush.msrb.mxu1 %v6689_v5  ;;  %2460 = vmatpush.msrb.mxu3 %v6690_v15  ;;  %v6749_v5 = vld [vmem:[#allocation173_spill] sm:$0xff]  ;;  %v6750_v15 = vld [vmem:[#allocation174_spill] sm:$0xff] }
 0x358   : > { %2315 = vmatpush.msra.mxu0 %v6691_v51  ;;  %2355 = vmatpush.msra.mxu2 %v6692_v33  ;;  %v6751_v51 = vld [vmem:[#allocation175_spill] sm:$0xff]  ;;  %v6752_v33 = vld [vmem:[#allocation176_spill] sm:$0xff] }
 0x359   : > { %2421 = vmatpush.msrb.mxu1 %v6693_v56  ;;  %2461 = vmatpush.msrb.mxu3 %v6694_v3 }
 0x35a   : > { %2316 = vmatpush.msra.mxu0 %v6695_v38  ;;  %2356 = vmatpush.msra.mxu2 %v6696_v10  ;;  %v6753_v38 = vld [vmem:[#allocation177_spill] sm:$0xff]  ;;  %v6754_v10 = vld [vmem:[#allocation178_spill] sm:$0xff] }
 0x35b   : > { %2422 = vmatpush.msrb.mxu1 %v6697_v1  ;;  %2462 = vmatpush.msrb.mxu3 %v6698_v59  ;;  %v1869_v1 = vpop.f32.mrf.mxu1 }
 0x35c   : > { %2317 = vmatpush.msra.mxu0 %v6699_v37  ;;  %2357 = vmatpush.msra.mxu2 %v6700_v27  ;;  %v1825_v37 = vperm.slane %v1822_v23, 1 }
 0x35d   : > { %2423 = vmatpush.msrb.mxu1 %v6701_v47  ;;  %2463 = vmatpush.msrb.mxu3 %v6702_v45  ;;  %v1909_v47 = vpop.f32.mrf.mxu3 }
 0x35e   : > { %2318 = vmatpush.msra.mxu0 %v6703_v36  ;;  %2358 = vmatpush.msra.mxu2 %v6704_v55 }
 0x35f   : > { %2424 = vmatpush.msrb.mxu1 %v6705_v57  ;;  %2464 = vmatpush.msrb.mxu3 %v6706_v35  ;;  %v1827_v35 = vperm.slane %v1822_v23, 3 }
 0x360   : > { %2319 = vmatpush.msra.mxu0 %v6707_v40  ;;  %2359 = vmatpush.msra.mxu2 %v6708_v39 }
 0x361   : > { %2425 = vmatpush.msrb.mxu1 %v6709_v4  ;;  %2465 = vmatpush.msrb.mxu3 %v6710_v16 }
 0x362   : > { %2320 = vmatpush.msra.mxu0 %v6711_v21  ;;  %2360 = vmatpush.msra.mxu2 %v6712_v20 }
 0x364   : > { %2321 = vmatpush.msra.mxu0 %v6713_v19  ;;  %2361 = vmatpush.msra.mxu2 %v6714_v41  ;;  %v1826_v41 = vperm.slane %v1822_v23, 2 }
 0x365   : > { %v1989_v21 = vpop.f32.mrf.mxu3 }
 0x366   : > { %2322 = vmatpush.msra.mxu0 %v6715_v44  ;;  %2362 = vmatpush.msra.mxu2 %v6716_v54 }
 0x368   : > { %2323 = vmatpush.msra.mxu0 %v6717_v52  ;;  %2363 = vmatpush.msra.mxu2 %v6718_v7 }
 0x36a   : > { %2324 = vmatpush.msra.mxu0 %v6719_v25  ;;  %2364 = vmatpush.msra.mxu2 %v6720_v28 }
 0x36c   : > { %2325 = vmatpush.msra.mxu0 %v6721_v34  ;;  %2365 = vmatpush.msra.mxu2 %v6722_v17  ;;  %v1949_v17 = vpop.f32.mrf.mxu1 }
 0x36e   : > { %2390 = vmatpush.msrb.mxu0 %v6723_v0  ;;  %2430 = vmatpush.msrb.mxu2 %v6724_v61  ;;  %v5752_v0 = vld [vmem:[#allocation13] sm:$0xf] }
 0x370   : > { %2391 = vmatpush.msrb.mxu0 %v6725_v13  ;;  %2431 = vmatpush.msrb.mxu2 %v6726_v31 }
 0x372   : > { %2392 = vmatpush.msrb.mxu0 %v6727_v43  ;;  %2432 = vmatpush.msrb.mxu2 %v6728_v6 }
 0x374   : > { %2393 = vmatpush.msrb.mxu0 %v6729_v8  ;;  %2433 = vmatpush.msrb.mxu2 %v6730_v18 }
 0x376   : > { %2394 = vmatpush.msrb.mxu0 %v6731_v12  ;;  %2434 = vmatpush.msrb.mxu2 %v6732_v22  ;;  %v2065_v22 = vperm.slane %v5752_v0, 0 }
 0x378   : > { %2395 = vmatpush.msrb.mxu0 %v6733_v24  ;;  %2435 = vmatpush.msrb.mxu2 %v6734_v32 }
 0x37a   : > { %2396 = vmatpush.msrb.mxu0 %v6735_v42  ;;  %2436 = vmatpush.msrb.mxu2 %v6736_v14 }
 0x37c   : > { %2397 = vmatpush.msrb.mxu0 %v6737_v50  ;;  %2437 = vmatpush.msrb.mxu2 %v6738_v26 }
 0x37e   : > { %2398 = vmatpush.msrb.mxu0 %v6739_v63  ;;  %2438 = vmatpush.msrb.mxu2 %v6740_v48 }
 0x380   : > { %2399 = vmatpush.msrb.mxu0 %v6741_v58  ;;  %2439 = vmatpush.msrb.mxu2 %v6742_v62 }
 0x382   : > { %2400 = vmatpush.msrb.mxu0 %v6743_v11  ;;  %2440 = vmatpush.msrb.mxu2 %v6744_v60  ;;  %v2066_v11 = vperm.slane %v5752_v0, 1 }
 0x384   : > { %2401 = vmatpush.msrb.mxu0 %v6745_v9  ;;  %2441 = vmatpush.msrb.mxu2 %v6746_v30 }
 0x386   : > { %2402 = vmatpush.msrb.mxu0 %v6747_v49  ;;  %2442 = vmatpush.msrb.mxu2 %v6748_v53 }
 0x387   : > { %v1849_v56 = vpop.f32.mrf.mxu0 }
 0x388   : > { %2403 = vmatpush.msrb.mxu0 %v6749_v5  ;;  %2443 = vmatpush.msrb.mxu2 %v6750_v15  ;;  %v1850_v3 = vadd.f32 %v1849_v56, %v1824_v29 }
 0x38a   : > { %2404 = vmatpush.msrb.mxu0 %v6751_v51  ;;  %2444 = vmatpush.msrb.mxu2 %v6752_v33  ;;  %v1870_v59 = vadd.f32 %v1869_v1, %v1850_v3 }
 0x38b   : > { %v2110_v62 = vpop.f32.mrf.mxu1 }
 0x38c   : > { %2405 = vmatpush.msrb.mxu0 %v6753_v38  ;;  %2445 = vmatpush.msrb.mxu2 %v6754_v10  ;;  %v2713_v27 = vmul.f32 -1.442695, %v1870_v59 }
 0x38d   : > { %v1889_v45 = vpop.f32.mrf.mxu2 }
 0x38e   : > { %2917 = vpow2.f32 %v2713_v27  ;;  %v1890_v36 = vadd.f32 %v1889_v45, %v1825_v37 }
 0x390   : > { %v1910_v55 = vadd.f32 %v1909_v47, %v1890_v36 }
 0x391   : > { %v2150_v1 = vpop.f32.mrf.mxu3 }
 0x392   : > { %v2714_v57 = vmul.f32 -1.442695, %v1910_v55  ;;  %v1929_v52 = vpop.f32.mrf.mxu0 }
 0x393   : > { %v1930_v28 = vadd.f32 %v1929_v52, %v1826_v41 }
 0x394   : > { %v2918_v40 = vpop.eup %2917  ;;  %2919 = vpow2.f32 %v2714_v57 }
 0x395   : > { %v1995_v39 = vadd.f32 1.0, %v2918_v40  ;;  %v1950_v13 = vadd.f32 %v1949_v17, %v1930_v28 }
 0x397   : > { %2921 = vrcp.f32 %v1995_v39  ;;  %v2007_v6 = vand.u32 2147483648, %v1995_v39  ;;  %vm2001_vm13 = vweird.f32 %v1995_v39  ;;  %v2005_v24 = vand.u32 2147483647, %v1995_v39 }
 0x398   : > { %v1969_v4 = vpop.f32.mrf.mxu2 }
 0x399   : > { %v1970_v16 = vadd.f32 %v1969_v4, %v1827_v35  ;;  %v2008_v50 = vor.u32 1.1754944e-38, %v2007_v6  ;;  %vm2006_vm0 = vcmp.eq.f32.partialorder %v2005_v24, 8.507059e+37 }
 0x39a   : > { %v2920_v19 = vpop.eup %2919 }
 0x39b   : > { %v1990_v20 = vadd.f32 %v1989_v21, %v1970_v16  ;;  %v2014_v54 = vadd.f32 1.0, %v2920_v19 }
 0x39d   : > { %v2715_v44 = vmul.f32 -1.442695, %v1990_v20  ;;  %v2922_v7 = vpop.eup %2921  ;;  %v2026_v42 = vand.u32 2147483648, %v2014_v54  ;;  %v2024_v48 = vand.u32 2147483647, %v2014_v54  ;;  %vm2020_vm1 = vweird.f32 %v2014_v54 }
 0x39e   : > { %v1997_v25 = vmul.f32 %v2922_v7, %v1995_v39  ;;  %vm2002_vm12 = vweird.f32 %v2922_v7 }
 0x39f   : > { %2923 = vpow2.f32 %v2715_v44  ;;  %vm2003_vm14 = vmor %vm2001_vm13, %vm2002_vm12  ;;  %v2027_v49 = vor.u32 1.1754944e-38, %v2026_v42  ;;  %vm2025_vm3 = vcmp.eq.f32.partialorder %v2024_v48, 8.507059e+37 }
 0x3a0   : > { %2925 = vrcp.f32 %v2014_v54  ;;  %v1998_v34 = vsub.f32 1.0, %v1997_v25 }
 0x3a2   : > { %v1999_v31 = vmul.f32 %v2922_v7, %v1998_v34 }
 0x3a4   : > { %v2000_v12 = vadd.f32 %v2922_v7, %v1999_v31 }
 0x3a5   : > { %v2924_v61 = vpop.eup %2923 }
 0x3a6   : > { %v2926_v43 = vpop.eup %2925  ;;  %v2034_v8 = vadd.f32 1.0, %v2924_v61  ;;  %v2004_v14 = vsel %vm2003_vm14, %v2922_v7, %v2000_v12  ;;  %v2067_v7 = vperm.slane %v5752_v0, 2 }
 0x3a7   : > { %v2016_v18 = vmul.f32 %v2926_v43, %v2014_v54  ;;  %vm2021_vm15 = vweird.f32 %v2926_v43  ;;  %v2009_v60 = vsel %vm2006_vm0, %v2008_v50, %v2004_v14 }
 0x3a8   : > { %2927 = vrcp.f32 %v2034_v8  ;;  %vm2022_vm2 = vmor %vm2020_vm1, %vm2021_vm15  ;;  %v2046_v45 = vand.u32 2147483648, %v2034_v8  ;;  %vm2040_vm5 = vweird.f32 %v2034_v8  ;;  %v2044_v55 = vand.u32 2147483647, %v2034_v8 }
 0x3a9   : > { %v2017_v32 = vsub.f32 1.0, %v2016_v18  ;;  %2929 = vtanh.f32 %v1950_v13  ;;  %v2190_v13 = vpop.f32.mrf.mxu1 }
 0x3aa   : > { %v2090_v26 = vpop.f32.mrf.mxu0  ;;  %v2047_v40 = vor.u32 1.1754944e-38, %v2046_v45  ;;  %vm2045_vm7 = vcmp.eq.f32.partialorder %v2044_v55, 8.507059e+37 }
 0x3ab   : > { %v2018_v63 = vmul.f32 %v2926_v43, %v2017_v32  ;;  %v2091_v58 = vadd.f32 %v2090_v26, %v2065_v22  ;;  %v2230_v26 = vpop.f32.mrf.mxu3 }
 0x3ad   : > { %v2019_v9 = vadd.f32 %v2926_v43, %v2018_v63  ;;  %v2111_v30 = vadd.f32 %v2110_v62, %v2091_v58 }
 0x3ae   : > { %v2928_v23 = vpop.eup %2927 }
 0x3af   : > { %v2930_v53 = vpop.eup %2929  ;;  %v2023_v29 = vsel %vm2022_vm2, %v2926_v43, %v2019_v9  ;;  %v2036_v5 = vmul.f32 %v2928_v23, %v2034_v8  ;;  %v2718_v15 = vmul.f32 -1.442695, %v2111_v30  ;;  %vm2041_vm4 = vweird.f32 %v2928_v23 }
 0x3b0   : > { %v2028_v51 = vsel %vm2025_vm3, %v2027_v49, %v2023_v29  ;;  %v2052_v33 = vmul.f32 %v2930_v53, %v2009_v60  ;;  %v2130_v56 = vpop.f32.mrf.mxu2  ;;  %vm2042_vm6 = vmor %vm2040_vm5, %vm2041_vm4  ;;  %v2068_v8 = vperm.slane %v5752_v0, 3 }
 0x3b1   : > { %v2051_v3 = vmul.f32 %v2028_v51, %v5503_v2  ;;  %v2037_v38 = vsub.f32 1.0, %v2036_v5  ;;  %2931 = vpow2.f32 %v2718_v15  ;;  %v2131_v10 = vadd.f32 %v2130_v56, %v2066_v11 }
 0x3b3   : > { %v5757_v59 = vadd.f32 %v2052_v33, %v2051_v3  ;;  %v2038_v37 = vmul.f32 %v2928_v23, %v2037_v38  ;;  %v2151_v27 = vadd.f32 %v2150_v1, %v2131_v10 }
 0x3b5   : > { %2933 = vtanh.f32 %v5757_v59  ;;  %v2039_v47 = vadd.f32 %v2928_v23, %v2038_v37  ;;  %v2719_v36 = vmul.f32 -1.442695, %v2151_v27  ;;  %v2300_v27 = vld [vmem:[#allocation13 + $0x4] sm:$0xf] }
 0x3b7   : > { %v2932_v57 = vpop.eup %2931  ;;  %2935 = vpow2.f32 %v2719_v36  ;;  %v2043_v2 = vsel %vm2042_vm6, %v2928_v23, %v2039_v47  ;;  %v2302_v47 = vperm.slane %v2300_v27, 0 }
 0x3b8   : > { %v2236_v35 = vadd.f32 1.0, %v2932_v57  ;;  %v2048_v4 = vsel %vm2045_vm7, %v2047_v40, %v2043_v2  ;;  %v2303_v2 = vperm.slane %v2300_v27, 1 }
 0x3ba   : > { %2937 = vrcp.f32 %v2236_v35  ;;  %v2248_v22 = vand.u32 2147483648, %v2236_v35  ;;  %vm2242_vm12 = vweird.f32 %v2236_v35  ;;  %v2246_v24 = vand.u32 2147483647, %v2236_v35 }
 0x3bb   : > { %v2934_v39 = vpop.eup %2933 }
 0x3bc   : > { %v2055_v16 = vmul.f32 %v2934_v39, %v2048_v4  ;;  %v2249_v48 = vor.u32 1.1754944e-38, %v2248_v22  ;;  %vm2247_vm15 = vcmp.eq.f32.partialorder %v2246_v24, 8.507059e+37 }
 0x3bd   : > { %v2936_v21 = vpop.eup %2935 }
 0x3be   : > { %2716 = vst [vmem:[%s3742_s29 + $0x10] sm:$0xff] %v2055_v16  ;;  %v2255_v20 = vadd.f32 1.0, %v2936_v21  ;;  %2346 = vmatmul.f32.vlgmr.msra.gmra.mxu1 %v2055_v16  ;;  %2386 = vmatmul.f32.vlgmr.msra.gmra.mxu3 %v2055_v16 }
 0x3c0   : > { %v2938_v19 = vpop.eup %2937  ;;  %2939 = vrcp.f32 %v2255_v20  ;;  %v2267_v31 = vand.u32 2147483648, %v2255_v20  ;;  %vm2261_vm9 = vweird.f32 %v2255_v20  ;;  %v2265_v12 = vand.u32 2147483647, %v2255_v20 }
 0x3c1   : > { %v2238_v41 = vmul.f32 %v2938_v19, %v2236_v35  ;;  %vm2243_vm10 = vweird.f32 %v2938_v19 }
 0x3c2   : > { %v2268_v14 = vor.u32 1.1754944e-38, %v2267_v31  ;;  %vm2244_vm13 = vmor %vm2242_vm12, %vm2243_vm10  ;;  %vm2266_vm14 = vcmp.eq.f32.partialorder %v2265_v12, 8.507059e+37 }
 0x3c3   : > { %v2239_v54 = vsub.f32 1.0, %v2238_v41 }
 0x3c5   : > { %v2240_v34 = vmul.f32 %v2938_v19, %v2239_v54 }
 0x3c6   : > { %v2940_v44 = vpop.eup %2939  ;;  %2426 = vmatmul.f32.vlgmr.msrb.gmra.mxu1 %v2055_v16  ;;  %2466 = vmatmul.f32.vlgmr.msrb.gmra.mxu3 %v2055_v16 }
 0x3c7   : > { %v2257_v52 = vmul.f32 %v2940_v44, %v2255_v20  ;;  %vm2262_vm8 = vweird.f32 %v2940_v44  ;;  %v2241_v18 = vadd.f32 %v2938_v19, %v2240_v34  ;;  %v2305_v20 = vperm.slane %v2300_v27, 3 }
 0x3c8   : > { %vm2263_vm11 = vmor %vm2261_vm9, %vm2262_vm8 }
 0x3c9   : > { %v2258_v25 = vsub.f32 1.0, %v2257_v52  ;;  %v2245_v63 = vsel %vm2244_vm13, %v2938_v19, %v2241_v18 }
 0x3ca   : > { %v2170_v28 = vpop.f32.mrf.mxu0  ;;  %v2250_v11 = vsel %vm2247_vm15, %v2249_v48, %v2245_v63 }
 0x3cb   : > { %v2259_v17 = vmul.f32 %v2940_v44, %v2258_v25  ;;  %v2171_v61 = vadd.f32 %v2170_v28, %v2067_v7 }
 0x3cd   : > { %v2191_v43 = vadd.f32 %v2190_v13, %v2171_v61  ;;  %v2260_v6 = vadd.f32 %v2940_v44, %v2259_v17  ;;  %v2304_v17 = vperm.slane %v2300_v27, 2 }
 0x3cf   : > { %2941 = vtanh.f32 %v2191_v43  ;;  %v2264_v32 = vsel %vm2263_vm11, %v2940_v44, %v2260_v6 }
 0x3d0   : > { %v2210_v42 = vpop.f32.mrf.mxu2  ;;  %v2269_v58 = vsel %vm2266_vm14, %v2268_v14, %v2264_v32 }
 0x3d1   : > { %v2211_v50 = vadd.f32 %v2210_v42, %v2068_v8  ;;  %v2292_v9 = vmul.f32 %v2269_v58, %v5590_v46 }
 0x3d3   : > { %v2231_v0 = vadd.f32 %v2230_v26, %v2211_v50 }
 0x3d5   : > { %v2942_v62 = vpop.eup %2941  ;;  %v2720_v60 = vmul.f32 -1.442695, %v2231_v0 }
 0x3d6   : > { %v2293_v30 = vmul.f32 %v2942_v62, %v2250_v11 }
 0x3d7   : > { %2943 = vpow2.f32 %v2720_v60 }
 0x3d8   : > { %v2294_v23 = vadd.f32 %v2293_v30, %v2292_v9 }
 0x3da   : > { %2298 = vst [vmem:[#allocation3 + $0x8] sm:$0xff] %v2294_v23 }
 0x3dd   : > { %v2944_v49 = vpop.eup %2943 }
 0x3de   : > { %v2275_v53 = vadd.f32 1.0, %v2944_v49 }
 0x3e0   : > { %2945 = vrcp.f32 %v2275_v53  ;;  %v2287_v51 = vand.u32 2147483648, %v2275_v53  ;;  %v2285_v56 = vand.u32 2147483647, %v2275_v53  ;;  %vm2281_vm1 = vweird.f32 %v2275_v53 }
 0x3e1   : > { %2947 = vtanh.f32 %v2294_v23 }
 0x3e2   : > { %v2288_v38 = vor.u32 1.1754944e-38, %v2287_v51  ;;  %vm2286_vm3 = vcmp.eq.f32.partialorder %v2285_v56, 8.507059e+37 }
 0x3e6   : > { %v2946_v29 = vpop.eup %2945 }
 0x3e7   : > { %v2277_v5 = vmul.f32 %v2946_v29, %v2275_v53  ;;  %vm2282_vm0 = vweird.f32 %v2946_v29  ;;  %v2948_v10 = vpop.eup %2947 }
 0x3e8   : > { %vm2283_vm2 = vmor %vm2281_vm1, %vm2282_vm0 }
 0x3e9   : > { %v2278_v15 = vsub.f32 1.0, %v2277_v5 }
 0x3eb   : > { %v2279_v33 = vmul.f32 %v2946_v29, %v2278_v15 }
 0x3ed   : > { %v2280_v3 = vadd.f32 %v2946_v29, %v2279_v33 }
 0x3ef   : > { %v2284_v46 = vsel %vm2283_vm2, %v2946_v29, %v2280_v3 }
 0x3f0   : > { %v2289_v1 = vsel %vm2286_vm3, %v2288_v38, %v2284_v46 }
 0x3f1   : > { %v2296_v37 = vmul.f32 %v2948_v10, %v2289_v1 }
 0x3f3   : > { %2297 = vst [vmem:[#allocation2] sm:$0xff] %v2296_v37  ;;  %2326 = vmatmul.f32.vlgmr.msra.gmra.mxu0 %v2296_v37  ;;  %2366 = vmatmul.f32.vlgmr.msra.gmra.mxu2 %v2296_v37 }
 0x3fb   : > { %2406 = vmatmul.f32.vlgmr.msrb.gmra.mxu0 %v2296_v37  ;;  %2446 = vmatmul.f32.vlgmr.msrb.gmra.mxu2 %v2296_v37 }
 0x43b   : > { %v2347_v55 = vpop.f32.mrf.mxu1 }
 0x441   : > { %v2387_v40 = vpop.f32.mrf.mxu3 }
 0x443   : > { %v2427_v18 = vpop.f32.mrf.mxu1 }
 0x449   : > { %v2467_v52 = vpop.f32.mrf.mxu3 }
 0x470   : > { %v2327_v45 = vpop.f32.mrf.mxu0 }
 0x471   : > { %v2328_v36 = vadd.f32 %v2327_v45, %v2302_v47 }
 0x473   : > { %v2348_v57 = vadd.f32 %v2347_v55, %v2328_v36 }
 0x475   : > { %v2721_v35 = vmul.f32 -1.442695, %v2348_v57 }
 0x476   : > { %v2367_v39 = vpop.f32.mrf.mxu2 }
 0x477   : > { %2949 = vpow2.f32 %v2721_v35  ;;  %v2368_v4 = vadd.f32 %v2367_v39, %v2303_v2 }
 0x478   : > { %v2407_v61 = vpop.f32.mrf.mxu0 }
 0x479   : > { %v2388_v16 = vadd.f32 %v2387_v40, %v2368_v4  ;;  %v2408_v43 = vadd.f32 %v2407_v61, %v2304_v17 }
 0x47b   : > { %v2722_v21 = vmul.f32 -1.442695, %v2388_v16  ;;  %v2428_v24 = vadd.f32 %v2427_v18, %v2408_v43 }
 0x47d   : > { %v2950_v19 = vpop.eup %2949  ;;  %2951 = vpow2.f32 %v2722_v21 }
 0x47e   : > { %v2473_v41 = vadd.f32 1.0, %v2950_v19  ;;  %v2447_v44 = vpop.f32.mrf.mxu2 }
 0x47f   : > { %v2448_v54 = vadd.f32 %v2447_v44, %v2305_v20 }
 0x480   : > { %2953 = vrcp.f32 %v2473_v41  ;;  %v2485_v50 = vand.u32 2147483648, %v2473_v41  ;;  %vm2479_vm5 = vweird.f32 %v2473_v41  ;;  %v2483_v63 = vand.u32 2147483647, %v2473_v41 }
 0x481   : > { %v2468_v7 = vadd.f32 %v2467_v52, %v2448_v54 }
 0x482   : > { %v2486_v11 = vor.u32 1.1754944e-38, %v2485_v50  ;;  %vm2484_vm9 = vcmp.eq.f32.partialorder %v2483_v63, 8.507059e+37 }
 0x483   : > { %v2952_v25 = vpop.eup %2951  ;;  %v2723_v28 = vmul.f32 -1.442695, %v2468_v7 }
 0x484   : > { %v2492_v34 = vadd.f32 1.0, %v2952_v25 }
 0x485   : > { %2955 = vpow2.f32 %v2723_v28 }
 0x486   : > { %v2954_v13 = vpop.eup %2953  ;;  %2957 = vrcp.f32 %v2492_v34  ;;  %v2504_v48 = vand.u32 2147483648, %v2492_v34  ;;  %v2502_v62 = vand.u32 2147483647, %v2492_v34  ;;  %vm2498_vm8 = vweird.f32 %v2492_v34 }
 0x487   : > { %v2475_v31 = vmul.f32 %v2954_v13, %v2473_v41  ;;  %vm2480_vm4 = vweird.f32 %v2954_v13 }
 0x488   : > { %vm2481_vm6 = vmor %vm2479_vm5, %vm2480_vm4  ;;  %v2505_v30 = vor.u32 1.1754944e-38, %v2504_v48  ;;  %vm2503_vm11 = vcmp.eq.f32.partialorder %v2502_v62, 8.507059e+37 }
 0x489   : > { %v2476_v6 = vsub.f32 1.0, %v2475_v31 }
 0x48b   : > { %v2956_v8 = vpop.eup %2955  ;;  %v2477_v12 = vmul.f32 %v2954_v13, %v2476_v6 }
 0x48c   : > { %v2958_v22 = vpop.eup %2957  ;;  %v2512_v32 = vadd.f32 1.0, %v2956_v8 }
 0x48d   : > { %v2494_v42 = vmul.f32 %v2958_v22, %v2492_v34  ;;  %v2478_v14 = vadd.f32 %v2954_v13, %v2477_v12  ;;  %vm2499_vm7 = vweird.f32 %v2958_v22 }
 0x48e   : > { %2959 = vrcp.f32 %v2512_v32  ;;  %vm2500_vm10 = vmor %vm2498_vm8, %vm2499_vm7  ;;  %v2524_v46 = vand.u32 2147483648, %v2512_v32  ;;  %vm2518_vm13 = vweird.f32 %v2512_v32  ;;  %v2522_v10 = vand.u32 2147483647, %v2512_v32 }
 0x48f   : > { %v2495_v26 = vsub.f32 1.0, %v2494_v42  ;;  %2961 = vtanh.f32 %v2428_v24  ;;  %v2482_v0 = vsel %vm2481_vm6, %v2954_v13, %v2478_v14 }
 0x490   : > { %v2487_v23 = vsel %vm2484_vm9, %v2486_v11, %v2482_v0  ;;  %v2525_v1 = vor.u32 1.1754944e-38, %v2524_v46  ;;  %vm2523_vm15 = vcmp.eq.f32.partialorder %v2522_v10, 8.507059e+37 }
 0x491   : > { %v2496_v58 = vmul.f32 %v2958_v22, %v2495_v26 }
 0x493   : > { %v2497_v60 = vadd.f32 %v2958_v22, %v2496_v58 }
 0x494   : > { %v2960_v9 = vpop.eup %2959 }
 0x495   : > { %v2501_v49 = vsel %vm2500_vm10, %v2958_v22, %v2497_v60  ;;  %v2514_v53 = vmul.f32 %v2960_v9, %v2512_v32  ;;  %v2962_v29 = vpop.eup %2961  ;;  %vm2519_vm12 = vweird.f32 %v2960_v9 }
 0x496   : > { %v2506_v5 = vsel %vm2503_vm11, %v2505_v30, %v2501_v49  ;;  %v2530_v51 = vmul.f32 %v2962_v29, %v2487_v23  ;;  %vm2520_vm14 = vmor %vm2518_vm13, %vm2519_vm12 }
 0x497   : > { %v2529_v15 = vmul.f32 %v2506_v5, %v5757_v59  ;;  %v2515_v33 = vsub.f32 1.0, %v2514_v53 }
 0x499   : > { %v2531_v56 = vadd.f32 %v2530_v51, %v2529_v15  ;;  %v2516_v3 = vmul.f32 %v2960_v9, %v2515_v33 }
 0x49b   : > { %2963 = vtanh.f32 %v2531_v56  ;;  %2535 = vst [vmem:[#allocation3] sm:$0xff] %v2531_v56  ;;  %v2517_v38 = vadd.f32 %v2960_v9, %v2516_v3 }
 0x49d   : > { %v2521_v59 = vsel %vm2520_vm14, %v2960_v9, %v2517_v38 }
 0x49e   : > { %v2526_v27 = vsel %vm2523_vm15, %v2525_v1, %v2521_v59 }
 0x4a1   : > { %v2964_v37 = vpop.eup %2963 }
 0x4a2   : > { %v2533_v47 = vmul.f32 %v2964_v37, %v2526_v27 }
 0x4a4   : > { %2534 = vst [vmem:[#allocation2 + $0x8] sm:$0xff] %v2533_v47 }
 0x4a5   : > { %2724 = vst [vmem:[%s3742_s29 + $0x18] sm:$0xff] %v2533_v47 }
 0x4a6   : > { %3492 = shalt.err (!%p3489_p11)
}
 0x4a7   : > { %s3556_s12 = smov 128   ;;  %s3557_s29 = smov 8  }
 0x4a8   : > { %2754 = dma.vmem_to_hbm [thread:$0]  (%p3686_p0), %s2552_s7, 512, %s2554_s10, %s2539_s28, %s3556_s12, %s3556_s12, %s3557_s29  }
 0x4a9 PF: > { %s2568_s11 = sand.u32 1, %s3531_s21   ;;  %p6755_p12 = scmp.ge.s32.totalorder %s3543_s24, 2 }
 0x4aa   : > { %s2569_s20 = scalar_lea.sflag [#allocation6], %s2568_s11 }
 0x4ab   : > { %p2777_p6 = pnand %p6755_p12, %p3691_p7 }
 0x4ad   : > { %p2778_p2 = pneg %p2777_p6 }
 0x4af   : > { %3526 = dma.done.wait (%p2778_p2), %s2569_s20, 512  }
 0x4b0   : > { %3528 = vsyncadd (%p2778_p2), %s2569_s20, 4294966784  ;;  %p22_p5 = scmp.ge.s32.totalorder %s3666_s30, 4   ;;  %s6756_s21 = smov %s3535_s22 }
 0x4b1   : > { %s6757_s22 = smov %s3539_s23  ;;  %s6758_s23 = smov %s3678_s16 }
 0x4b2   : > { %s6759_s24 = smov %s3666_s30  ;;  %24 = sbr.rel (!%p22_p5) target bundleno = 8 (0x8), region = 122 }
 0x4b7   :  { %2575 = vsyncpa [#allocation5], 1 }
 0x4b8   :  { %2577 = vsyncpa [#allocation5 + $0x1], 1 }
 0x4b9   :  { %2578 = vsyncpa [#allocation8], 1 }
 0x4ba   :  { %2579 = vsyncpa [#allocation11], 1 }
 0x4bb   :  { %2580 = vsyncpa [#allocation14], 1 }
 0x4bc   :  { %2581 = vsyncpa [#allocation6], 1 }
 0x4bd   :  { %2583 = vsyncpa [#allocation6 + $0x1], 1 }

</bundles_post_ra>
